<compile_context>
chip_gen: v6e
topology: v6e:2x2x1
jax: 0.10.0
libtpu: 0.0.40
codegen_flags: <defaults>
</compile_context>

<pallas_src>
import functools

import jax
import jax.numpy as jnp
from jax.experimental import pallas as pl
from jax.experimental.pallas import tpu as pltpu

_EPS = 1e-8


# ---------------------------------------------------------------------------
# in-kernel math helpers (traced inside the Pallas kernels)
# ---------------------------------------------------------------------------
def _mxu_dot(a, b):
    """MXU matmul: bf16 operands, f32 accumulation."""
    return jnp.dot(a.astype(jnp.bfloat16), b.astype(jnp.bfloat16),
                   preferred_element_type=jnp.float32)


def _prelu(x, a):
    # a: (1, 1) -- nn.PReLU() single shared slope (init 0.25).
    return jnp.where(x >= 0, x, a * x)


def _groupnorm2d(x, w, b):
    # GroupNorm(1, C, eps=1e-8): stats over all (C, L) elements of one sample.
    mean = jnp.mean(x, keepdims=True)
    var = jnp.mean((x - mean) ** 2, keepdims=True)
    return (x - mean) * jax.lax.rsqrt(var + _EPS) * w + b


# ---------------------------------------------------------------------------
# BlockSpec helpers + generic pallas_call wrapper (grid over the batch)
# ---------------------------------------------------------------------------
def _bspec(shape):
    n = len(shape) - 1
    return pl.BlockSpec((1,) + tuple(shape[1:]), lambda b, n=n: (b,) + (0,) * n)


def _fspec(shape):
    n = len(shape)
    return pl.BlockSpec(tuple(shape), lambda b, n=n: (0,) * n)


def _pcall(kernel, batched, full, out_sample_shapes, scratch_shapes=(),
           io_aliases=None):
    B = batched[0].shape[0]
    out_shape = tuple(jax.ShapeDtypeStruct((B,) + tuple(s), jnp.float32)
                      for s in out_sample_shapes)
    out_specs = tuple(_bspec((B,) + tuple(s)) for s in out_sample_shapes)
    single = len(out_shape) == 1
    return pl.pallas_call(
        kernel,
        grid=(B,),
        in_specs=[_bspec(a.shape) for a in batched]
        + [_fspec(a.shape) for a in full],
        out_specs=out_specs[0] if single else out_specs,
        out_shape=out_shape[0] if single else out_shape,
        scratch_shapes=list(scratch_shapes),
        input_output_aliases=dict(io_aliases or {}),
        compiler_params=pltpu.CompilerParams(
            dimension_semantics=("parallel",)),
    )(*batched, *full)


# ---------------------------------------------------------------------------
# fused Pallas kernels
# ---------------------------------------------------------------------------
def _gn_pw_kernel(x_ref, lnw_ref, lnb_ref, w_ref, b_ref, o_ref):
    """GroupNorm(1, Cin) -> 1x1 conv (TCN.LN + TCN.BN fused)."""
    xn = _groupnorm2d(x_ref[0], lnw_ref[...], lnb_ref[...])
    o_ref[0] = _mxu_dot(w_ref[...], xn) + b_ref[...]


def _dconv_core(x, w1_ref, b1_ref, a1_ref, g1w_ref, g1b_ref, dw_ref, db_ref,
                a2_ref, g2w_ref, g2b_ref, gpad_sc, *, K, dil, pad):
    """1x1 conv -> PReLU -> GN -> dilated depthwise conv -> PReLU -> GN.

    Depthwise taps are read as static shifted slices of a zero-padded VMEM
    scratch (no tap stacks ever touch HBM)."""
    L = x.shape[-1]
    h = _prelu(_mxu_dot(w1_ref[...], x) + b1_ref[...], a1_ref[...])
    gpad_sc[...] = jnp.zeros_like(gpad_sc)
    gpad_sc[:, pad:pad + L] = _groupnorm2d(h, g1w_ref[...], g1b_ref[...])
    acc = jnp.zeros_like(h) + db_ref[...]
    for k in range(K):                               # static unroll, K small
        acc = acc + dw_ref[k] * gpad_sc[:, k * dil:k * dil + L]
    return _groupnorm2d(_prelu(acc, a2_ref[...]), g2w_ref[...], g2b_ref[...])


def _depthconv_trunk_kernel(x_ref, skip_in_ref,
                            w1_ref, b1_ref, a1_ref, g1w_ref, g1b_ref,
                            dw_ref, db_ref, a2_ref, g2w_ref, g2b_ref,
                            wres_ref, bres_ref, wskip_ref, bskip_ref,
                            out_ref, skip_out_ref, gpad_sc, *, K, dil, pad):
    """Full DepthConv1d trunk block fused with `output += residual` and
    `skip_connection += skip` (accumulators aliased in place)."""
    x = x_ref[0]
    h2 = _dconv_core(x, w1_ref, b1_ref, a1_ref, g1w_ref, g1b_ref, dw_ref,
                     db_ref, a2_ref, g2w_ref, g2b_ref, gpad_sc,
                     K=K, dil=dil, pad=pad)
    out_ref[0] = x + _mxu_dot(wres_ref[...], h2) + bres_ref[...]
    skip_out_ref[0] = (skip_in_ref[0] + _mxu_dot(wskip_ref[...], h2)
                       + bskip_ref[...])


def _depthconv_branch_kernel(x_ref,
                             w1_ref, b1_ref, a1_ref, g1w_ref, g1b_ref,
                             dw_ref, db_ref, a2_ref, g2w_ref, g2b_ref,
                             wres_ref, bres_ref,
                             out_ref, gpad_sc, *, K, dil, pad):
    """DepthConv1d used as q/k/v projection in ConvCrossAttention (the skip
    branch is discarded by the model, so it is not computed)."""
    h2 = _dconv_core(x_ref[0], w1_ref, b1_ref, a1_ref, g1w_ref, g1b_ref,
                     dw_ref, db_ref, a2_ref, g2w_ref, g2b_ref, gpad_sc,
                     K=K, dil=dil, pad=pad)
    out_ref[0] = _mxu_dot(wres_ref[...], h2) + bres_ref[...]


def _attn_gn_kernel(q_ref, k_ref, v_ref, r_ref, gw_ref, gb_ref, o_ref, *, temp):
    """Scaled-dot-product attention over channels (n_head=1, d_k=d_v=L)
    + residual + GroupNorm (ConvCrossAttention tail)."""
    q = (q_ref[0] * (1.0 / temp)).astype(jnp.bfloat16)
    k = k_ref[0].astype(jnp.bfloat16)
    s = jax.lax.dot_general(q, k, (((1,), (1,)), ((), ())),
                            preferred_element_type=jnp.float32)       # (C, C)
    s = s - jnp.max(s, axis=-1, keepdims=True)
    e = jnp.exp(s)
    p = e * pl.reciprocal(jnp.sum(e, axis=-1, keepdims=True), approx=True)
    out = _mxu_dot(p, v_ref[0]) + r_ref[0]
    o_ref[0] = _groupnorm2d(out, gw_ref[...], gb_ref[...])


def _add_gn_acc_kernel(x_ref, r_ref, skip_in_ref, gw_ref, gb_ref,
                       out_ref, skip_out_ref):
    """out = GroupNorm(x + residual); skip_acc += out  (MLCA inner loop)."""
    y = _groupnorm2d(x_ref[0] + r_ref[0], gw_ref[...], gb_ref[...])
    out_ref[0] = y
    skip_out_ref[0] = skip_in_ref[0] + y


def _proj_gn_kernel(x_ref, w_ref, b_ref, gw_ref, gb_ref, o_ref, stack_sc, *, K):
    """K-tap 'same' conv (MLCA projection) as ONE (Cout, K*Cin) x (K*Cin, L)
    MXU matmul over a VMEM tap stack, fused with the output GroupNorm."""
    L = o_ref.shape[-1]
    Cc = x_ref.shape[1]
    for k in range(K):
        stack_sc[k * Cc:(k + 1) * Cc, :] = x_ref[0, :, k:k + L]
    out = _mxu_dot(w_ref[...], stack_sc[...]) + b_ref[...]
    o_ref[0] = _groupnorm2d(out, gw_ref[...], gb_ref[...])


def _prelu_pw_kernel(x_ref, a_ref, w_ref, b_ref, o_ref):
    """PReLU -> 1x1 conv (TCN output head)."""
    o_ref[0] = _mxu_dot(w_ref[...], _prelu(x_ref[0], a_ref[...])) + b_ref[...]


# ---------------------------------------------------------------------------
# thin wrappers
# ---------------------------------------------------------------------------
def gn_pw_op(x, lnw, lnb, w, b):
    _, _, L = x.shape
    return _pcall(_gn_pw_kernel, [x], [lnw, lnb, w, b], [(w.shape[0], L)])


def depthconv_trunk_op(x, skip, p, K, dil, pad):
    _, C, L = x.shape
    H = p['w1'].shape[0]
    assert 2 * pad == dil * (K - 1)          # output length == input length
    kern = functools.partial(_depthconv_trunk_kernel, K=K, dil=dil, pad=pad)
    full = [p['w1'], p['b1'], p['a1'], p['g1w'], p['g1b'], p['dw'], p['db'],
            p['a2'], p['g2w'], p['g2b'], p['wres'], p['bres'],
            p['wskip'], p['bskip']]
    return _pcall(kern, [x, skip], full, [(C, L), (C, L)],
                  scratch_shapes=[pltpu.VMEM((H, L + 2 * pad), jnp.float32)],
                  io_aliases={0: 0, 1: 1})


def depthconv_branch_op(x, p, K, dil, pad):
    _, C, L = x.shape
    H = p['w1'].shape[0]
    assert 2 * pad == dil * (K - 1)
    kern = functools.partial(_depthconv_branch_kernel, K=K, dil=dil, pad=pad)
    full = [p['w1'], p['b1'], p['a1'], p['g1w'], p['g1b'], p['dw'], p['db'],
            p['a2'], p['g2w'], p['g2b'], p['wres'], p['bres']]
    return _pcall(kern, [x], full, [(C, L)],
                  scratch_shapes=[pltpu.VMEM((H, L + 2 * pad), jnp.float32)])


def attn_gn_op(q, k, v, r, gw, gb, temp):
    _, C, L = q.shape
    kern = functools.partial(_attn_gn_kernel, temp=temp)
    return _pcall(kern, [q, k, v, r], [gw, gb], [(C, L)])


def add_gn_acc_op(x, r, skip, gw, gb):
    _, C, L = x.shape
    return _pcall(_add_gn_acc_kernel, [x, r, skip], [gw, gb],
                  [(C, L), (C, L)], io_aliases={0: 0, 2: 1})


def proj_gn_op(xcat_padded, w, b, gw, gb, K, L):
    Cc = xcat_padded.shape[1]
    kern = functools.partial(_proj_gn_kernel, K=K)
    return _pcall(kern, [xcat_padded], [w, b, gw, gb], [(w.shape[0], L)],
                  scratch_shapes=[pltpu.VMEM((K * Cc, L), jnp.float32)])


def prelu_pw_op(x, a, w, b):
    _, _, L = x.shape
    return _pcall(_prelu_pw_kernel, [x], [a, w, b], [(w.shape[0], L)])


# ---------------------------------------------------------------------------
# module forwards (orchestration; heavy lifting lives inside the kernels)
# ---------------------------------------------------------------------------
def cca_forward(p, q_in, k_in, v_in, K):
    """ConvCrossAttention (n_head=1, d_k=d_v=L, dilation=1, dropout=identity)."""
    L = q_in.shape[-1]
    pad = (K - 1) // 2                       # padding='same', odd kernel
    residual = v_in
    q = depthconv_branch_op(q_in, p['w_qs'], K, 1, pad)
    k = depthconv_branch_op(k_in, p['w_ks'], K, 1, pad)
    v = depthconv_branch_op(v_in, p['w_vs'], K, 1, pad)
    return attn_gn_op(q, k, v, residual, p['ln_w'], p['ln_b'], float(L) ** 0.5)


def mlca_forward(p, audio, spike, K):
    """MultiLayerCrossAttention."""
    out_audio, out_spike = audio, spike
    skip_audio = jnp.zeros_like(audio)
    skip_spike = jnp.zeros_like(spike)
    residual_audio, residual_spike = audio, spike
    for i in range(len(p['audio_enc'])):
        out_audio = cca_forward(p['audio_enc'][i], out_spike, out_audio,
                                out_audio, K)
        out_spike = cca_forward(p['spike_enc'][i], out_audio, out_spike,
                                out_spike, K)
        out_audio, skip_audio = add_gn_acc_op(out_audio, residual_audio,
                                              skip_audio, *p['ln_a'][i])
        out_spike, skip_spike = add_gn_acc_op(out_spike, residual_spike,
                                              skip_spike, *p['ln_s'][i])
        residual_audio, residual_spike = out_audio, out_spike
    cat = jnp.concatenate([skip_audio, audio, out_spike, spike], axis=1)
    L = cat.shape[-1]
    pad_l = (K - 1) // 2
    pad_r = (K - 1) - pad_l
    cat_p = jnp.pad(cat, ((0, 0), (0, 0), (pad_l, pad_r)))   # single cheap pad
    gw_out, gb_out = p['ln_out']
    return proj_gn_op(cat_p, p['proj_w'], p['proj_b'], gw_out, gb_out, K, L)


def tcn_forward(params, x, spike, *, K, fuse_at, block_cfg):
    """TCN.forward(input, spike) with skip=True, dilated=True."""
    output = gn_pw_op(x, params['LN_w'], params['LN_b'],
                      params['BN_w'], params['BN_b'])
    skip_connection = jnp.zeros_like(output)
    for i, (dil, pad) in enumerate(block_cfg):
        output, skip_connection = depthconv_trunk_op(
            output, skip_connection, params['tcn'][i], K, dil, pad)
        if i == fuse_at:
            pad_amt = output.shape[-1] - spike.shape[-1]
            spike_p = jnp.pad(spike, ((0, 0), (0, 0), (0, pad_amt)))   # F.pad
            output = mlca_forward(params['fusion'], output, spike_p, K)
    # self.output = Sequential(PReLU(), Conv1d(BN_dim, output_dim, 1)) on skip sum
    return prelu_pw_op(skip_connection, params['out_a'],
                       params['out_w'], params['out_b'])


# ---------------------------------------------------------------------------
# deterministic synthetic parameters (no checkpoint loading)
# ---------------------------------------------------------------------------
_KEY = jax.random.PRNGKey(0)
_CNT = [0]


def rand(shape, scale=0.2):
    _CNT[0] += 1
    return scale * jax.random.normal(jax.random.fold_in(_KEY, _CNT[0]),
                                     shape, dtype=jnp.float32)


def gn_params(C):
    return (1.0 + rand((C, 1), 0.05), rand((C, 1), 0.05))


def init_depthconv(in_ch, hid, K):
    g1w, g1b = gn_params(hid)
    g2w, g2b = gn_params(hid)
    return dict(
        w1=rand((hid, in_ch)), b1=rand((hid, 1)),
        a1=jnp.full((1, 1), 0.25, jnp.float32), g1w=g1w, g1b=g1b,
        dw=rand((K, hid, 1)), db=rand((hid, 1)),
        a2=jnp.full((1, 1), 0.25, jnp.float32), g2w=g2w, g2b=g2b,
        wres=rand((in_ch, hid)), bres=rand((in_ch, 1)),
        wskip=rand((in_ch, hid)), bskip=rand((in_ch, 1)),
    )


def init_cca(in_ch, K):
    lnw, lnb = gn_params(in_ch)
    return dict(
        w_qs=init_depthconv(in_ch, 2 * in_ch, K),
        w_ks=init_depthconv(in_ch, 2 * in_ch, K),
        w_vs=init_depthconv(in_ch, 2 * in_ch, K),
        ln_w=lnw, ln_b=lnb,
    )


def init_mlca(in_ch, K, layers):
    return dict(
        audio_enc=[init_cca(in_ch, K) for _ in range(layers)],
        spike_enc=[init_cca(in_ch, K) for _ in range(layers)],
        ln_a=[gn_params(in_ch) for _ in range(layers)],
        ln_s=[gn_params(in_ch) for _ in range(layers)],
        # projection Conv1d(4*in_ch, in_ch, K) stored flat as (in_ch, K*4*in_ch)
        proj_w=rand((in_ch, K * 4 * in_ch)), proj_b=rand((in_ch, 1)),
        ln_out=gn_params(in_ch),
    )


def init_tcn(input_dim, output_dim, BN_dim, hidden_dim, layer, stack, K,
             cmca_layers):
    lnw, lnb = gn_params(input_dim)
    blocks = [init_depthconv(BN_dim, hidden_dim, K)
              for _ in range(stack * layer)]
    return dict(
        LN_w=lnw, LN_b=lnb,
        BN_w=rand((BN_dim, input_dim)), BN_b=rand((BN_dim, 1)),
        tcn=blocks,
        fusion=init_mlca(BN_dim, K, cmca_layers),
        out_a=jnp.full((1, 1), 0.25, jnp.float32),
        out_w=rand((output_dim, BN_dim)), out_b=rand((output_dim, 1)),
    )


# ---------------------------------------------------------------------------
if __name__ == "__main__":
    # L is the torch global `input_length`; multiple of 128 so the lane (time)
    # dimension of every block is dense.
    B, L = 2, 128
    input_dim, output_dim = 8, 8
    BN_dim, hidden_dim = 8, 16
    layer, stack, K = 2, 2, 3
    cmca_layers = 2

    params = init_tcn(input_dim, output_dim, BN_dim, hidden_dim,
                      layer, stack, K, cmca_layers)
    # dilated=True: dilation / padding = 2**i within each stack.
    block_cfg = tuple((2 ** i, 2 ** i)
                      for _ in range(stack) for i in range(layer))

    fwd = jax.jit(functools.partial(tcn_forward, K=K, fuse_at=layer,
                                    block_cfg=block_cfg))

    kx, ks = jax.random.split(jax.random.PRNGKey(0))
    x = jax.random.normal(kx, (B, input_dim, L), dtype=jnp.float32)
    spike = jax.random.normal(ks, (B, BN_dim, 100), dtype=jnp.float32)

    out = jax.block_until_ready(fwd(params, x, spike))

    assert out.shape == (B, output_dim, L), out.shape
    assert bool(jnp.all(jnp.isfinite(out)))
    print("KERNEL_OK")
</pallas_src>

<mosaic_0001>
module attributes {stable_mosaic.version = 11 : i64} {
  func.func @_gn_pw_kernel(%arg0: i32, %arg1: memref<1x8x128xf32, #tpu.memory_space<vmem>>, %arg2: memref<8x1xf32, #tpu.memory_space<vmem>>, %arg3: memref<8x1xf32, #tpu.memory_space<vmem>>, %arg4: memref<8x8xf32, #tpu.memory_space<vmem>>, %arg5: memref<8x1xf32, #tpu.memory_space<vmem>>, %arg6: memref<1x8x128xf32, #tpu.memory_space<vmem>>) attributes {dimension_semantics = [#tpu.dimension_semantics<parallel>], iteration_bounds = array<i64: 2>, scalar_prefetch = 0 : i64, scratch_operands = 0 : i64, tpu.core_type = #tpu.core_type<tc>, window_params = [{transform_indices = @transform_0, window_bounds = array<i64: 1, 8, 128>}, {pipeline_mode = #tpu.pipeline_mode<synchronous>, transform_indices = @transform_1, window_bounds = array<i64: 8, 1>}, {pipeline_mode = #tpu.pipeline_mode<synchronous>, transform_indices = @transform_2, window_bounds = array<i64: 8, 1>}, {pipeline_mode = #tpu.pipeline_mode<synchronous>, transform_indices = @transform_3, window_bounds = array<i64: 8, 8>}, {pipeline_mode = #tpu.pipeline_mode<synchronous>, transform_indices = @transform_4, window_bounds = array<i64: 8, 1>}, {transform_indices = @transform_5, window_bounds = array<i64: 1, 8, 128>}]} {
    %c0 = arith.constant 0 : index
    %c0_0 = arith.constant 0 : index
    %c0_1 = arith.constant 0 : index
    %0 = vector.load %arg1[%c0, %c0_0, %c0_1] : memref<1x8x128xf32, #tpu.memory_space<vmem>>, vector<1x8x128xf32>
    %1 = vector.shape_cast %0 : vector<1x8x128xf32> to vector<8x128xf32>
    %c0_2 = arith.constant 0 : index
    %c0_3 = arith.constant 0 : index
    %2 = vector.load %arg2[%c0_2, %c0_3] : memref<8x1xf32, #tpu.memory_space<vmem>>, vector<8x1xf32>
    %c0_4 = arith.constant 0 : index
    %c0_5 = arith.constant 0 : index
    %3 = vector.load %arg3[%c0_4, %c0_5] : memref<8x1xf32, #tpu.memory_space<vmem>>, vector<8x1xf32>
    %4 = vector.shape_cast %1 : vector<8x128xf32> to vector<1x8x128xf32>
    %cst = arith.constant dense<0.000000e+00> : vector<1xf32>
    %5 = vector.multi_reduction <add>, %4, %cst [1, 2] : vector<1x8x128xf32> to vector<1xf32>
    %6 = vector.shape_cast %5 : vector<1xf32> to vector<1x1x1xf32>
    %7 = vector.extract %6[0, 0, 0] : f32 from vector<1x1x1xf32>
    %8 = vector.broadcast %7 : f32 to vector<1x1xf32>
    %cst_6 = arith.constant 1.024000e+03 : f32
    %9 = vector.broadcast %cst_6 : f32 to vector<1x1xf32>
    %10 = arith.divf %8, %9 : vector<1x1xf32>
    %11 = vector.broadcast %10 : vector<1x1xf32> to vector<8x128xf32>
    %12 = arith.subf %1, %11 : vector<8x128xf32>
    %13 = arith.mulf %12, %12 : vector<8x128xf32>
    %14 = vector.shape_cast %13 : vector<8x128xf32> to vector<1x8x128xf32>
    %cst_7 = arith.constant dense<0.000000e+00> : vector<1xf32>
    %15 = vector.multi_reduction <add>, %14, %cst_7 [1, 2] : vector<1x8x128xf32> to vector<1xf32>
    %16 = vector.shape_cast %15 : vector<1xf32> to vector<1x1x1xf32>
    %17 = vector.extract %16[0, 0, 0] : f32 from vector<1x1x1xf32>
    %18 = vector.broadcast %17 : f32 to vector<1x1xf32>
    %cst_8 = arith.constant 1.024000e+03 : f32
    %19 = vector.broadcast %cst_8 : f32 to vector<1x1xf32>
    %20 = arith.divf %18, %19 : vector<1x1xf32>
    %21 = vector.broadcast %10 : vector<1x1xf32> to vector<8x128xf32>
    %22 = arith.subf %1, %21 : vector<8x128xf32>
    %cst_9 = arith.constant 9.99999993E-9 : f32
    %23 = vector.broadcast %cst_9 : f32 to vector<1x1xf32>
    %24 = arith.addf %20, %23 : vector<1x1xf32>
    %25 = math.rsqrt %24 : vector<1x1xf32>
    %26 = vector.broadcast %25 : vector<1x1xf32> to vector<8x128xf32>
    %27 = arith.mulf %22, %26 : vector<8x128xf32>
    %28 = vector.broadcast %2 : vector<8x1xf32> to vector<8x128xf32>
    %29 = arith.mulf %27, %28 : vector<8x128xf32>
    %30 = vector.broadcast %3 : vector<8x1xf32> to vector<8x128xf32>
    %31 = arith.addf %29, %30 : vector<8x128xf32>
    %c0_10 = arith.constant 0 : index
    %c0_11 = arith.constant 0 : index
    %32 = vector.load %arg4[%c0_10, %c0_11] : memref<8x8xf32, #tpu.memory_space<vmem>>, vector<8x8xf32>
    %33 = arith.truncf %32 : vector<8x8xf32> to vector<8x8xbf16>
    %34 = arith.truncf %31 : vector<8x128xf32> to vector<8x128xbf16>
    %cst_12 = arith.constant dense<0.000000e+00> : vector<8x128xf32>
    %35 = tpu.matmul %33, %34, %cst_12 {dimension_numbers = #tpu.dot_dimension_numbers<[1], [0], [0], [1], [0, 0, 1, 1], [], []>} : vector<8x8xbf16>, vector<8x128xbf16>, vector<8x128xf32> -> vector<8x128xf32>
    %c0_13 = arith.constant 0 : index
    %c0_14 = arith.constant 0 : index
    %36 = vector.load %arg5[%c0_13, %c0_14] : memref<8x1xf32, #tpu.memory_space<vmem>>, vector<8x1xf32>
    %37 = vector.broadcast %36 : vector<8x1xf32> to vector<8x128xf32>
    %38 = arith.addf %35, %37 : vector<8x128xf32>
    %c0_15 = arith.constant 0 : index
    %c0_16 = arith.constant 0 : index
    %c0_17 = arith.constant 0 : index
    %39 = vector.load %arg6[%c0_15, %c0_16, %c0_17] : memref<1x8x128xf32, #tpu.memory_space<vmem>>, vector<1x8x128xf32>
    %40 = vector.shape_cast %39 : vector<1x8x128xf32> to vector<8x128xf32>
    %41 = vector.shape_cast %38 : vector<8x128xf32> to vector<1x8x128xf32>
    tpu.vector_store %arg6[%c0_15, %c0_16, %c0_17], %41 {strides = array<i32>} : memref<1x8x128xf32, #tpu.memory_space<vmem>>, vector<1x8x128xf32>,
    return
  }
  func.func @transform_0(%arg0: i32) -> (i32, i32, i32) {
    %c0_i32 = arith.constant 0 : i32
    %c0_i32_0 = arith.constant 0 : i32
    %c0_i32_1 = arith.constant 0 : i32
    return %arg0, %c0_i32, %c0_i32_0 : i32, i32, i32
  }
  func.func @transform_1(%arg0: i32) -> (i32, i32) {
    %c0_i32 = arith.constant 0 : i32
    %c0_i32_0 = arith.constant 0 : i32
    %c0_i32_1 = arith.constant 0 : i32
    return %c0_i32, %c0_i32_0 : i32, i32
  }
  func.func @transform_2(%arg0: i32) -> (i32, i32) {
    %c0_i32 = arith.constant 0 : i32
    %c0_i32_0 = arith.constant 0 : i32
    %c0_i32_1 = arith.constant 0 : i32
    return %c0_i32, %c0_i32_0 : i32, i32
  }
  func.func @transform_3(%arg0: i32) -> (i32, i32) {
    %c0_i32 = arith.constant 0 : i32
    %c0_i32_0 = arith.constant 0 : i32
    %c0_i32_1 = arith.constant 0 : i32
    return %c0_i32, %c0_i32_0 : i32, i32
  }
  func.func @transform_4(%arg0: i32) -> (i32, i32) {
    %c0_i32 = arith.constant 0 : i32
    %c0_i32_0 = arith.constant 0 : i32
    %c0_i32_1 = arith.constant 0 : i32
    return %c0_i32, %c0_i32_0 : i32, i32
  }
  func.func @transform_5(%arg0: i32) -> (i32, i32, i32) {
    %c0_i32 = arith.constant 0 : i32
    %c0_i32_0 = arith.constant 0 : i32
    %c0_i32_1 = arith.constant 0 : i32
    return %arg0, %c0_i32, %c0_i32_0 : i32, i32, i32
  }
}

module attributes {stable_mosaic.version = 11 : i64} {
  func.func @_depthconv_trunk_kernel(%arg0: i32, %arg1: memref<1x8x128xf32, #tpu.memory_space<vmem>>, %arg2: memref<1x8x128xf32, #tpu.memory_space<vmem>>, %arg3: memref<16x8xf32, #tpu.memory_space<vmem>>, %arg4: memref<16x1xf32, #tpu.memory_space<vmem>>, %arg5: memref<1x1xf32, #tpu.memory_space<vmem>>, %arg6: memref<16x1xf32, #tpu.memory_space<vmem>>, %arg7: memref<16x1xf32, #tpu.memory_space<vmem>>, %arg8: memref<3x16x1xf32, #tpu.memory_space<vmem>>, %arg9: memref<16x1xf32, #tpu.memory_space<vmem>>, %arg10: memref<1x1xf32, #tpu.memory_space<vmem>>, %arg11: memref<16x1xf32, #tpu.memory_space<vmem>>, %arg12: memref<16x1xf32, #tpu.memory_space<vmem>>, %arg13: memref<8x16xf32, #tpu.memory_space<vmem>>, %arg14: memref<8x1xf32, #tpu.memory_space<vmem>>, %arg15: memref<8x16xf32, #tpu.memory_space<vmem>>, %arg16: memref<8x1xf32, #tpu.memory_space<vmem>>, %arg17: memref<1x8x128xf32, #tpu.memory_space<vmem>>, %arg18: memref<1x8x128xf32, #tpu.memory_space<vmem>>, %arg19: memref<16x132xf32, #tpu.memory_space<vmem>>) attributes {dimension_semantics = [#tpu.dimension_semantics<parallel>], iteration_bounds = array<i64: 2>, scalar_prefetch = 0 : i64, scratch_operands = 1 : i64, tpu.core_type = #tpu.core_type<tc>, window_params = [{transform_indices = @transform_0, window_bounds = array<i64: 1, 8, 128>}, {transform_indices = @transform_1, window_bounds = array<i64: 1, 8, 128>}, {pipeline_mode = #tpu.pipeline_mode<synchronous>, transform_indices = @transform_2, window_bounds = array<i64: 16, 8>}, {pipeline_mode = #tpu.pipeline_mode<synchronous>, transform_indices = @transform_3, window_bounds = array<i64: 16, 1>}, {pipeline_mode = #tpu.pipeline_mode<synchronous>, transform_indices = @transform_4, window_bounds = array<i64: 1, 1>}, {pipeline_mode = #tpu.pipeline_mode<synchronous>, transform_indices = @transform_5, window_bounds = array<i64: 16, 1>}, {pipeline_mode = #tpu.pipeline_mode<synchronous>, transform_indices = @transform_6, window_bounds = array<i64: 16, 1>}, {pipeline_mode = #tpu.pipeline_mode<synchronous>, transform_indices = @transform_7, window_bounds = array<i64: 3, 16, 1>}, {pipeline_mode = #tpu.pipeline_mode<synchronous>, transform_indices = @transform_8, window_bounds = array<i64: 16, 1>}, {pipeline_mode = #tpu.pipeline_mode<synchronous>, transform_indices = @transform_9, window_bounds = array<i64: 1, 1>}, {pipeline_mode = #tpu.pipeline_mode<synchronous>, transform_indices = @transform_10, window_bounds = array<i64: 16, 1>}, {pipeline_mode = #tpu.pipeline_mode<synchronous>, transform_indices = @transform_11, window_bounds = array<i64: 16, 1>}, {pipeline_mode = #tpu.pipeline_mode<synchronous>, transform_indices = @transform_12, window_bounds = array<i64: 8, 16>}, {pipeline_mode = #tpu.pipeline_mode<synchronous>, transform_indices = @transform_13, window_bounds = array<i64: 8, 1>}, {pipeline_mode = #tpu.pipeline_mode<synchronous>, transform_indices = @transform_14, window_bounds = array<i64: 8, 16>}, {pipeline_mode = #tpu.pipeline_mode<synchronous>, transform_indices = @transform_15, window_bounds = array<i64: 8, 1>}, {transform_indices = @transform_16, window_bounds = array<i64: 1, 8, 128>}, {transform_indices = @transform_17, window_bounds = array<i64: 1, 8, 128>}]} {
    %c0 = arith.constant 0 : index
    %c0_0 = arith.constant 0 : index
    %c0_1 = arith.constant 0 : index
    %0 = vector.load %arg1[%c0, %c0_0, %c0_1] : memref<1x8x128xf32, #tpu.memory_space<vmem>>, vector<1x8x128xf32>
    %1 = vector.shape_cast %0 : vector<1x8x128xf32> to vector<8x128xf32>
    %c0_2 = arith.constant 0 : index
    %c0_3 = arith.constant 0 : index
    %2 = vector.load %arg3[%c0_2, %c0_3] : memref<16x8xf32, #tpu.memory_space<vmem>>, vector<16x8xf32>
    %3 = arith.truncf %2 : vector<16x8xf32> to vector<16x8xbf16>
    %4 = arith.truncf %1 : vector<8x128xf32> to vector<8x128xbf16>
    %cst = arith.constant dense<0.000000e+00> : vector<16x128xf32>
    %5 = tpu.matmul %3, %4, %cst {dimension_numbers = #tpu.dot_dimension_numbers<[1], [0], [0], [1], [0, 0, 1, 1], [], []>} : vector<16x8xbf16>, vector<8x128xbf16>, vector<16x128xf32> -> vector<16x128xf32>
    %c0_4 = arith.constant 0 : index
    %c0_5 = arith.constant 0 : index
    %6 = vector.load %arg4[%c0_4, %c0_5] : memref<16x1xf32, #tpu.memory_space<vmem>>, vector<16x1xf32>
    %7 = vector.broadcast %6 : vector<16x1xf32> to vector<16x128xf32>
    %8 = arith.addf %5, %7 : vector<16x128xf32>
    %c0_6 = arith.constant 0 : index
    %c0_7 = arith.constant 0 : index
    %9 = vector.load %arg5[%c0_6, %c0_7] : memref<1x1xf32, #tpu.memory_space<vmem>>, vector<1x1xf32>
    %cst_8 = arith.constant 0.000000e+00 : f32
    %10 = vector.broadcast %cst_8 : f32 to vector<16x128xf32>
    %11 = arith.cmpf oge, %8, %10 : vector<16x128xf32>
    %12 = vector.broadcast %9 : vector<1x1xf32> to vector<16x128xf32>
    %13 = arith.mulf %12, %8 : vector<16x128xf32>
    %14 = arith.select %11, %8, %13 : vector<16x128xi1>, vector<16x128xf32>
    %cst_9 = arith.constant 0.000000e+00 : f32
    %15 = vector.broadcast %cst_9 : f32 to vector<16x132xf32>
    %c0_10 = arith.constant 0 : index
    %c0_11 = arith.constant 0 : index
    %16 = vector.load %arg19[%c0_10, %c0_11] : memref<16x132xf32, #tpu.memory_space<vmem>>, vector<16x132xf32>
    tpu.vector_store %arg19[%c0_10, %c0_11], %15 {strides = array<i32>} : memref<16x132xf32, #tpu.memory_space<vmem>>, vector<16x132xf32>,
    %c0_12 = arith.constant 0 : index
    %c0_13 = arith.constant 0 : index
    %17 = vector.load %arg6[%c0_12, %c0_13] : memref<16x1xf32, #tpu.memory_space<vmem>>, vector<16x1xf32>
    %c0_14 = arith.constant 0 : index
    %c0_15 = arith.constant 0 : index
    %18 = vector.load %arg7[%c0_14, %c0_15] : memref<16x1xf32, #tpu.memory_space<vmem>>, vector<16x1xf32>
    %19 = vector.shape_cast %14 : vector<16x128xf32> to vector<1x16x128xf32>
    %cst_16 = arith.constant dense<0.000000e+00> : vector<1xf32>
    %20 = vector.multi_reduction <add>, %19, %cst_16 [1, 2] : vector<1x16x128xf32> to vector<1xf32>
    %21 = vector.shape_cast %20 : vector<1xf32> to vector<1x1x1xf32>
    %22 = vector.extract %21[0, 0, 0] : f32 from vector<1x1x1xf32>
    %23 = vector.broadcast %22 : f32 to vector<1x1xf32>
    %cst_17 = arith.constant 2.048000e+03 : f32
    %24 = vector.broadcast %cst_17 : f32 to vector<1x1xf32>
    %25 = arith.divf %23, %24 : vector<1x1xf32>
    %26 = vector.broadcast %25 : vector<1x1xf32> to vector<16x128xf32>
    %27 = arith.subf %14, %26 : vector<16x128xf32>
    %28 = arith.mulf %27, %27 : vector<16x128xf32>
    %29 = vector.shape_cast %28 : vector<16x128xf32> to vector<1x16x128xf32>
    %cst_18 = arith.constant dense<0.000000e+00> : vector<1xf32>
    %30 = vector.multi_reduction <add>, %29, %cst_18 [1, 2] : vector<1x16x128xf32> to vector<1xf32>
    %31 = vector.shape_cast %30 : vector<1xf32> to vector<1x1x1xf32>
    %32 = vector.extract %31[0, 0, 0] : f32 from vector<1x1x1xf32>
    %33 = vector.broadcast %32 : f32 to vector<1x1xf32>
    %cst_19 = arith.constant 2.048000e+03 : f32
    %34 = vector.broadcast %cst_19 : f32 to vector<1x1xf32>
    %35 = arith.divf %33, %34 : vector<1x1xf32>
    %36 = vector.broadcast %25 : vector<1x1xf32> to vector<16x128xf32>
    %37 = arith.subf %14, %36 : vector<16x128xf32>
    %cst_20 = arith.constant 9.99999993E-9 : f32
    %38 = vector.broadcast %cst_20 : f32 to vector<1x1xf32>
    %39 = arith.addf %35, %38 : vector<1x1xf32>
    %40 = math.rsqrt %39 : vector<1x1xf32>
    %41 = vector.broadcast %40 : vector<1x1xf32> to vector<16x128xf32>
    %42 = arith.mulf %37, %41 : vector<16x128xf32>
    %43 = vector.broadcast %17 : vector<16x1xf32> to vector<16x128xf32>
    %44 = arith.mulf %42, %43 : vector<16x128xf32>
    %45 = vector.broadcast %18 : vector<16x1xf32> to vector<16x128xf32>
    %46 = arith.addf %44, %45 : vector<16x128xf32>
    %c0_21 = arith.constant 0 : index
    %c2 = arith.constant 2 : index
    %47 = vector.load %arg19[%c0_21, %c2] : memref<16x132xf32, #tpu.memory_space<vmem>>, vector<16x128xf32>
    tpu.vector_store %arg19[%c0_21, %c2], %46 {strides = array<i32>} : memref<16x132xf32, #tpu.memory_space<vmem>>, vector<16x128xf32>,
    %cst_22 = arith.constant 0.000000e+00 : f32
    %48 = vector.broadcast %cst_22 : f32 to vector<16x128xf32>
    %c0_23 = arith.constant 0 : index
    %c0_24 = arith.constant 0 : index
    %49 = vector.load %arg9[%c0_23, %c0_24] : memref<16x1xf32, #tpu.memory_space<vmem>>, vector<16x1xf32>
    %50 = vector.broadcast %49 : vector<16x1xf32> to vector<16x128xf32>
    %51 = arith.addf %48, %50 : vector<16x128xf32>
    %c0_25 = arith.constant 0 : index
    %c0_26 = arith.constant 0 : index
    %c0_27 = arith.constant 0 : index
    %52 = vector.load %arg8[%c0_25, %c0_26, %c0_27] : memref<3x16x1xf32, #tpu.memory_space<vmem>>, vector<1x16x1xf32>
    %53 = vector.shape_cast %52 : vector<1x16x1xf32> to vector<16x1xf32>
    %c0_28 = arith.constant 0 : index
    %c0_29 = arith.constant 0 : index
    %54 = vector.load %arg19[%c0_28, %c0_29] : memref<16x132xf32, #tpu.memory_space<vmem>>, vector<16x128xf32>
    %55 = vector.broadcast %53 : vector<16x1xf32> to vector<16x128xf32>
    %56 = arith.mulf %55, %54 : vector<16x128xf32>
    %57 = arith.addf %51, %56 : vector<16x128xf32>
    %c1 = arith.constant 1 : index
    %c0_30 = arith.constant 0 : index
    %c0_31 = arith.constant 0 : index
    %58 = vector.load %arg8[%c1, %c0_30, %c0_31] : memref<3x16x1xf32, #tpu.memory_space<vmem>>, vector<1x16x1xf32>
    %59 = vector.shape_cast %58 : vector<1x16x1xf32> to vector<16x1xf32>
    %c0_32 = arith.constant 0 : index
    %c2_33 = arith.constant 2 : index
    %60 = vector.load %arg19[%c0_32, %c2_33] : memref<16x132xf32, #tpu.memory_space<vmem>>, vector<16x128xf32>
    %61 = vector.broadcast %59 : vector<16x1xf32> to vector<16x128xf32>
    %62 = arith.mulf %61, %60 : vector<16x128xf32>
    %63 = arith.addf %57, %62 : vector<16x128xf32>
    %c2_34 = arith.constant 2 : index
    %c0_35 = arith.constant 0 : index
    %c0_36 = arith.constant 0 : index
    %64 = vector.load %arg8[%c2_34, %c0_35, %c0_36] : memref<3x16x1xf32, #tpu.memory_space<vmem>>, vector<1x16x1xf32>
    %65 = vector.shape_cast %64 : vector<1x16x1xf32> to vector<16x1xf32>
    %c0_37 = arith.constant 0 : index
    %c4 = arith.constant 4 : index
    %66 = vector.load %arg19[%c0_37, %c4] : memref<16x132xf32, #tpu.memory_space<vmem>>, vector<16x128xf32>
    %67 = vector.broadcast %65 : vector<16x1xf32> to vector<16x128xf32>
    %68 = arith.mulf %67, %66 : vector<16x128xf32>
    %69 = arith.addf %63, %68 : vector<16x128xf32>
    %c0_38 = arith.constant 0 : index
    %c0_39 = arith.constant 0 : index
    %70 = vector.load %arg10[%c0_38, %c0_39] : memref<1x1xf32, #tpu.memory_space<vmem>>, vector<1x1xf32>
    %cst_40 = arith.constant 0.000000e+00 : f32
    %71 = vector.broadcast %cst_40 : f32 to vector<16x128xf32>
    %72 = arith.cmpf oge, %69, %71 : vector<16x128xf32>
    %73 = vector.broadcast %70 : vector<1x1xf32> to vector<16x128xf32>
    %74 = arith.mulf %73, %69 : vector<16x128xf32>
    %75 = arith.select %72, %69, %74 : vector<16x128xi1>, vector<16x128xf32>
    %c0_41 = arith.constant 0 : index
    %c0_42 = arith.constant 0 : index
    %76 = vector.load %arg11[%c0_41, %c0_42] : memref<16x1xf32, #tpu.memory_space<vmem>>, vector<16x1xf32>
    %c0_43 = arith.constant 0 : index
    %c0_44 = arith.constant 0 : index
    %77 = vector.load %arg12[%c0_43, %c0_44] : memref<16x1xf32, #tpu.memory_space<vmem>>, vector<16x1xf32>
    %78 = vector.shape_cast %75 : vector<16x128xf32> to vector<1x16x128xf32>
    %cst_45 = arith.constant dense<0.000000e+00> : vector<1xf32>
    %79 = vector.multi_reduction <add>, %78, %cst_45 [1, 2] : vector<1x16x128xf32> to vector<1xf32>
    %80 = vector.shape_cast %79 : vector<1xf32> to vector<1x1x1xf32>
    %81 = vector.extract %80[0, 0, 0] : f32 from vector<1x1x1xf32>
    %82 = vector.broadcast %81 : f32 to vector<1x1xf32>
    %cst_46 = arith.constant 2.048000e+03 : f32
    %83 = vector.broadcast %cst_46 : f32 to vector<1x1xf32>
    %84 = arith.divf %82, %83 : vector<1x1xf32>
    %85 = vector.broadcast %84 : vector<1x1xf32> to vector<16x128xf32>
    %86 = arith.subf %75, %85 : vector<16x128xf32>
    %87 = arith.mulf %86, %86 : vector<16x128xf32>
    %88 = vector.shape_cast %87 : vector<16x128xf32> to vector<1x16x128xf32>
    %cst_47 = arith.constant dense<0.000000e+00> : vector<1xf32>
    %89 = vector.multi_reduction <add>, %88, %cst_47 [1, 2] : vector<1x16x128xf32> to vector<1xf32>
    %90 = vector.shape_cast %89 : vector<1xf32> to vector<1x1x1xf32>
    %91 = vector.extract %90[0, 0, 0] : f32 from vector<1x1x1xf32>
    %92 = vector.broadcast %91 : f32 to vector<1x1xf32>
    %cst_48 = arith.constant 2.048000e+03 : f32
    %93 = vector.broadcast %cst_48 : f32 to vector<1x1xf32>
    %94 = arith.divf %92, %93 : vector<1x1xf32>
    %95 = vector.broadcast %84 : vector<1x1xf32> to vector<16x128xf32>
    %96 = arith.subf %75, %95 : vector<16x128xf32>
    %cst_49 = arith.constant 9.99999993E-9 : f32
    %97 = vector.broadcast %cst_49 : f32 to vector<1x1xf32>
    %98 = arith.addf %94, %97 : vector<1x1xf32>
    %99 = math.rsqrt %98 : vector<1x1xf32>
    %100 = vector.broadcast %99 : vector<1x1xf32> to vector<16x128xf32>
    %101 = arith.mulf %96, %100 : vector<16x128xf32>
    %102 = vector.broadcast %76 : vector<16x1xf32> to vector<16x128xf32>
    %103 = arith.mulf %101, %102 : vector<16x128xf32>
    %104 = vector.broadcast %77 : vector<16x1xf32> to vector<16x128xf32>
    %105 = arith.addf %103, %104 : vector<16x128xf32>
    %c0_50 = arith.constant 0 : index
    %c0_51 = arith.constant 0 : index
    %106 = vector.load %arg13[%c0_50, %c0_51] : memref<8x16xf32, #tpu.memory_space<vmem>>, vector<8x16xf32>
    %107 = arith.truncf %106 : vector<8x16xf32> to vector<8x16xbf16>
    %108 = arith.truncf %105 : vector<16x128xf32> to vector<16x128xbf16>
    %cst_52 = arith.constant dense<0.000000e+00> : vector<8x128xf32>
    %109 = tpu.matmul %107, %108, %cst_52 {dimension_numbers = #tpu.dot_dimension_numbers<[1], [0], [0], [1], [0, 0, 1, 1], [], []>} : vector<8x16xbf16>, vector<16x128xbf16>, vector<8x128xf32> -> vector<8x128xf32>
    %110 = arith.addf %1, %109 : vector<8x128xf32>
    %c0_53 = arith.constant 0 : index
    %c0_54 = arith.constant 0 : index
    %111 = vector.load %arg14[%c0_53, %c0_54] : memref<8x1xf32, #tpu.memory_space<vmem>>, vector<8x1xf32>
    %112 = vector.broadcast %111 : vector<8x1xf32> to vector<8x128xf32>
    %113 = arith.addf %110, %112 : vector<8x128xf32>
    %c0_55 = arith.constant 0 : index
    %c0_56 = arith.constant 0 : index
    %c0_57 = arith.constant 0 : index
    %114 = vector.load %arg17[%c0_55, %c0_56, %c0_57] : memref<1x8x128xf32, #tpu.memory_space<vmem>>, vector<1x8x128xf32>
    %115 = vector.shape_cast %114 : vector<1x8x128xf32> to vector<8x128xf32>
    %116 = vector.shape_cast %113 : vector<8x128xf32> to vector<1x8x128xf32>
    tpu.vector_store %arg17[%c0_55, %c0_56, %c0_57], %116 {strides = array<i32>} : memref<1x8x128xf32, #tpu.memory_space<vmem>>, vector<1x8x128xf32>,
    %c0_58 = arith.constant 0 : index
    %c0_59 = arith.constant 0 : index
    %c0_60 = arith.constant 0 : index
    %117 = vector.load %arg2[%c0_58, %c0_59, %c0_60] : memref<1x8x128xf32, #tpu.memory_space<vmem>>, vector<1x8x128xf32>
    %118 = vector.shape_cast %117 : vector<1x8x128xf32> to vector<8x128xf32>
    %c0_61 = arith.constant 0 : index
    %c0_62 = arith.constant 0 : index
    %119 = vector.load %arg15[%c0_61, %c0_62] : memref<8x16xf32, #tpu.memory_space<vmem>>, vector<8x16xf32>
    %120 = arith.truncf %119 : vector<8x16xf32> to vector<8x16xbf16>
    %121 = arith.truncf %105 : vector<16x128xf32> to vector<16x128xbf16>
    %cst_63 = arith.constant dense<0.000000e+00> : vector<8x128xf32>
    %122 = tpu.matmul %120, %121, %cst_63 {dimension_numbers = #tpu.dot_dimension_numbers<[1], [0], [0], [1], [0, 0, 1, 1], [], []>} : vector<8x16xbf16>, vector<16x128xbf16>, vector<8x128xf32> -> vector<8x128xf32>
    %123 = arith.addf %118, %122 : vector<8x128xf32>
    %c0_64 = arith.constant 0 : index
    %c0_65 = arith.constant 0 : index
    %124 = vector.load %arg16[%c0_64, %c0_65] : memref<8x1xf32, #tpu.memory_space<vmem>>, vector<8x1xf32>
    %125 = vector.broadcast %124 : vector<8x1xf32> to vector<8x128xf32>
    %126 = arith.addf %123, %125 : vector<8x128xf32>
    %c0_66 = arith.constant 0 : index
    %c0_67 = arith.constant 0 : index
    %c0_68 = arith.constant 0 : index
    %127 = vector.load %arg18[%c0_66, %c0_67, %c0_68] : memref<1x8x128xf32, #tpu.memory_space<vmem>>, vector<1x8x128xf32>
    %128 = vector.shape_cast %127 : vector<1x8x128xf32> to vector<8x128xf32>
    %129 = vector.shape_cast %126 : vector<8x128xf32> to vector<1x8x128xf32>
    tpu.vector_store %arg18[%c0_66, %c0_67, %c0_68], %129 {strides = array<i32>} : memref<1x8x128xf32, #tpu.memory_space<vmem>>, vector<1x8x128xf32>,
    return
  }
  func.func @transform_0(%arg0: i32) -> (i32, i32, i32) {
    %c0_i32 = arith.constant 0 : i32
    %c0_i32_0 = arith.constant 0 : i32
    %c0_i32_1 = arith.constant 0 : i32
    return %arg0, %c0_i32, %c0_i32_0 : i32, i32, i32
  }
  func.func @transform_1(%arg0: i32) -> (i32, i32, i32) {
    %c0_i32 = arith.constant 0 : i32
    %c0_i32_0 = arith.constant 0 : i32
    %c0_i32_1 = arith.constant 0 : i32
    return %arg0, %c0_i32, %c0_i32_0 : i32, i32, i32
  }
  func.func @transform_2(%arg0: i32) -> (i32, i32) {
    %c0_i32 = arith.constant 0 : i32
    %c0_i32_0 = arith.constant 0 : i32
    %c0_i32_1 = arith.constant 0 : i32
    return %c0_i32, %c0_i32_0 : i32, i32
  }
  func.func @transform_3(%arg0: i32) -> (i32, i32) {
    %c0_i32 = arith.constant 0 : i32
    %c0_i32_0 = arith.constant 0 : i32
    %c0_i32_1 = arith.constant 0 : i32
    return %c0_i32, %c0_i32_0 : i32, i32
  }
  func.func @transform_4(%arg0: i32) -> (i32, i32) {
    %c0_i32 = arith.constant 0 : i32
    %c0_i32_0 = arith.constant 0 : i32
    %c0_i32_1 = arith.constant 0 : i32
    return %c0_i32, %c0_i32_0 : i32, i32
  }
  func.func @transform_5(%arg0: i32) -> (i32, i32) {
    %c0_i32 = arith.constant 0 : i32
    %c0_i32_0 = arith.constant 0 : i32
    %c0_i32_1 = arith.constant 0 : i32
    return %c0_i32, %c0_i32_0 : i32, i32
  }
  func.func @transform_6(%arg0: i32) -> (i32, i32) {
    %c0_i32 = arith.constant 0 : i32
    %c0_i32_0 = arith.constant 0 : i32
    %c0_i32_1 = arith.constant 0 : i32
    return %c0_i32, %c0_i32_0 : i32, i32
  }
  func.func @transform_7(%arg0: i32) -> (i32, i32, i32) {
    %c0_i32 = arith.constant 0 : i32
    %c0_i32_0 = arith.constant 0 : i32
    %c0_i32_1 = arith.constant 0 : i32
    %c0_i32_2 = arith.constant 0 : i32
    return %c0_i32, %c0_i32_0, %c0_i32_1 : i32, i32, i32
  }
  func.func @transform_8(%arg0: i32) -> (i32, i32) {
    %c0_i32 = arith.constant 0 : i32
    %c0_i32_0 = arith.constant 0 : i32
    %c0_i32_1 = arith.constant 0 : i32
    return %c0_i32, %c0_i32_0 : i32, i32
  }
  func.func @transform_9(%arg0: i32) -> (i32, i32) {
    %c0_i32 = arith.constant 0 : i32
    %c0_i32_0 = arith.constant 0 : i32
    %c0_i32_1 = arith.constant 0 : i32
    return %c0_i32, %c0_i32_0 : i32, i32
  }
  func.func @transform_10(%arg0: i32) -> (i32, i32) {
    %c0_i32 = arith.constant 0 : i32
    %c0_i32_0 = arith.constant 0 : i32
    %c0_i32_1 = arith.constant 0 : i32
    return %c0_i32, %c0_i32_0 : i32, i32
  }
  func.func @transform_11(%arg0: i32) -> (i32, i32) {
    %c0_i32 = arith.constant 0 : i32
    %c0_i32_0 = arith.constant 0 : i32
    %c0_i32_1 = arith.constant 0 : i32
    return %c0_i32, %c0_i32_0 : i32, i32
  }
  func.func @transform_12(%arg0: i32) -> (i32, i32) {
    %c0_i32 = arith.constant 0 : i32
    %c0_i32_0 = arith.constant 0 : i32
    %c0_i32_1 = arith.constant 0 : i32
    return %c0_i32, %c0_i32_0 : i32, i32
  }
  func.func @transform_13(%arg0: i32) -> (i32, i32) {
    %c0_i32 = arith.constant 0 : i32
    %c0_i32_0 = arith.constant 0 : i32
    %c0_i32_1 = arith.constant 0 : i32
    return %c0_i32, %c0_i32_0 : i32, i32
  }
  func.func @transform_14(%arg0: i32) -> (i32, i32) {
    %c0_i32 = arith.constant 0 : i32
    %c0_i32_0 = arith.constant 0 : i32
    %c0_i32_1 = arith.constant 0 : i32
    return %c0_i32, %c0_i32_0 : i32, i32
  }
  func.func @transform_15(%arg0: i32) -> (i32, i32) {
    %c0_i32 = arith.constant 0 : i32
    %c0_i32_0 = arith.constant 0 : i32
    %c0_i32_1 = arith.constant 0 : i32
    return %c0_i32, %c0_i32_0 : i32, i32
  }
  func.func @transform_16(%arg0: i32) -> (i32, i32, i32) {
    %c0_i32 = arith.constant 0 : i32
    %c0_i32_0 = arith.constant 0 : i32
    %c0_i32_1 = arith.constant 0 : i32
    return %arg0, %c0_i32, %c0_i32_0 : i32, i32, i32
  }
  func.func @transform_17(%arg0: i32) -> (i32, i32, i32) {
    %c0_i32 = arith.constant 0 : i32
    %c0_i32_0 = arith.constant 0 : i32
    %c0_i32_1 = arith.constant 0 : i32
    return %arg0, %c0_i32, %c0_i32_0 : i32, i32, i32
  }
}

module attributes {stable_mosaic.version = 11 : i64} {
  func.func @_depthconv_trunk_kernel(%arg0: i32, %arg1: memref<1x8x128xf32, #tpu.memory_space<vmem>>, %arg2: memref<1x8x128xf32, #tpu.memory_space<vmem>>, %arg3: memref<16x8xf32, #tpu.memory_space<vmem>>, %arg4: memref<16x1xf32, #tpu.memory_space<vmem>>, %arg5: memref<1x1xf32, #tpu.memory_space<vmem>>, %arg6: memref<16x1xf32, #tpu.memory_space<vmem>>, %arg7: memref<16x1xf32, #tpu.memory_space<vmem>>, %arg8: memref<3x16x1xf32, #tpu.memory_space<vmem>>, %arg9: memref<16x1xf32, #tpu.memory_space<vmem>>, %arg10: memref<1x1xf32, #tpu.memory_space<vmem>>, %arg11: memref<16x1xf32, #tpu.memory_space<vmem>>, %arg12: memref<16x1xf32, #tpu.memory_space<vmem>>, %arg13: memref<8x16xf32, #tpu.memory_space<vmem>>, %arg14: memref<8x1xf32, #tpu.memory_space<vmem>>, %arg15: memref<8x16xf32, #tpu.memory_space<vmem>>, %arg16: memref<8x1xf32, #tpu.memory_space<vmem>>, %arg17: memref<1x8x128xf32, #tpu.memory_space<vmem>>, %arg18: memref<1x8x128xf32, #tpu.memory_space<vmem>>, %arg19: memref<16x130xf32, #tpu.memory_space<vmem>>) attributes {dimension_semantics = [#tpu.dimension_semantics<parallel>], iteration_bounds = array<i64: 2>, scalar_prefetch = 0 : i64, scratch_operands = 1 : i64, tpu.core_type = #tpu.core_type<tc>, window_params = [{transform_indices = @transform_0, window_bounds = array<i64: 1, 8, 128>}, {transform_indices = @transform_1, window_bounds = array<i64: 1, 8, 128>}, {pipeline_mode = #tpu.pipeline_mode<synchronous>, transform_indices = @transform_2, window_bounds = array<i64: 16, 8>}, {pipeline_mode = #tpu.pipeline_mode<synchronous>, transform_indices = @transform_3, window_bounds = array<i64: 16, 1>}, {pipeline_mode = #tpu.pipeline_mode<synchronous>, transform_indices = @transform_4, window_bounds = array<i64: 1, 1>}, {pipeline_mode = #tpu.pipeline_mode<synchronous>, transform_indices = @transform_5, window_bounds = array<i64: 16, 1>}, {pipeline_mode = #tpu.pipeline_mode<synchronous>, transform_indices = @transform_6, window_bounds = array<i64: 16, 1>}, {pipeline_mode = #tpu.pipeline_mode<synchronous>, transform_indices = @transform_7, window_bounds = array<i64: 3, 16, 1>}, {pipeline_mode = #tpu.pipeline_mode<synchronous>, transform_indices = @transform_8, window_bounds = array<i64: 16, 1>}, {pipeline_mode = #tpu.pipeline_mode<synchronous>, transform_indices = @transform_9, window_bounds = array<i64: 1, 1>}, {pipeline_mode = #tpu.pipeline_mode<synchronous>, transform_indices = @transform_10, window_bounds = array<i64: 16, 1>}, {pipeline_mode = #tpu.pipeline_mode<synchronous>, transform_indices = @transform_11, window_bounds = array<i64: 16, 1>}, {pipeline_mode = #tpu.pipeline_mode<synchronous>, transform_indices = @transform_12, window_bounds = array<i64: 8, 16>}, {pipeline_mode = #tpu.pipeline_mode<synchronous>, transform_indices = @transform_13, window_bounds = array<i64: 8, 1>}, {pipeline_mode = #tpu.pipeline_mode<synchronous>, transform_indices = @transform_14, window_bounds = array<i64: 8, 16>}, {pipeline_mode = #tpu.pipeline_mode<synchronous>, transform_indices = @transform_15, window_bounds = array<i64: 8, 1>}, {transform_indices = @transform_16, window_bounds = array<i64: 1, 8, 128>}, {transform_indices = @transform_17, window_bounds = array<i64: 1, 8, 128>}]} {
    %c0 = arith.constant 0 : index
    %c0_0 = arith.constant 0 : index
    %c0_1 = arith.constant 0 : index
    %0 = vector.load %arg1[%c0, %c0_0, %c0_1] : memref<1x8x128xf32, #tpu.memory_space<vmem>>, vector<1x8x128xf32>
    %1 = vector.shape_cast %0 : vector<1x8x128xf32> to vector<8x128xf32>
    %c0_2 = arith.constant 0 : index
    %c0_3 = arith.constant 0 : index
    %2 = vector.load %arg3[%c0_2, %c0_3] : memref<16x8xf32, #tpu.memory_space<vmem>>, vector<16x8xf32>
    %3 = arith.truncf %2 : vector<16x8xf32> to vector<16x8xbf16>
    %4 = arith.truncf %1 : vector<8x128xf32> to vector<8x128xbf16>
    %cst = arith.constant dense<0.000000e+00> : vector<16x128xf32>
    %5 = tpu.matmul %3, %4, %cst {dimension_numbers = #tpu.dot_dimension_numbers<[1], [0], [0], [1], [0, 0, 1, 1], [], []>} : vector<16x8xbf16>, vector<8x128xbf16>, vector<16x128xf32> -> vector<16x128xf32>
    %c0_4 = arith.constant 0 : index
    %c0_5 = arith.constant 0 : index
    %6 = vector.load %arg4[%c0_4, %c0_5] : memref<16x1xf32, #tpu.memory_space<vmem>>, vector<16x1xf32>
    %7 = vector.broadcast %6 : vector<16x1xf32> to vector<16x128xf32>
    %8 = arith.addf %5, %7 : vector<16x128xf32>
    %c0_6 = arith.constant 0 : index
    %c0_7 = arith.constant 0 : index
    %9 = vector.load %arg5[%c0_6, %c0_7] : memref<1x1xf32, #tpu.memory_space<vmem>>, vector<1x1xf32>
    %cst_8 = arith.constant 0.000000e+00 : f32
    %10 = vector.broadcast %cst_8 : f32 to vector<16x128xf32>
    %11 = arith.cmpf oge, %8, %10 : vector<16x128xf32>
    %12 = vector.broadcast %9 : vector<1x1xf32> to vector<16x128xf32>
    %13 = arith.mulf %12, %8 : vector<16x128xf32>
    %14 = arith.select %11, %8, %13 : vector<16x128xi1>, vector<16x128xf32>
    %cst_9 = arith.constant 0.000000e+00 : f32
    %15 = vector.broadcast %cst_9 : f32 to vector<16x130xf32>
    %c0_10 = arith.constant 0 : index
    %c0_11 = arith.constant 0 : index
    %16 = vector.load %arg19[%c0_10, %c0_11] : memref<16x130xf32, #tpu.memory_space<vmem>>, vector<16x130xf32>
    tpu.vector_store %arg19[%c0_10, %c0_11], %15 {strides = array<i32>} : memref<16x130xf32, #tpu.memory_space<vmem>>, vector<16x130xf32>,
    %c0_12 = arith.constant 0 : index
    %c0_13 = arith.constant 0 : index
    %17 = vector.load %arg6[%c0_12, %c0_13] : memref<16x1xf32, #tpu.memory_space<vmem>>, vector<16x1xf32>
    %c0_14 = arith.constant 0 : index
    %c0_15 = arith.constant 0 : index
    %18 = vector.load %arg7[%c0_14, %c0_15] : memref<16x1xf32, #tpu.memory_space<vmem>>, vector<16x1xf32>
    %19 = vector.shape_cast %14 : vector<16x128xf32> to vector<1x16x128xf32>
    %cst_16 = arith.constant dense<0.000000e+00> : vector<1xf32>
    %20 = vector.multi_reduction <add>, %19, %cst_16 [1, 2] : vector<1x16x128xf32> to vector<1xf32>
    %21 = vector.shape_cast %20 : vector<1xf32> to vector<1x1x1xf32>
    %22 = vector.extract %21[0, 0, 0] : f32 from vector<1x1x1xf32>
    %23 = vector.broadcast %22 : f32 to vector<1x1xf32>
    %cst_17 = arith.constant 2.048000e+03 : f32
    %24 = vector.broadcast %cst_17 : f32 to vector<1x1xf32>
    %25 = arith.divf %23, %24 : vector<1x1xf32>
    %26 = vector.broadcast %25 : vector<1x1xf32> to vector<16x128xf32>
    %27 = arith.subf %14, %26 : vector<16x128xf32>
    %28 = arith.mulf %27, %27 : vector<16x128xf32>
    %29 = vector.shape_cast %28 : vector<16x128xf32> to vector<1x16x128xf32>
    %cst_18 = arith.constant dense<0.000000e+00> : vector<1xf32>
    %30 = vector.multi_reduction <add>, %29, %cst_18 [1, 2] : vector<1x16x128xf32> to vector<1xf32>
    %31 = vector.shape_cast %30 : vector<1xf32> to vector<1x1x1xf32>
    %32 = vector.extract %31[0, 0, 0] : f32 from vector<1x1x1xf32>
    %33 = vector.broadcast %32 : f32 to vector<1x1xf32>
    %cst_19 = arith.constant 2.048000e+03 : f32
    %34 = vector.broadcast %cst_19 : f32 to vector<1x1xf32>
    %35 = arith.divf %33, %34 : vector<1x1xf32>
    %36 = vector.broadcast %25 : vector<1x1xf32> to vector<16x128xf32>
    %37 = arith.subf %14, %36 : vector<16x128xf32>
    %cst_20 = arith.constant 9.99999993E-9 : f32
    %38 = vector.broadcast %cst_20 : f32 to vector<1x1xf32>
    %39 = arith.addf %35, %38 : vector<1x1xf32>
    %40 = math.rsqrt %39 : vector<1x1xf32>
    %41 = vector.broadcast %40 : vector<1x1xf32> to vector<16x128xf32>
    %42 = arith.mulf %37, %41 : vector<16x128xf32>
    %43 = vector.broadcast %17 : vector<16x1xf32> to vector<16x128xf32>
    %44 = arith.mulf %42, %43 : vector<16x128xf32>
    %45 = vector.broadcast %18 : vector<16x1xf32> to vector<16x128xf32>
    %46 = arith.addf %44, %45 : vector<16x128xf32>
    %c0_21 = arith.constant 0 : index
    %c1 = arith.constant 1 : index
    %47 = vector.load %arg19[%c0_21, %c1] : memref<16x130xf32, #tpu.memory_space<vmem>>, vector<16x128xf32>
    tpu.vector_store %arg19[%c0_21, %c1], %46 {strides = array<i32>} : memref<16x130xf32, #tpu.memory_space<vmem>>, vector<16x128xf32>,
    %cst_22 = arith.constant 0.000000e+00 : f32
    %48 = vector.broadcast %cst_22 : f32 to vector<16x128xf32>
    %c0_23 = arith.constant 0 : index
    %c0_24 = arith.constant 0 : index
    %49 = vector.load %arg9[%c0_23, %c0_24] : memref<16x1xf32, #tpu.memory_space<vmem>>, vector<16x1xf32>
    %50 = vector.broadcast %49 : vector<16x1xf32> to vector<16x128xf32>
    %51 = arith.addf %48, %50 : vector<16x128xf32>
    %c0_25 = arith.constant 0 : index
    %c0_26 = arith.constant 0 : index
    %c0_27 = arith.constant 0 : index
    %52 = vector.load %arg8[%c0_25, %c0_26, %c0_27] : memref<3x16x1xf32, #tpu.memory_space<vmem>>, vector<1x16x1xf32>
    %53 = vector.shape_cast %52 : vector<1x16x1xf32> to vector<16x1xf32>
    %c0_28 = arith.constant 0 : index
    %c0_29 = arith.constant 0 : index
    %54 = vector.load %arg19[%c0_28, %c0_29] : memref<16x130xf32, #tpu.memory_space<vmem>>, vector<16x128xf32>
    %55 = vector.broadcast %53 : vector<16x1xf32> to vector<16x128xf32>
    %56 = arith.mulf %55, %54 : vector<16x128xf32>
    %57 = arith.addf %51, %56 : vector<16x128xf32>
    %c1_30 = arith.constant 1 : index
    %c0_31 = arith.constant 0 : index
    %c0_32 = arith.constant 0 : index
    %58 = vector.load %arg8[%c1_30, %c0_31, %c0_32] : memref<3x16x1xf32, #tpu.memory_space<vmem>>, vector<1x16x1xf32>
    %59 = vector.shape_cast %58 : vector<1x16x1xf32> to vector<16x1xf32>
    %c0_33 = arith.constant 0 : index
    %c1_34 = arith.constant 1 : index
    %60 = vector.load %arg19[%c0_33, %c1_34] : memref<16x130xf32, #tpu.memory_space<vmem>>, vector<16x128xf32>
    %61 = vector.broadcast %59 : vector<16x1xf32> to vector<16x128xf32>
    %62 = arith.mulf %61, %60 : vector<16x128xf32>
    %63 = arith.addf %57, %62 : vector<16x128xf32>
    %c2 = arith.constant 2 : index
    %c0_35 = arith.constant 0 : index
    %c0_36 = arith.constant 0 : index
    %64 = vector.load %arg8[%c2, %c0_35, %c0_36] : memref<3x16x1xf32, #tpu.memory_space<vmem>>, vector<1x16x1xf32>
    %65 = vector.shape_cast %64 : vector<1x16x1xf32> to vector<16x1xf32>
    %c0_37 = arith.constant 0 : index
    %c2_38 = arith.constant 2 : index
    %66 = vector.load %arg19[%c0_37, %c2_38] : memref<16x130xf32, #tpu.memory_space<vmem>>, vector<16x128xf32>
    %67 = vector.broadcast %65 : vector<16x1xf32> to vector<16x128xf32>
    %68 = arith.mulf %67, %66 : vector<16x128xf32>
    %69 = arith.addf %63, %68 : vector<16x128xf32>
    %c0_39 = arith.constant 0 : index
    %c0_40 = arith.constant 0 : index
    %70 = vector.load %arg10[%c0_39, %c0_40] : memref<1x1xf32, #tpu.memory_space<vmem>>, vector<1x1xf32>
    %cst_41 = arith.constant 0.000000e+00 : f32
    %71 = vector.broadcast %cst_41 : f32 to vector<16x128xf32>
    %72 = arith.cmpf oge, %69, %71 : vector<16x128xf32>
    %73 = vector.broadcast %70 : vector<1x1xf32> to vector<16x128xf32>
    %74 = arith.mulf %73, %69 : vector<16x128xf32>
    %75 = arith.select %72, %69, %74 : vector<16x128xi1>, vector<16x128xf32>
    %c0_42 = arith.constant 0 : index
    %c0_43 = arith.constant 0 : index
    %76 = vector.load %arg11[%c0_42, %c0_43] : memref<16x1xf32, #tpu.memory_space<vmem>>, vector<16x1xf32>
    %c0_44 = arith.constant 0 : index
    %c0_45 = arith.constant 0 : index
    %77 = vector.load %arg12[%c0_44, %c0_45] : memref<16x1xf32, #tpu.memory_space<vmem>>, vector<16x1xf32>
    %78 = vector.shape_cast %75 : vector<16x128xf32> to vector<1x16x128xf32>
    %cst_46 = arith.constant dense<0.000000e+00> : vector<1xf32>
    %79 = vector.multi_reduction <add>, %78, %cst_46 [1, 2] : vector<1x16x128xf32> to vector<1xf32>
    %80 = vector.shape_cast %79 : vector<1xf32> to vector<1x1x1xf32>
    %81 = vector.extract %80[0, 0, 0] : f32 from vector<1x1x1xf32>
    %82 = vector.broadcast %81 : f32 to vector<1x1xf32>
    %cst_47 = arith.constant 2.048000e+03 : f32
    %83 = vector.broadcast %cst_47 : f32 to vector<1x1xf32>
    %84 = arith.divf %82, %83 : vector<1x1xf32>
    %85 = vector.broadcast %84 : vector<1x1xf32> to vector<16x128xf32>
    %86 = arith.subf %75, %85 : vector<16x128xf32>
    %87 = arith.mulf %86, %86 : vector<16x128xf32>
    %88 = vector.shape_cast %87 : vector<16x128xf32> to vector<1x16x128xf32>
    %cst_48 = arith.constant dense<0.000000e+00> : vector<1xf32>
    %89 = vector.multi_reduction <add>, %88, %cst_48 [1, 2] : vector<1x16x128xf32> to vector<1xf32>
    %90 = vector.shape_cast %89 : vector<1xf32> to vector<1x1x1xf32>
    %91 = vector.extract %90[0, 0, 0] : f32 from vector<1x1x1xf32>
    %92 = vector.broadcast %91 : f32 to vector<1x1xf32>
    %cst_49 = arith.constant 2.048000e+03 : f32
    %93 = vector.broadcast %cst_49 : f32 to vector<1x1xf32>
    %94 = arith.divf %92, %93 : vector<1x1xf32>
    %95 = vector.broadcast %84 : vector<1x1xf32> to vector<16x128xf32>
    %96 = arith.subf %75, %95 : vector<16x128xf32>
    %cst_50 = arith.constant 9.99999993E-9 : f32
    %97 = vector.broadcast %cst_50 : f32 to vector<1x1xf32>
    %98 = arith.addf %94, %97 : vector<1x1xf32>
    %99 = math.rsqrt %98 : vector<1x1xf32>
    %100 = vector.broadcast %99 : vector<1x1xf32> to vector<16x128xf32>
    %101 = arith.mulf %96, %100 : vector<16x128xf32>
    %102 = vector.broadcast %76 : vector<16x1xf32> to vector<16x128xf32>
    %103 = arith.mulf %101, %102 : vector<16x128xf32>
    %104 = vector.broadcast %77 : vector<16x1xf32> to vector<16x128xf32>
    %105 = arith.addf %103, %104 : vector<16x128xf32>
    %c0_51 = arith.constant 0 : index
    %c0_52 = arith.constant 0 : index
    %106 = vector.load %arg13[%c0_51, %c0_52] : memref<8x16xf32, #tpu.memory_space<vmem>>, vector<8x16xf32>
    %107 = arith.truncf %106 : vector<8x16xf32> to vector<8x16xbf16>
    %108 = arith.truncf %105 : vector<16x128xf32> to vector<16x128xbf16>
    %cst_53 = arith.constant dense<0.000000e+00> : vector<8x128xf32>
    %109 = tpu.matmul %107, %108, %cst_53 {dimension_numbers = #tpu.dot_dimension_numbers<[1], [0], [0], [1], [0, 0, 1, 1], [], []>} : vector<8x16xbf16>, vector<16x128xbf16>, vector<8x128xf32> -> vector<8x128xf32>
    %110 = arith.addf %1, %109 : vector<8x128xf32>
    %c0_54 = arith.constant 0 : index
    %c0_55 = arith.constant 0 : index
    %111 = vector.load %arg14[%c0_54, %c0_55] : memref<8x1xf32, #tpu.memory_space<vmem>>, vector<8x1xf32>
    %112 = vector.broadcast %111 : vector<8x1xf32> to vector<8x128xf32>
    %113 = arith.addf %110, %112 : vector<8x128xf32>
    %c0_56 = arith.constant 0 : index
    %c0_57 = arith.constant 0 : index
    %c0_58 = arith.constant 0 : index
    %114 = vector.load %arg17[%c0_56, %c0_57, %c0_58] : memref<1x8x128xf32, #tpu.memory_space<vmem>>, vector<1x8x128xf32>
    %115 = vector.shape_cast %114 : vector<1x8x128xf32> to vector<8x128xf32>
    %116 = vector.shape_cast %113 : vector<8x128xf32> to vector<1x8x128xf32>
    tpu.vector_store %arg17[%c0_56, %c0_57, %c0_58], %116 {strides = array<i32>} : memref<1x8x128xf32, #tpu.memory_space<vmem>>, vector<1x8x128xf32>,
    %c0_59 = arith.constant 0 : index
    %c0_60 = arith.constant 0 : index
    %c0_61 = arith.constant 0 : index
    %117 = vector.load %arg2[%c0_59, %c0_60, %c0_61] : memref<1x8x128xf32, #tpu.memory_space<vmem>>, vector<1x8x128xf32>
    %118 = vector.shape_cast %117 : vector<1x8x128xf32> to vector<8x128xf32>
    %c0_62 = arith.constant 0 : index
    %c0_63 = arith.constant 0 : index
    %119 = vector.load %arg15[%c0_62, %c0_63] : memref<8x16xf32, #tpu.memory_space<vmem>>, vector<8x16xf32>
    %120 = arith.truncf %119 : vector<8x16xf32> to vector<8x16xbf16>
    %121 = arith.truncf %105 : vector<16x128xf32> to vector<16x128xbf16>
    %cst_64 = arith.constant dense<0.000000e+00> : vector<8x128xf32>
    %122 = tpu.matmul %120, %121, %cst_64 {dimension_numbers = #tpu.dot_dimension_numbers<[1], [0], [0], [1], [0, 0, 1, 1], [], []>} : vector<8x16xbf16>, vector<16x128xbf16>, vector<8x128xf32> -> vector<8x128xf32>
    %123 = arith.addf %118, %122 : vector<8x128xf32>
    %c0_65 = arith.constant 0 : index
    %c0_66 = arith.constant 0 : index
    %124 = vector.load %arg16[%c0_65, %c0_66] : memref<8x1xf32, #tpu.memory_space<vmem>>, vector<8x1xf32>
    %125 = vector.broadcast %124 : vector<8x1xf32> to vector<8x128xf32>
    %126 = arith.addf %123, %125 : vector<8x128xf32>
    %c0_67 = arith.constant 0 : index
    %c0_68 = arith.constant 0 : index
    %c0_69 = arith.constant 0 : index
    %127 = vector.load %arg18[%c0_67, %c0_68, %c0_69] : memref<1x8x128xf32, #tpu.memory_space<vmem>>, vector<1x8x128xf32>
    %128 = vector.shape_cast %127 : vector<1x8x128xf32> to vector<8x128xf32>
    %129 = vector.shape_cast %126 : vector<8x128xf32> to vector<1x8x128xf32>
    tpu.vector_store %arg18[%c0_67, %c0_68, %c0_69], %129 {strides = array<i32>} : memref<1x8x128xf32, #tpu.memory_space<vmem>>, vector<1x8x128xf32>,
    return
  }
  func.func @transform_0(%arg0: i32) -> (i32, i32, i32) {
    %c0_i32 = arith.constant 0 : i32
    %c0_i32_0 = arith.constant 0 : i32
    %c0_i32_1 = arith.constant 0 : i32
    return %arg0, %c0_i32, %c0_i32_0 : i32, i32, i32
  }
  func.func @transform_1(%arg0: i32) -> (i32, i32, i32) {
    %c0_i32 = arith.constant 0 : i32
    %c0_i32_0 = arith.constant 0 : i32
    %c0_i32_1 = arith.constant 0 : i32
    return %arg0, %c0_i32, %c0_i32_0 : i32, i32, i32
  }
  func.func @transform_2(%arg0: i32) -> (i32, i32) {
    %c0_i32 = arith.constant 0 : i32
    %c0_i32_0 = arith.constant 0 : i32
    %c0_i32_1 = arith.constant 0 : i32
    return %c0_i32, %c0_i32_0 : i32, i32
  }
  func.func @transform_3(%arg0: i32) -> (i32, i32) {
    %c0_i32 = arith.constant 0 : i32
    %c0_i32_0 = arith.constant 0 : i32
    %c0_i32_1 = arith.constant 0 : i32
    return %c0_i32, %c0_i32_0 : i32, i32
  }
  func.func @transform_4(%arg0: i32) -> (i32, i32) {
    %c0_i32 = arith.constant 0 : i32
    %c0_i32_0 = arith.constant 0 : i32
    %c0_i32_1 = arith.constant 0 : i32
    return %c0_i32, %c0_i32_0 : i32, i32
  }
  func.func @transform_5(%arg0: i32) -> (i32, i32) {
    %c0_i32 = arith.constant 0 : i32
    %c0_i32_0 = arith.constant 0 : i32
    %c0_i32_1 = arith.constant 0 : i32
    return %c0_i32, %c0_i32_0 : i32, i32
  }
  func.func @transform_6(%arg0: i32) -> (i32, i32) {
    %c0_i32 = arith.constant 0 : i32
    %c0_i32_0 = arith.constant 0 : i32
    %c0_i32_1 = arith.constant 0 : i32
    return %c0_i32, %c0_i32_0 : i32, i32
  }
  func.func @transform_7(%arg0: i32) -> (i32, i32, i32) {
    %c0_i32 = arith.constant 0 : i32
    %c0_i32_0 = arith.constant 0 : i32
    %c0_i32_1 = arith.constant 0 : i32
    %c0_i32_2 = arith.constant 0 : i32
    return %c0_i32, %c0_i32_0, %c0_i32_1 : i32, i32, i32
  }
  func.func @transform_8(%arg0: i32) -> (i32, i32) {
    %c0_i32 = arith.constant 0 : i32
    %c0_i32_0 = arith.constant 0 : i32
    %c0_i32_1 = arith.constant 0 : i32
    return %c0_i32, %c0_i32_0 : i32, i32
  }
  func.func @transform_9(%arg0: i32) -> (i32, i32) {
    %c0_i32 = arith.constant 0 : i32
    %c0_i32_0 = arith.constant 0 : i32
    %c0_i32_1 = arith.constant 0 : i32
    return %c0_i32, %c0_i32_0 : i32, i32
  }
  func.func @transform_10(%arg0: i32) -> (i32, i32) {
    %c0_i32 = arith.constant 0 : i32
    %c0_i32_0 = arith.constant 0 : i32
    %c0_i32_1 = arith.constant 0 : i32
    return %c0_i32, %c0_i32_0 : i32, i32
  }
  func.func @transform_11(%arg0: i32) -> (i32, i32) {
    %c0_i32 = arith.constant 0 : i32
    %c0_i32_0 = arith.constant 0 : i32
    %c0_i32_1 = arith.constant 0 : i32
    return %c0_i32, %c0_i32_0 : i32, i32
  }
  func.func @transform_12(%arg0: i32) -> (i32, i32) {
    %c0_i32 = arith.constant 0 : i32
    %c0_i32_0 = arith.constant 0 : i32
    %c0_i32_1 = arith.constant 0 : i32
    return %c0_i32, %c0_i32_0 : i32, i32
  }
  func.func @transform_13(%arg0: i32) -> (i32, i32) {
    %c0_i32 = arith.constant 0 : i32
    %c0_i32_0 = arith.constant 0 : i32
    %c0_i32_1 = arith.constant 0 : i32
    return %c0_i32, %c0_i32_0 : i32, i32
  }
  func.func @transform_14(%arg0: i32) -> (i32, i32) {
    %c0_i32 = arith.constant 0 : i32
    %c0_i32_0 = arith.constant 0 : i32
    %c0_i32_1 = arith.constant 0 : i32
    return %c0_i32, %c0_i32_0 : i32, i32
  }
  func.func @transform_15(%arg0: i32) -> (i32, i32) {
    %c0_i32 = arith.constant 0 : i32
    %c0_i32_0 = arith.constant 0 : i32
    %c0_i32_1 = arith.constant 0 : i32
    return %c0_i32, %c0_i32_0 : i32, i32
  }
  func.func @transform_16(%arg0: i32) -> (i32, i32, i32) {
    %c0_i32 = arith.constant 0 : i32
    %c0_i32_0 = arith.constant 0 : i32
    %c0_i32_1 = arith.constant 0 : i32
    return %arg0, %c0_i32, %c0_i32_0 : i32, i32, i32
  }
  func.func @transform_17(%arg0: i32) -> (i32, i32, i32) {
    %c0_i32 = arith.constant 0 : i32
    %c0_i32_0 = arith.constant 0 : i32
    %c0_i32_1 = arith.constant 0 : i32
    return %arg0, %c0_i32, %c0_i32_0 : i32, i32, i32
  }
}

module attributes {stable_mosaic.version = 11 : i64} {
  func.func @_depthconv_branch_kernel(%arg0: i32, %arg1: memref<1x8x128xf32, #tpu.memory_space<vmem>>, %arg2: memref<16x8xf32, #tpu.memory_space<vmem>>, %arg3: memref<16x1xf32, #tpu.memory_space<vmem>>, %arg4: memref<1x1xf32, #tpu.memory_space<vmem>>, %arg5: memref<16x1xf32, #tpu.memory_space<vmem>>, %arg6: memref<16x1xf32, #tpu.memory_space<vmem>>, %arg7: memref<3x16x1xf32, #tpu.memory_space<vmem>>, %arg8: memref<16x1xf32, #tpu.memory_space<vmem>>, %arg9: memref<1x1xf32, #tpu.memory_space<vmem>>, %arg10: memref<16x1xf32, #tpu.memory_space<vmem>>, %arg11: memref<16x1xf32, #tpu.memory_space<vmem>>, %arg12: memref<8x16xf32, #tpu.memory_space<vmem>>, %arg13: memref<8x1xf32, #tpu.memory_space<vmem>>, %arg14: memref<1x8x128xf32, #tpu.memory_space<vmem>>, %arg15: memref<16x130xf32, #tpu.memory_space<vmem>>) attributes {dimension_semantics = [#tpu.dimension_semantics<parallel>], iteration_bounds = array<i64: 2>, scalar_prefetch = 0 : i64, scratch_operands = 1 : i64, tpu.core_type = #tpu.core_type<tc>, window_params = [{transform_indices = @transform_0, window_bounds = array<i64: 1, 8, 128>}, {pipeline_mode = #tpu.pipeline_mode<synchronous>, transform_indices = @transform_1, window_bounds = array<i64: 16, 8>}, {pipeline_mode = #tpu.pipeline_mode<synchronous>, transform_indices = @transform_2, window_bounds = array<i64: 16, 1>}, {pipeline_mode = #tpu.pipeline_mode<synchronous>, transform_indices = @transform_3, window_bounds = array<i64: 1, 1>}, {pipeline_mode = #tpu.pipeline_mode<synchronous>, transform_indices = @transform_4, window_bounds = array<i64: 16, 1>}, {pipeline_mode = #tpu.pipeline_mode<synchronous>, transform_indices = @transform_5, window_bounds = array<i64: 16, 1>}, {pipeline_mode = #tpu.pipeline_mode<synchronous>, transform_indices = @transform_6, window_bounds = array<i64: 3, 16, 1>}, {pipeline_mode = #tpu.pipeline_mode<synchronous>, transform_indices = @transform_7, window_bounds = array<i64: 16, 1>}, {pipeline_mode = #tpu.pipeline_mode<synchronous>, transform_indices = @transform_8, window_bounds = array<i64: 1, 1>}, {pipeline_mode = #tpu.pipeline_mode<synchronous>, transform_indices = @transform_9, window_bounds = array<i64: 16, 1>}, {pipeline_mode = #tpu.pipeline_mode<synchronous>, transform_indices = @transform_10, window_bounds = array<i64: 16, 1>}, {pipeline_mode = #tpu.pipeline_mode<synchronous>, transform_indices = @transform_11, window_bounds = array<i64: 8, 16>}, {pipeline_mode = #tpu.pipeline_mode<synchronous>, transform_indices = @transform_12, window_bounds = array<i64: 8, 1>}, {transform_indices = @transform_13, window_bounds = array<i64: 1, 8, 128>}]} {
    %c0 = arith.constant 0 : index
    %c0_0 = arith.constant 0 : index
    %c0_1 = arith.constant 0 : index
    %0 = vector.load %arg1[%c0, %c0_0, %c0_1] : memref<1x8x128xf32, #tpu.memory_space<vmem>>, vector<1x8x128xf32>
    %1 = vector.shape_cast %0 : vector<1x8x128xf32> to vector<8x128xf32>
    %c0_2 = arith.constant 0 : index
    %c0_3 = arith.constant 0 : index
    %2 = vector.load %arg2[%c0_2, %c0_3] : memref<16x8xf32, #tpu.memory_space<vmem>>, vector<16x8xf32>
    %3 = arith.truncf %2 : vector<16x8xf32> to vector<16x8xbf16>
    %4 = arith.truncf %1 : vector<8x128xf32> to vector<8x128xbf16>
    %cst = arith.constant dense<0.000000e+00> : vector<16x128xf32>
    %5 = tpu.matmul %3, %4, %cst {dimension_numbers = #tpu.dot_dimension_numbers<[1], [0], [0], [1], [0, 0, 1, 1], [], []>} : vector<16x8xbf16>, vector<8x128xbf16>, vector<16x128xf32> -> vector<16x128xf32>
    %c0_4 = arith.constant 0 : index
    %c0_5 = arith.constant 0 : index
    %6 = vector.load %arg3[%c0_4, %c0_5] : memref<16x1xf32, #tpu.memory_space<vmem>>, vector<16x1xf32>
    %7 = vector.broadcast %6 : vector<16x1xf32> to vector<16x128xf32>
    %8 = arith.addf %5, %7 : vector<16x128xf32>
    %c0_6 = arith.constant 0 : index
    %c0_7 = arith.constant 0 : index
    %9 = vector.load %arg4[%c0_6, %c0_7] : memref<1x1xf32, #tpu.memory_space<vmem>>, vector<1x1xf32>
    %cst_8 = arith.constant 0.000000e+00 : f32
    %10 = vector.broadcast %cst_8 : f32 to vector<16x128xf32>
    %11 = arith.cmpf oge, %8, %10 : vector<16x128xf32>
    %12 = vector.broadcast %9 : vector<1x1xf32> to vector<16x128xf32>
    %13 = arith.mulf %12, %8 : vector<16x128xf32>
    %14 = arith.select %11, %8, %13 : vector<16x128xi1>, vector<16x128xf32>
    %cst_9 = arith.constant 0.000000e+00 : f32
    %15 = vector.broadcast %cst_9 : f32 to vector<16x130xf32>
    %c0_10 = arith.constant 0 : index
    %c0_11 = arith.constant 0 : index
    %16 = vector.load %arg15[%c0_10, %c0_11] : memref<16x130xf32, #tpu.memory_space<vmem>>, vector<16x130xf32>
    tpu.vector_store %arg15[%c0_10, %c0_11], %15 {strides = array<i32>} : memref<16x130xf32, #tpu.memory_space<vmem>>, vector<16x130xf32>,
    %c0_12 = arith.constant 0 : index
    %c0_13 = arith.constant 0 : index
    %17 = vector.load %arg5[%c0_12, %c0_13] : memref<16x1xf32, #tpu.memory_space<vmem>>, vector<16x1xf32>
    %c0_14 = arith.constant 0 : index
    %c0_15 = arith.constant 0 : index
    %18 = vector.load %arg6[%c0_14, %c0_15] : memref<16x1xf32, #tpu.memory_space<vmem>>, vector<16x1xf32>
    %19 = vector.shape_cast %14 : vector<16x128xf32> to vector<1x16x128xf32>
    %cst_16 = arith.constant dense<0.000000e+00> : vector<1xf32>
    %20 = vector.multi_reduction <add>, %19, %cst_16 [1, 2] : vector<1x16x128xf32> to vector<1xf32>
    %21 = vector.shape_cast %20 : vector<1xf32> to vector<1x1x1xf32>
    %22 = vector.extract %21[0, 0, 0] : f32 from vector<1x1x1xf32>
    %23 = vector.broadcast %22 : f32 to vector<1x1xf32>
    %cst_17 = arith.constant 2.048000e+03 : f32
    %24 = vector.broadcast %cst_17 : f32 to vector<1x1xf32>
    %25 = arith.divf %23, %24 : vector<1x1xf32>
    %26 = vector.broadcast %25 : vector<1x1xf32> to vector<16x128xf32>
    %27 = arith.subf %14, %26 : vector<16x128xf32>
    %28 = arith.mulf %27, %27 : vector<16x128xf32>
    %29 = vector.shape_cast %28 : vector<16x128xf32> to vector<1x16x128xf32>
    %cst_18 = arith.constant dense<0.000000e+00> : vector<1xf32>
    %30 = vector.multi_reduction <add>, %29, %cst_18 [1, 2] : vector<1x16x128xf32> to vector<1xf32>
    %31 = vector.shape_cast %30 : vector<1xf32> to vector<1x1x1xf32>
    %32 = vector.extract %31[0, 0, 0] : f32 from vector<1x1x1xf32>
    %33 = vector.broadcast %32 : f32 to vector<1x1xf32>
    %cst_19 = arith.constant 2.048000e+03 : f32
    %34 = vector.broadcast %cst_19 : f32 to vector<1x1xf32>
    %35 = arith.divf %33, %34 : vector<1x1xf32>
    %36 = vector.broadcast %25 : vector<1x1xf32> to vector<16x128xf32>
    %37 = arith.subf %14, %36 : vector<16x128xf32>
    %cst_20 = arith.constant 9.99999993E-9 : f32
    %38 = vector.broadcast %cst_20 : f32 to vector<1x1xf32>
    %39 = arith.addf %35, %38 : vector<1x1xf32>
    %40 = math.rsqrt %39 : vector<1x1xf32>
    %41 = vector.broadcast %40 : vector<1x1xf32> to vector<16x128xf32>
    %42 = arith.mulf %37, %41 : vector<16x128xf32>
    %43 = vector.broadcast %17 : vector<16x1xf32> to vector<16x128xf32>
    %44 = arith.mulf %42, %43 : vector<16x128xf32>
    %45 = vector.broadcast %18 : vector<16x1xf32> to vector<16x128xf32>
    %46 = arith.addf %44, %45 : vector<16x128xf32>
    %c0_21 = arith.constant 0 : index
    %c1 = arith.constant 1 : index
    %47 = vector.load %arg15[%c0_21, %c1] : memref<16x130xf32, #tpu.memory_space<vmem>>, vector<16x128xf32>
    tpu.vector_store %arg15[%c0_21, %c1], %46 {strides = array<i32>} : memref<16x130xf32, #tpu.memory_space<vmem>>, vector<16x128xf32>,
    %cst_22 = arith.constant 0.000000e+00 : f32
    %48 = vector.broadcast %cst_22 : f32 to vector<16x128xf32>
    %c0_23 = arith.constant 0 : index
    %c0_24 = arith.constant 0 : index
    %49 = vector.load %arg8[%c0_23, %c0_24] : memref<16x1xf32, #tpu.memory_space<vmem>>, vector<16x1xf32>
    %50 = vector.broadcast %49 : vector<16x1xf32> to vector<16x128xf32>
    %51 = arith.addf %48, %50 : vector<16x128xf32>
    %c0_25 = arith.constant 0 : index
    %c0_26 = arith.constant 0 : index
    %c0_27 = arith.constant 0 : index
    %52 = vector.load %arg7[%c0_25, %c0_26, %c0_27] : memref<3x16x1xf32, #tpu.memory_space<vmem>>, vector<1x16x1xf32>
    %53 = vector.shape_cast %52 : vector<1x16x1xf32> to vector<16x1xf32>
    %c0_28 = arith.constant 0 : index
    %c0_29 = arith.constant 0 : index
    %54 = vector.load %arg15[%c0_28, %c0_29] : memref<16x130xf32, #tpu.memory_space<vmem>>, vector<16x128xf32>
    %55 = vector.broadcast %53 : vector<16x1xf32> to vector<16x128xf32>
    %56 = arith.mulf %55, %54 : vector<16x128xf32>
    %57 = arith.addf %51, %56 : vector<16x128xf32>
    %c1_30 = arith.constant 1 : index
    %c0_31 = arith.constant 0 : index
    %c0_32 = arith.constant 0 : index
    %58 = vector.load %arg7[%c1_30, %c0_31, %c0_32] : memref<3x16x1xf32, #tpu.memory_space<vmem>>, vector<1x16x1xf32>
    %59 = vector.shape_cast %58 : vector<1x16x1xf32> to vector<16x1xf32>
    %c0_33 = arith.constant 0 : index
    %c1_34 = arith.constant 1 : index
    %60 = vector.load %arg15[%c0_33, %c1_34] : memref<16x130xf32, #tpu.memory_space<vmem>>, vector<16x128xf32>
    %61 = vector.broadcast %59 : vector<16x1xf32> to vector<16x128xf32>
    %62 = arith.mulf %61, %60 : vector<16x128xf32>
    %63 = arith.addf %57, %62 : vector<16x128xf32>
    %c2 = arith.constant 2 : index
    %c0_35 = arith.constant 0 : index
    %c0_36 = arith.constant 0 : index
    %64 = vector.load %arg7[%c2, %c0_35, %c0_36] : memref<3x16x1xf32, #tpu.memory_space<vmem>>, vector<1x16x1xf32>
    %65 = vector.shape_cast %64 : vector<1x16x1xf32> to vector<16x1xf32>
    %c0_37 = arith.constant 0 : index
    %c2_38 = arith.constant 2 : index
    %66 = vector.load %arg15[%c0_37, %c2_38] : memref<16x130xf32, #tpu.memory_space<vmem>>, vector<16x128xf32>
    %67 = vector.broadcast %65 : vector<16x1xf32> to vector<16x128xf32>
    %68 = arith.mulf %67, %66 : vector<16x128xf32>
    %69 = arith.addf %63, %68 : vector<16x128xf32>
    %c0_39 = arith.constant 0 : index
    %c0_40 = arith.constant 0 : index
    %70 = vector.load %arg9[%c0_39, %c0_40] : memref<1x1xf32, #tpu.memory_space<vmem>>, vector<1x1xf32>
    %cst_41 = arith.constant 0.000000e+00 : f32
    %71 = vector.broadcast %cst_41 : f32 to vector<16x128xf32>
    %72 = arith.cmpf oge, %69, %71 : vector<16x128xf32>
    %73 = vector.broadcast %70 : vector<1x1xf32> to vector<16x128xf32>
    %74 = arith.mulf %73, %69 : vector<16x128xf32>
    %75 = arith.select %72, %69, %74 : vector<16x128xi1>, vector<16x128xf32>
    %c0_42 = arith.constant 0 : index
    %c0_43 = arith.constant 0 : index
    %76 = vector.load %arg10[%c0_42, %c0_43] : memref<16x1xf32, #tpu.memory_space<vmem>>, vector<16x1xf32>
    %c0_44 = arith.constant 0 : index
    %c0_45 = arith.constant 0 : index
    %77 = vector.load %arg11[%c0_44, %c0_45] : memref<16x1xf32, #tpu.memory_space<vmem>>, vector<16x1xf32>
    %78 = vector.shape_cast %75 : vector<16x128xf32> to vector<1x16x128xf32>
    %cst_46 = arith.constant dense<0.000000e+00> : vector<1xf32>
    %79 = vector.multi_reduction <add>, %78, %cst_46 [1, 2] : vector<1x16x128xf32> to vector<1xf32>
    %80 = vector.shape_cast %79 : vector<1xf32> to vector<1x1x1xf32>
    %81 = vector.extract %80[0, 0, 0] : f32 from vector<1x1x1xf32>
    %82 = vector.broadcast %81 : f32 to vector<1x1xf32>
    %cst_47 = arith.constant 2.048000e+03 : f32
    %83 = vector.broadcast %cst_47 : f32 to vector<1x1xf32>
    %84 = arith.divf %82, %83 : vector<1x1xf32>
    %85 = vector.broadcast %84 : vector<1x1xf32> to vector<16x128xf32>
    %86 = arith.subf %75, %85 : vector<16x128xf32>
    %87 = arith.mulf %86, %86 : vector<16x128xf32>
    %88 = vector.shape_cast %87 : vector<16x128xf32> to vector<1x16x128xf32>
    %cst_48 = arith.constant dense<0.000000e+00> : vector<1xf32>
    %89 = vector.multi_reduction <add>, %88, %cst_48 [1, 2] : vector<1x16x128xf32> to vector<1xf32>
    %90 = vector.shape_cast %89 : vector<1xf32> to vector<1x1x1xf32>
    %91 = vector.extract %90[0, 0, 0] : f32 from vector<1x1x1xf32>
    %92 = vector.broadcast %91 : f32 to vector<1x1xf32>
    %cst_49 = arith.constant 2.048000e+03 : f32
    %93 = vector.broadcast %cst_49 : f32 to vector<1x1xf32>
    %94 = arith.divf %92, %93 : vector<1x1xf32>
    %95 = vector.broadcast %84 : vector<1x1xf32> to vector<16x128xf32>
    %96 = arith.subf %75, %95 : vector<16x128xf32>
    %cst_50 = arith.constant 9.99999993E-9 : f32
    %97 = vector.broadcast %cst_50 : f32 to vector<1x1xf32>
    %98 = arith.addf %94, %97 : vector<1x1xf32>
    %99 = math.rsqrt %98 : vector<1x1xf32>
    %100 = vector.broadcast %99 : vector<1x1xf32> to vector<16x128xf32>
    %101 = arith.mulf %96, %100 : vector<16x128xf32>
    %102 = vector.broadcast %76 : vector<16x1xf32> to vector<16x128xf32>
    %103 = arith.mulf %101, %102 : vector<16x128xf32>
    %104 = vector.broadcast %77 : vector<16x1xf32> to vector<16x128xf32>
    %105 = arith.addf %103, %104 : vector<16x128xf32>
    %c0_51 = arith.constant 0 : index
    %c0_52 = arith.constant 0 : index
    %106 = vector.load %arg12[%c0_51, %c0_52] : memref<8x16xf32, #tpu.memory_space<vmem>>, vector<8x16xf32>
    %107 = arith.truncf %106 : vector<8x16xf32> to vector<8x16xbf16>
    %108 = arith.truncf %105 : vector<16x128xf32> to vector<16x128xbf16>
    %cst_53 = arith.constant dense<0.000000e+00> : vector<8x128xf32>
    %109 = tpu.matmul %107, %108, %cst_53 {dimension_numbers = #tpu.dot_dimension_numbers<[1], [0], [0], [1], [0, 0, 1, 1], [], []>} : vector<8x16xbf16>, vector<16x128xbf16>, vector<8x128xf32> -> vector<8x128xf32>
    %c0_54 = arith.constant 0 : index
    %c0_55 = arith.constant 0 : index
    %110 = vector.load %arg13[%c0_54, %c0_55] : memref<8x1xf32, #tpu.memory_space<vmem>>, vector<8x1xf32>
    %111 = vector.broadcast %110 : vector<8x1xf32> to vector<8x128xf32>
    %112 = arith.addf %109, %111 : vector<8x128xf32>
    %c0_56 = arith.constant 0 : index
    %c0_57 = arith.constant 0 : index
    %c0_58 = arith.constant 0 : index
    %113 = vector.load %arg14[%c0_56, %c0_57, %c0_58] : memref<1x8x128xf32, #tpu.memory_space<vmem>>, vector<1x8x128xf32>
    %114 = vector.shape_cast %113 : vector<1x8x128xf32> to vector<8x128xf32>
    %115 = vector.shape_cast %112 : vector<8x128xf32> to vector<1x8x128xf32>
    tpu.vector_store %arg14[%c0_56, %c0_57, %c0_58], %115 {strides = array<i32>} : memref<1x8x128xf32, #tpu.memory_space<vmem>>, vector<1x8x128xf32>,
    return
  }
  func.func @transform_0(%arg0: i32) -> (i32, i32, i32) {
    %c0_i32 = arith.constant 0 : i32
    %c0_i32_0 = arith.constant 0 : i32
    %c0_i32_1 = arith.constant 0 : i32
    return %arg0, %c0_i32, %c0_i32_0 : i32, i32, i32
  }
  func.func @transform_1(%arg0: i32) -> (i32, i32) {
    %c0_i32 = arith.constant 0 : i32
    %c0_i32_0 = arith.constant 0 : i32
    %c0_i32_1 = arith.constant 0 : i32
    return %c0_i32, %c0_i32_0 : i32, i32
  }
  func.func @transform_2(%arg0: i32) -> (i32, i32) {
    %c0_i32 = arith.constant 0 : i32
    %c0_i32_0 = arith.constant 0 : i32
    %c0_i32_1 = arith.constant 0 : i32
    return %c0_i32, %c0_i32_0 : i32, i32
  }
  func.func @transform_3(%arg0: i32) -> (i32, i32) {
    %c0_i32 = arith.constant 0 : i32
    %c0_i32_0 = arith.constant 0 : i32
    %c0_i32_1 = arith.constant 0 : i32
    return %c0_i32, %c0_i32_0 : i32, i32
  }
  func.func @transform_4(%arg0: i32) -> (i32, i32) {
    %c0_i32 = arith.constant 0 : i32
    %c0_i32_0 = arith.constant 0 : i32
    %c0_i32_1 = arith.constant 0 : i32
    return %c0_i32, %c0_i32_0 : i32, i32
  }
  func.func @transform_5(%arg0: i32) -> (i32, i32) {
    %c0_i32 = arith.constant 0 : i32
    %c0_i32_0 = arith.constant 0 : i32
    %c0_i32_1 = arith.constant 0 : i32
    return %c0_i32, %c0_i32_0 : i32, i32
  }
  func.func @transform_6(%arg0: i32) -> (i32, i32, i32) {
    %c0_i32 = arith.constant 0 : i32
    %c0_i32_0 = arith.constant 0 : i32
    %c0_i32_1 = arith.constant 0 : i32
    %c0_i32_2 = arith.constant 0 : i32
    return %c0_i32, %c0_i32_0, %c0_i32_1 : i32, i32, i32
  }
  func.func @transform_7(%arg0: i32) -> (i32, i32) {
    %c0_i32 = arith.constant 0 : i32
    %c0_i32_0 = arith.constant 0 : i32
    %c0_i32_1 = arith.constant 0 : i32
    return %c0_i32, %c0_i32_0 : i32, i32
  }
  func.func @transform_8(%arg0: i32) -> (i32, i32) {
    %c0_i32 = arith.constant 0 : i32
    %c0_i32_0 = arith.constant 0 : i32
    %c0_i32_1 = arith.constant 0 : i32
    return %c0_i32, %c0_i32_0 : i32, i32
  }
  func.func @transform_9(%arg0: i32) -> (i32, i32) {
    %c0_i32 = arith.constant 0 : i32
    %c0_i32_0 = arith.constant 0 : i32
    %c0_i32_1 = arith.constant 0 : i32
    return %c0_i32, %c0_i32_0 : i32, i32
  }
  func.func @transform_10(%arg0: i32) -> (i32, i32) {
    %c0_i32 = arith.constant 0 : i32
    %c0_i32_0 = arith.constant 0 : i32
    %c0_i32_1 = arith.constant 0 : i32
    return %c0_i32, %c0_i32_0 : i32, i32
  }
  func.func @transform_11(%arg0: i32) -> (i32, i32) {
    %c0_i32 = arith.constant 0 : i32
    %c0_i32_0 = arith.constant 0 : i32
    %c0_i32_1 = arith.constant 0 : i32
    return %c0_i32, %c0_i32_0 : i32, i32
  }
  func.func @transform_12(%arg0: i32) -> (i32, i32) {
    %c0_i32 = arith.constant 0 : i32
    %c0_i32_0 = arith.constant 0 : i32
    %c0_i32_1 = arith.constant 0 : i32
    return %c0_i32, %c0_i32_0 : i32, i32
  }
  func.func @transform_13(%arg0: i32) -> (i32, i32, i32) {
    %c0_i32 = arith.constant 0 : i32
    %c0_i32_0 = arith.constant 0 : i32
    %c0_i32_1 = arith.constant 0 : i32
    return %arg0, %c0_i32, %c0_i32_0 : i32, i32, i32
  }
}

module attributes {stable_mosaic.version = 11 : i64} {
  func.func @_add_gn_acc_kernel(%arg0: i32, %arg1: memref<1x8x128xf32, #tpu.memory_space<vmem>>, %arg2: memref<1x8x128xf32, #tpu.memory_space<vmem>>, %arg3: memref<1x8x128xf32, #tpu.memory_space<vmem>>, %arg4: memref<8x1xf32, #tpu.memory_space<vmem>>, %arg5: memref<8x1xf32, #tpu.memory_space<vmem>>, %arg6: memref<1x8x128xf32, #tpu.memory_space<vmem>>, %arg7: memref<1x8x128xf32, #tpu.memory_space<vmem>>) attributes {dimension_semantics = [#tpu.dimension_semantics<parallel>], iteration_bounds = array<i64: 2>, scalar_prefetch = 0 : i64, scratch_operands = 0 : i64, tpu.core_type = #tpu.core_type<tc>, window_params = [{transform_indices = @transform_0, window_bounds = array<i64: 1, 8, 128>}, {transform_indices = @transform_1, window_bounds = array<i64: 1, 8, 128>}, {transform_indices = @transform_2, window_bounds = array<i64: 1, 8, 128>}, {pipeline_mode = #tpu.pipeline_mode<synchronous>, transform_indices = @transform_3, window_bounds = array<i64: 8, 1>}, {pipeline_mode = #tpu.pipeline_mode<synchronous>, transform_indices = @transform_4, window_bounds = array<i64: 8, 1>}, {transform_indices = @transform_5, window_bounds = array<i64: 1, 8, 128>}, {transform_indices = @transform_6, window_bounds = array<i64: 1, 8, 128>}]} {
    %c0 = arith.constant 0 : index
    %c0_0 = arith.constant 0 : index
    %c0_1 = arith.constant 0 : index
    %0 = vector.load %arg1[%c0, %c0_0, %c0_1] : memref<1x8x128xf32, #tpu.memory_space<vmem>>, vector<1x8x128xf32>
    %1 = vector.shape_cast %0 : vector<1x8x128xf32> to vector<8x128xf32>
    %c0_2 = arith.constant 0 : index
    %c0_3 = arith.constant 0 : index
    %c0_4 = arith.constant 0 : index
    %2 = vector.load %arg2[%c0_2, %c0_3, %c0_4] : memref<1x8x128xf32, #tpu.memory_space<vmem>>, vector<1x8x128xf32>
    %3 = vector.shape_cast %2 : vector<1x8x128xf32> to vector<8x128xf32>
    %4 = arith.addf %1, %3 : vector<8x128xf32>
    %c0_5 = arith.constant 0 : index
    %c0_6 = arith.constant 0 : index
    %5 = vector.load %arg4[%c0_5, %c0_6] : memref<8x1xf32, #tpu.memory_space<vmem>>, vector<8x1xf32>
    %c0_7 = arith.constant 0 : index
    %c0_8 = arith.constant 0 : index
    %6 = vector.load %arg5[%c0_7, %c0_8] : memref<8x1xf32, #tpu.memory_space<vmem>>, vector<8x1xf32>
    %7 = vector.shape_cast %4 : vector<8x128xf32> to vector<1x8x128xf32>
    %cst = arith.constant dense<0.000000e+00> : vector<1xf32>
    %8 = vector.multi_reduction <add>, %7, %cst [1, 2] : vector<1x8x128xf32> to vector<1xf32>
    %9 = vector.shape_cast %8 : vector<1xf32> to vector<1x1x1xf32>
    %10 = vector.extract %9[0, 0, 0] : f32 from vector<1x1x1xf32>
    %11 = vector.broadcast %10 : f32 to vector<1x1xf32>
    %cst_9 = arith.constant 1.024000e+03 : f32
    %12 = vector.broadcast %cst_9 : f32 to vector<1x1xf32>
    %13 = arith.divf %11, %12 : vector<1x1xf32>
    %14 = vector.broadcast %13 : vector<1x1xf32> to vector<8x128xf32>
    %15 = arith.subf %4, %14 : vector<8x128xf32>
    %16 = arith.mulf %15, %15 : vector<8x128xf32>
    %17 = vector.shape_cast %16 : vector<8x128xf32> to vector<1x8x128xf32>
    %cst_10 = arith.constant dense<0.000000e+00> : vector<1xf32>
    %18 = vector.multi_reduction <add>, %17, %cst_10 [1, 2] : vector<1x8x128xf32> to vector<1xf32>
    %19 = vector.shape_cast %18 : vector<1xf32> to vector<1x1x1xf32>
    %20 = vector.extract %19[0, 0, 0] : f32 from vector<1x1x1xf32>
    %21 = vector.broadcast %20 : f32 to vector<1x1xf32>
    %cst_11 = arith.constant 1.024000e+03 : f32
    %22 = vector.broadcast %cst_11 : f32 to vector<1x1xf32>
    %23 = arith.divf %21, %22 : vector<1x1xf32>
    %24 = vector.broadcast %13 : vector<1x1xf32> to vector<8x128xf32>
    %25 = arith.subf %4, %24 : vector<8x128xf32>
    %cst_12 = arith.constant 9.99999993E-9 : f32
    %26 = vector.broadcast %cst_12 : f32 to vector<1x1xf32>
    %27 = arith.addf %23, %26 : vector<1x1xf32>
    %28 = math.rsqrt %27 : vector<1x1xf32>
    %29 = vector.broadcast %28 : vector<1x1xf32> to vector<8x128xf32>
    %30 = arith.mulf %25, %29 : vector<8x128xf32>
    %31 = vector.broadcast %5 : vector<8x1xf32> to vector<8x128xf32>
    %32 = arith.mulf %30, %31 : vector<8x128xf32>
    %33 = vector.broadcast %6 : vector<8x1xf32> to vector<8x128xf32>
    %34 = arith.addf %32, %33 : vector<8x128xf32>
    %c0_13 = arith.constant 0 : index
    %c0_14 = arith.constant 0 : index
    %c0_15 = arith.constant 0 : index
    %35 = vector.load %arg6[%c0_13, %c0_14, %c0_15] : memref<1x8x128xf32, #tpu.memory_space<vmem>>, vector<1x8x128xf32>
    %36 = vector.shape_cast %35 : vector<1x8x128xf32> to vector<8x128xf32>
    %37 = vector.shape_cast %34 : vector<8x128xf32> to vector<1x8x128xf32>
    tpu.vector_store %arg6[%c0_13, %c0_14, %c0_15], %37 {strides = array<i32>} : memref<1x8x128xf32, #tpu.memory_space<vmem>>, vector<1x8x128xf32>,
    %c0_16 = arith.constant 0 : index
    %c0_17 = arith.constant 0 : index
    %c0_18 = arith.constant 0 : index
    %38 = vector.load %arg3[%c0_16, %c0_17, %c0_18] : memref<1x8x128xf32, #tpu.memory_space<vmem>>, vector<1x8x128xf32>
    %39 = vector.shape_cast %38 : vector<1x8x128xf32> to vector<8x128xf32>
    %40 = arith.addf %39, %34 : vector<8x128xf32>
    %c0_19 = arith.constant 0 : index
    %c0_20 = arith.constant 0 : index
    %c0_21 = arith.constant 0 : index
    %41 = vector.load %arg7[%c0_19, %c0_20, %c0_21] : memref<1x8x128xf32, #tpu.memory_space<vmem>>, vector<1x8x128xf32>
    %42 = vector.shape_cast %41 : vector<1x8x128xf32> to vector<8x128xf32>
    %43 = vector.shape_cast %40 : vector<8x128xf32> to vector<1x8x128xf32>
    tpu.vector_store %arg7[%c0_19, %c0_20, %c0_21], %43 {strides = array<i32>} : memref<1x8x128xf32, #tpu.memory_space<vmem>>, vector<1x8x128xf32>,
    return
  }
  func.func @transform_0(%arg0: i32) -> (i32, i32, i32) {
    %c0_i32 = arith.constant 0 : i32
    %c0_i32_0 = arith.constant 0 : i32
    %c0_i32_1 = arith.constant 0 : i32
    return %arg0, %c0_i32, %c0_i32_0 : i32, i32, i32
  }
  func.func @transform_1(%arg0: i32) -> (i32, i32, i32) {
    %c0_i32 = arith.constant 0 : i32
    %c0_i32_0 = arith.constant 0 : i32
    %c0_i32_1 = arith.constant 0 : i32
    return %arg0, %c0_i32, %c0_i32_0 : i32, i32, i32
  }
  func.func @transform_2(%arg0: i32) -> (i32, i32, i32) {
    %c0_i32 = arith.constant 0 : i32
    %c0_i32_0 = arith.constant 0 : i32
    %c0_i32_1 = arith.constant 0 : i32
    return %arg0, %c0_i32, %c0_i32_0 : i32, i32, i32
  }
  func.func @transform_3(%arg0: i32) -> (i32, i32) {
    %c0_i32 = arith.constant 0 : i32
    %c0_i32_0 = arith.constant 0 : i32
    %c0_i32_1 = arith.constant 0 : i32
    return %c0_i32, %c0_i32_0 : i32, i32
  }
  func.func @transform_4(%arg0: i32) -> (i32, i32) {
    %c0_i32 = arith.constant 0 : i32
    %c0_i32_0 = arith.constant 0 : i32
    %c0_i32_1 = arith.constant 0 : i32
    return %c0_i32, %c0_i32_0 : i32, i32
  }
  func.func @transform_5(%arg0: i32) -> (i32, i32, i32) {
    %c0_i32 = arith.constant 0 : i32
    %c0_i32_0 = arith.constant 0 : i32
    %c0_i32_1 = arith.constant 0 : i32
    return %arg0, %c0_i32, %c0_i32_0 : i32, i32, i32
  }
  func.func @transform_6(%arg0: i32) -> (i32, i32, i32) {
    %c0_i32 = arith.constant 0 : i32
    %c0_i32_0 = arith.constant 0 : i32
    %c0_i32_1 = arith.constant 0 : i32
    return %arg0, %c0_i32, %c0_i32_0 : i32, i32, i32
  }
}

module attributes {stable_mosaic.version = 11 : i64} {
  func.func @_attn_gn_kernel(%arg0: i32, %arg1: memref<1x8x128xf32, #tpu.memory_space<vmem>>, %arg2: memref<1x8x128xf32, #tpu.memory_space<vmem>>, %arg3: memref<1x8x128xf32, #tpu.memory_space<vmem>>, %arg4: memref<1x8x128xf32, #tpu.memory_space<vmem>>, %arg5: memref<8x1xf32, #tpu.memory_space<vmem>>, %arg6: memref<8x1xf32, #tpu.memory_space<vmem>>, %arg7: memref<1x8x128xf32, #tpu.memory_space<vmem>>) attributes {dimension_semantics = [#tpu.dimension_semantics<parallel>], iteration_bounds = array<i64: 2>, scalar_prefetch = 0 : i64, scratch_operands = 0 : i64, tpu.core_type = #tpu.core_type<tc>, window_params = [{transform_indices = @transform_0, window_bounds = array<i64: 1, 8, 128>}, {transform_indices = @transform_1, window_bounds = array<i64: 1, 8, 128>}, {transform_indices = @transform_2, window_bounds = array<i64: 1, 8, 128>}, {transform_indices = @transform_3, window_bounds = array<i64: 1, 8, 128>}, {pipeline_mode = #tpu.pipeline_mode<synchronous>, transform_indices = @transform_4, window_bounds = array<i64: 8, 1>}, {pipeline_mode = #tpu.pipeline_mode<synchronous>, transform_indices = @transform_5, window_bounds = array<i64: 8, 1>}, {transform_indices = @transform_6, window_bounds = array<i64: 1, 8, 128>}]} {
    %c0 = arith.constant 0 : index
    %c0_0 = arith.constant 0 : index
    %c0_1 = arith.constant 0 : index
    %0 = vector.load %arg1[%c0, %c0_0, %c0_1] : memref<1x8x128xf32, #tpu.memory_space<vmem>>, vector<1x8x128xf32>
    %1 = vector.shape_cast %0 : vector<1x8x128xf32> to vector<8x128xf32>
    %cst = arith.constant 0.0883883461 : f32
    %2 = vector.broadcast %cst : f32 to vector<8x128xf32>
    %3 = arith.mulf %1, %2 : vector<8x128xf32>
    %4 = arith.truncf %3 : vector<8x128xf32> to vector<8x128xbf16>
    %c0_2 = arith.constant 0 : index
    %c0_3 = arith.constant 0 : index
    %c0_4 = arith.constant 0 : index
    %5 = vector.load %arg2[%c0_2, %c0_3, %c0_4] : memref<1x8x128xf32, #tpu.memory_space<vmem>>, vector<1x8x128xf32>
    %6 = vector.shape_cast %5 : vector<1x8x128xf32> to vector<8x128xf32>
    %7 = arith.truncf %6 : vector<8x128xf32> to vector<8x128xbf16>
    %cst_5 = arith.constant dense<0.000000e+00> : vector<8x8xf32>
    %8 = tpu.matmul %4, %7, %cst_5 {dimension_numbers = #tpu.dot_dimension_numbers<[1], [1], [0], [0], [0, 0, 1, 0], [], []>} : vector<8x128xbf16>, vector<8x128xbf16>, vector<8x8xf32> -> vector<8x8xf32>
    %cst_6 = arith.constant dense<0xFF800000> : vector<8xf32>
    %9 = vector.multi_reduction <maximumf>, %8, %cst_6 [1] : vector<8x8xf32> to vector<8xf32>
    %10 = vector.shape_cast %9 : vector<8xf32> to vector<8x1xf32>
    %11 = vector.broadcast %10 : vector<8x1xf32> to vector<8x8xf32>
    %12 = arith.subf %8, %11 : vector<8x8xf32>
    %13 = math.exp %12 : vector<8x8xf32>
    %cst_7 = arith.constant dense<0.000000e+00> : vector<8xf32>
    %14 = vector.multi_reduction <add>, %13, %cst_7 [1] : vector<8x8xf32> to vector<8xf32>
    %15 = vector.shape_cast %14 : vector<8xf32> to vector<8x1xf32>
    %16 = tpu.reciprocal %15 {approx = true} : vector<8x1xf32> -> vector<8x1xf32>
    %17 = vector.broadcast %16 : vector<8x1xf32> to vector<8x8xf32>
    %18 = arith.mulf %13, %17 : vector<8x8xf32>
    %c0_8 = arith.constant 0 : index
    %c0_9 = arith.constant 0 : index
    %c0_10 = arith.constant 0 : index
    %19 = vector.load %arg3[%c0_8, %c0_9, %c0_10] : memref<1x8x128xf32, #tpu.memory_space<vmem>>, vector<1x8x128xf32>
    %20 = vector.shape_cast %19 : vector<1x8x128xf32> to vector<8x128xf32>
    %21 = arith.truncf %18 : vector<8x8xf32> to vector<8x8xbf16>
    %22 = arith.truncf %20 : vector<8x128xf32> to vector<8x128xbf16>
    %cst_11 = arith.constant dense<0.000000e+00> : vector<8x128xf32>
    %23 = tpu.matmul %21, %22, %cst_11 {dimension_numbers = #tpu.dot_dimension_numbers<[1], [0], [0], [1], [0, 0, 1, 1], [], []>} : vector<8x8xbf16>, vector<8x128xbf16>, vector<8x128xf32> -> vector<8x128xf32>
    %c0_12 = arith.constant 0 : index
    %c0_13 = arith.constant 0 : index
    %c0_14 = arith.constant 0 : index
    %24 = vector.load %arg4[%c0_12, %c0_13, %c0_14] : memref<1x8x128xf32, #tpu.memory_space<vmem>>, vector<1x8x128xf32>
    %25 = vector.shape_cast %24 : vector<1x8x128xf32> to vector<8x128xf32>
    %26 = arith.addf %23, %25 : vector<8x128xf32>
    %c0_15 = arith.constant 0 : index
    %c0_16 = arith.constant 0 : index
    %27 = vector.load %arg5[%c0_15, %c0_16] : memref<8x1xf32, #tpu.memory_space<vmem>>, vector<8x1xf32>
    %c0_17 = arith.constant 0 : index
    %c0_18 = arith.constant 0 : index
    %28 = vector.load %arg6[%c0_17, %c0_18] : memref<8x1xf32, #tpu.memory_space<vmem>>, vector<8x1xf32>
    %29 = vector.shape_cast %26 : vector<8x128xf32> to vector<1x8x128xf32>
    %cst_19 = arith.constant dense<0.000000e+00> : vector<1xf32>
    %30 = vector.multi_reduction <add>, %29, %cst_19 [1, 2] : vector<1x8x128xf32> to vector<1xf32>
    %31 = vector.shape_cast %30 : vector<1xf32> to vector<1x1x1xf32>
    %32 = vector.extract %31[0, 0, 0] : f32 from vector<1x1x1xf32>
    %33 = vector.broadcast %32 : f32 to vector<1x1xf32>
    %cst_20 = arith.constant 1.024000e+03 : f32
    %34 = vector.broadcast %cst_20 : f32 to vector<1x1xf32>
    %35 = arith.divf %33, %34 : vector<1x1xf32>
    %36 = vector.broadcast %35 : vector<1x1xf32> to vector<8x128xf32>
    %37 = arith.subf %26, %36 : vector<8x128xf32>
    %38 = arith.mulf %37, %37 : vector<8x128xf32>
    %39 = vector.shape_cast %38 : vector<8x128xf32> to vector<1x8x128xf32>
    %cst_21 = arith.constant dense<0.000000e+00> : vector<1xf32>
    %40 = vector.multi_reduction <add>, %39, %cst_21 [1, 2] : vector<1x8x128xf32> to vector<1xf32>
    %41 = vector.shape_cast %40 : vector<1xf32> to vector<1x1x1xf32>
    %42 = vector.extract %41[0, 0, 0] : f32 from vector<1x1x1xf32>
    %43 = vector.broadcast %42 : f32 to vector<1x1xf32>
    %cst_22 = arith.constant 1.024000e+03 : f32
    %44 = vector.broadcast %cst_22 : f32 to vector<1x1xf32>
    %45 = arith.divf %43, %44 : vector<1x1xf32>
    %46 = vector.broadcast %35 : vector<1x1xf32> to vector<8x128xf32>
    %47 = arith.subf %26, %46 : vector<8x128xf32>
    %cst_23 = arith.constant 9.99999993E-9 : f32
    %48 = vector.broadcast %cst_23 : f32 to vector<1x1xf32>
    %49 = arith.addf %45, %48 : vector<1x1xf32>
    %50 = math.rsqrt %49 : vector<1x1xf32>
    %51 = vector.broadcast %50 : vector<1x1xf32> to vector<8x128xf32>
    %52 = arith.mulf %47, %51 : vector<8x128xf32>
    %53 = vector.broadcast %27 : vector<8x1xf32> to vector<8x128xf32>
    %54 = arith.mulf %52, %53 : vector<8x128xf32>
    %55 = vector.broadcast %28 : vector<8x1xf32> to vector<8x128xf32>
    %56 = arith.addf %54, %55 : vector<8x128xf32>
    %c0_24 = arith.constant 0 : index
    %c0_25 = arith.constant 0 : index
    %c0_26 = arith.constant 0 : index
    %57 = vector.load %arg7[%c0_24, %c0_25, %c0_26] : memref<1x8x128xf32, #tpu.memory_space<vmem>>, vector<1x8x128xf32>
    %58 = vector.shape_cast %57 : vector<1x8x128xf32> to vector<8x128xf32>
    %59 = vector.shape_cast %56 : vector<8x128xf32> to vector<1x8x128xf32>
    tpu.vector_store %arg7[%c0_24, %c0_25, %c0_26], %59 {strides = array<i32>} : memref<1x8x128xf32, #tpu.memory_space<vmem>>, vector<1x8x128xf32>,
    return
  }
  func.func @transform_0(%arg0: i32) -> (i32, i32, i32) {
    %c0_i32 = arith.constant 0 : i32
    %c0_i32_0 = arith.constant 0 : i32
    %c0_i32_1 = arith.constant 0 : i32
    return %arg0, %c0_i32, %c0_i32_0 : i32, i32, i32
  }
  func.func @transform_1(%arg0: i32) -> (i32, i32, i32) {
    %c0_i32 = arith.constant 0 : i32
    %c0_i32_0 = arith.constant 0 : i32
    %c0_i32_1 = arith.constant 0 : i32
    return %arg0, %c0_i32, %c0_i32_0 : i32, i32, i32
  }
  func.func @transform_2(%arg0: i32) -> (i32, i32, i32) {
    %c0_i32 = arith.constant 0 : i32
    %c0_i32_0 = arith.constant 0 : i32
    %c0_i32_1 = arith.constant 0 : i32
    return %arg0, %c0_i32, %c0_i32_0 : i32, i32, i32
  }
  func.func @transform_3(%arg0: i32) -> (i32, i32, i32) {
    %c0_i32 = arith.constant 0 : i32
    %c0_i32_0 = arith.constant 0 : i32
    %c0_i32_1 = arith.constant 0 : i32
    return %arg0, %c0_i32, %c0_i32_0 : i32, i32, i32
  }
  func.func @transform_4(%arg0: i32) -> (i32, i32) {
    %c0_i32 = arith.constant 0 : i32
    %c0_i32_0 = arith.constant 0 : i32
    %c0_i32_1 = arith.constant 0 : i32
    return %c0_i32, %c0_i32_0 : i32, i32
  }
  func.func @transform_5(%arg0: i32) -> (i32, i32) {
    %c0_i32 = arith.constant 0 : i32
    %c0_i32_0 = arith.constant 0 : i32
    %c0_i32_1 = arith.constant 0 : i32
    return %c0_i32, %c0_i32_0 : i32, i32
  }
  func.func @transform_6(%arg0: i32) -> (i32, i32, i32) {
    %c0_i32 = arith.constant 0 : i32
    %c0_i32_0 = arith.constant 0 : i32
    %c0_i32_1 = arith.constant 0 : i32
    return %arg0, %c0_i32, %c0_i32_0 : i32, i32, i32
  }
}

module attributes {stable_mosaic.version = 11 : i64} {
  func.func @_proj_gn_kernel(%arg0: i32, %arg1: memref<1x32x130xf32, #tpu.memory_space<vmem>>, %arg2: memref<8x96xf32, #tpu.memory_space<vmem>>, %arg3: memref<8x1xf32, #tpu.memory_space<vmem>>, %arg4: memref<8x1xf32, #tpu.memory_space<vmem>>, %arg5: memref<8x1xf32, #tpu.memory_space<vmem>>, %arg6: memref<1x8x128xf32, #tpu.memory_space<vmem>>, %arg7: memref<96x128xf32, #tpu.memory_space<vmem>>) attributes {dimension_semantics = [#tpu.dimension_semantics<parallel>], iteration_bounds = array<i64: 2>, scalar_prefetch = 0 : i64, scratch_operands = 1 : i64, tpu.core_type = #tpu.core_type<tc>, window_params = [{transform_indices = @transform_0, window_bounds = array<i64: 1, 32, 130>}, {pipeline_mode = #tpu.pipeline_mode<synchronous>, transform_indices = @transform_1, window_bounds = array<i64: 8, 96>}, {pipeline_mode = #tpu.pipeline_mode<synchronous>, transform_indices = @transform_2, window_bounds = array<i64: 8, 1>}, {pipeline_mode = #tpu.pipeline_mode<synchronous>, transform_indices = @transform_3, window_bounds = array<i64: 8, 1>}, {pipeline_mode = #tpu.pipeline_mode<synchronous>, transform_indices = @transform_4, window_bounds = array<i64: 8, 1>}, {transform_indices = @transform_5, window_bounds = array<i64: 1, 8, 128>}]} {
    %c0 = arith.constant 0 : index
    %c0_0 = arith.constant 0 : index
    %c0_1 = arith.constant 0 : index
    %0 = vector.load %arg1[%c0, %c0_0, %c0_1] : memref<1x32x130xf32, #tpu.memory_space<vmem>>, vector<1x32x128xf32>
    %1 = vector.shape_cast %0 : vector<1x32x128xf32> to vector<32x128xf32>
    %c0_2 = arith.constant 0 : index
    %c0_3 = arith.constant 0 : index
    %2 = vector.load %arg7[%c0_2, %c0_3] : memref<96x128xf32, #tpu.memory_space<vmem>>, vector<32x128xf32>
    tpu.vector_store %arg7[%c0_2, %c0_3], %1 {strides = array<i32>} : memref<96x128xf32, #tpu.memory_space<vmem>>, vector<32x128xf32>,
    %c0_4 = arith.constant 0 : index
    %c0_5 = arith.constant 0 : index
    %c1 = arith.constant 1 : index
    %3 = vector.load %arg1[%c0_4, %c0_5, %c1] : memref<1x32x130xf32, #tpu.memory_space<vmem>>, vector<1x32x128xf32>
    %4 = vector.shape_cast %3 : vector<1x32x128xf32> to vector<32x128xf32>
    %c32 = arith.constant 32 : index
    %c0_6 = arith.constant 0 : index
    %5 = vector.load %arg7[%c32, %c0_6] : memref<96x128xf32, #tpu.memory_space<vmem>>, vector<32x128xf32>
    tpu.vector_store %arg7[%c32, %c0_6], %4 {strides = array<i32>} : memref<96x128xf32, #tpu.memory_space<vmem>>, vector<32x128xf32>,
    %c0_7 = arith.constant 0 : index
    %c0_8 = arith.constant 0 : index
    %c2 = arith.constant 2 : index
    %6 = vector.load %arg1[%c0_7, %c0_8, %c2] : memref<1x32x130xf32, #tpu.memory_space<vmem>>, vector<1x32x128xf32>
    %7 = vector.shape_cast %6 : vector<1x32x128xf32> to vector<32x128xf32>
    %c64 = arith.constant 64 : index
    %c0_9 = arith.constant 0 : index
    %8 = vector.load %arg7[%c64, %c0_9] : memref<96x128xf32, #tpu.memory_space<vmem>>, vector<32x128xf32>
    tpu.vector_store %arg7[%c64, %c0_9], %7 {strides = array<i32>} : memref<96x128xf32, #tpu.memory_space<vmem>>, vector<32x128xf32>,
    %c0_10 = arith.constant 0 : index
    %c0_11 = arith.constant 0 : index
    %9 = vector.load %arg2[%c0_10, %c0_11] : memref<8x96xf32, #tpu.memory_space<vmem>>, vector<8x96xf32>
    %c0_12 = arith.constant 0 : index
    %c0_13 = arith.constant 0 : index
    %10 = vector.load %arg7[%c0_12, %c0_13] : memref<96x128xf32, #tpu.memory_space<vmem>>, vector<96x128xf32>
    %11 = arith.truncf %9 : vector<8x96xf32> to vector<8x96xbf16>
    %12 = arith.truncf %10 : vector<96x128xf32> to vector<96x128xbf16>
    %cst = arith.constant dense<0.000000e+00> : vector<8x128xf32>
    %13 = tpu.matmul %11, %12, %cst {dimension_numbers = #tpu.dot_dimension_numbers<[1], [0], [0], [1], [0, 0, 1, 1], [], []>} : vector<8x96xbf16>, vector<96x128xbf16>, vector<8x128xf32> -> vector<8x128xf32>
    %c0_14 = arith.constant 0 : index
    %c0_15 = arith.constant 0 : index
    %14 = vector.load %arg3[%c0_14, %c0_15] : memref<8x1xf32, #tpu.memory_space<vmem>>, vector<8x1xf32>
    %15 = vector.broadcast %14 : vector<8x1xf32> to vector<8x128xf32>
    %16 = arith.addf %13, %15 : vector<8x128xf32>
    %c0_16 = arith.constant 0 : index
    %c0_17 = arith.constant 0 : index
    %17 = vector.load %arg4[%c0_16, %c0_17] : memref<8x1xf32, #tpu.memory_space<vmem>>, vector<8x1xf32>
    %c0_18 = arith.constant 0 : index
    %c0_19 = arith.constant 0 : index
    %18 = vector.load %arg5[%c0_18, %c0_19] : memref<8x1xf32, #tpu.memory_space<vmem>>, vector<8x1xf32>
    %19 = vector.shape_cast %16 : vector<8x128xf32> to vector<1x8x128xf32>
    %cst_20 = arith.constant dense<0.000000e+00> : vector<1xf32>
    %20 = vector.multi_reduction <add>, %19, %cst_20 [1, 2] : vector<1x8x128xf32> to vector<1xf32>
    %21 = vector.shape_cast %20 : vector<1xf32> to vector<1x1x1xf32>
    %22 = vector.extract %21[0, 0, 0] : f32 from vector<1x1x1xf32>
    %23 = vector.broadcast %22 : f32 to vector<1x1xf32>
    %cst_21 = arith.constant 1.024000e+03 : f32
    %24 = vector.broadcast %cst_21 : f32 to vector<1x1xf32>
    %25 = arith.divf %23, %24 : vector<1x1xf32>
    %26 = vector.broadcast %25 : vector<1x1xf32> to vector<8x128xf32>
    %27 = arith.subf %16, %26 : vector<8x128xf32>
    %28 = arith.mulf %27, %27 : vector<8x128xf32>
    %29 = vector.shape_cast %28 : vector<8x128xf32> to vector<1x8x128xf32>
    %cst_22 = arith.constant dense<0.000000e+00> : vector<1xf32>
    %30 = vector.multi_reduction <add>, %29, %cst_22 [1, 2] : vector<1x8x128xf32> to vector<1xf32>
    %31 = vector.shape_cast %30 : vector<1xf32> to vector<1x1x1xf32>
    %32 = vector.extract %31[0, 0, 0] : f32 from vector<1x1x1xf32>
    %33 = vector.broadcast %32 : f32 to vector<1x1xf32>
    %cst_23 = arith.constant 1.024000e+03 : f32
    %34 = vector.broadcast %cst_23 : f32 to vector<1x1xf32>
    %35 = arith.divf %33, %34 : vector<1x1xf32>
    %36 = vector.broadcast %25 : vector<1x1xf32> to vector<8x128xf32>
    %37 = arith.subf %16, %36 : vector<8x128xf32>
    %cst_24 = arith.constant 9.99999993E-9 : f32
    %38 = vector.broadcast %cst_24 : f32 to vector<1x1xf32>
    %39 = arith.addf %35, %38 : vector<1x1xf32>
    %40 = math.rsqrt %39 : vector<1x1xf32>
    %41 = vector.broadcast %40 : vector<1x1xf32> to vector<8x128xf32>
    %42 = arith.mulf %37, %41 : vector<8x128xf32>
    %43 = vector.broadcast %17 : vector<8x1xf32> to vector<8x128xf32>
    %44 = arith.mulf %42, %43 : vector<8x128xf32>
    %45 = vector.broadcast %18 : vector<8x1xf32> to vector<8x128xf32>
    %46 = arith.addf %44, %45 : vector<8x128xf32>
    %c0_25 = arith.constant 0 : index
    %c0_26 = arith.constant 0 : index
    %c0_27 = arith.constant 0 : index
    %47 = vector.load %arg6[%c0_25, %c0_26, %c0_27] : memref<1x8x128xf32, #tpu.memory_space<vmem>>, vector<1x8x128xf32>
    %48 = vector.shape_cast %47 : vector<1x8x128xf32> to vector<8x128xf32>
    %49 = vector.shape_cast %46 : vector<8x128xf32> to vector<1x8x128xf32>
    tpu.vector_store %arg6[%c0_25, %c0_26, %c0_27], %49 {strides = array<i32>} : memref<1x8x128xf32, #tpu.memory_space<vmem>>, vector<1x8x128xf32>,
    return
  }
  func.func @transform_0(%arg0: i32) -> (i32, i32, i32) {
    %c0_i32 = arith.constant 0 : i32
    %c0_i32_0 = arith.constant 0 : i32
    %c0_i32_1 = arith.constant 0 : i32
    return %arg0, %c0_i32, %c0_i32_0 : i32, i32, i32
  }
  func.func @transform_1(%arg0: i32) -> (i32, i32) {
    %c0_i32 = arith.constant 0 : i32
    %c0_i32_0 = arith.constant 0 : i32
    %c0_i32_1 = arith.constant 0 : i32
    return %c0_i32, %c0_i32_0 : i32, i32
  }
  func.func @transform_2(%arg0: i32) -> (i32, i32) {
    %c0_i32 = arith.constant 0 : i32
    %c0_i32_0 = arith.constant 0 : i32
    %c0_i32_1 = arith.constant 0 : i32
    return %c0_i32, %c0_i32_0 : i32, i32
  }
  func.func @transform_3(%arg0: i32) -> (i32, i32) {
    %c0_i32 = arith.constant 0 : i32
    %c0_i32_0 = arith.constant 0 : i32
    %c0_i32_1 = arith.constant 0 : i32
    return %c0_i32, %c0_i32_0 : i32, i32
  }
  func.func @transform_4(%arg0: i32) -> (i32, i32) {
    %c0_i32 = arith.constant 0 : i32
    %c0_i32_0 = arith.constant 0 : i32
    %c0_i32_1 = arith.constant 0 : i32
    return %c0_i32, %c0_i32_0 : i32, i32
  }
  func.func @transform_5(%arg0: i32) -> (i32, i32, i32) {
    %c0_i32 = arith.constant 0 : i32
    %c0_i32_0 = arith.constant 0 : i32
    %c0_i32_1 = arith.constant 0 : i32
    return %arg0, %c0_i32, %c0_i32_0 : i32, i32, i32
  }
}

module attributes {stable_mosaic.version = 11 : i64} {
  func.func @_prelu_pw_kernel(%arg0: i32, %arg1: memref<1x8x128xf32, #tpu.memory_space<vmem>>, %arg2: memref<1x1xf32, #tpu.memory_space<vmem>>, %arg3: memref<8x8xf32, #tpu.memory_space<vmem>>, %arg4: memref<8x1xf32, #tpu.memory_space<vmem>>, %arg5: memref<1x8x128xf32, #tpu.memory_space<vmem>>) attributes {dimension_semantics = [#tpu.dimension_semantics<parallel>], iteration_bounds = array<i64: 2>, scalar_prefetch = 0 : i64, scratch_operands = 0 : i64, tpu.core_type = #tpu.core_type<tc>, window_params = [{transform_indices = @transform_0, window_bounds = array<i64: 1, 8, 128>}, {pipeline_mode = #tpu.pipeline_mode<synchronous>, transform_indices = @transform_1, window_bounds = array<i64: 1, 1>}, {pipeline_mode = #tpu.pipeline_mode<synchronous>, transform_indices = @transform_2, window_bounds = array<i64: 8, 8>}, {pipeline_mode = #tpu.pipeline_mode<synchronous>, transform_indices = @transform_3, window_bounds = array<i64: 8, 1>}, {transform_indices = @transform_4, window_bounds = array<i64: 1, 8, 128>}]} {
    %c0 = arith.constant 0 : index
    %c0_0 = arith.constant 0 : index
    %0 = vector.load %arg3[%c0, %c0_0] : memref<8x8xf32, #tpu.memory_space<vmem>>, vector<8x8xf32>
    %c0_1 = arith.constant 0 : index
    %c0_2 = arith.constant 0 : index
    %c0_3 = arith.constant 0 : index
    %1 = vector.load %arg1[%c0_1, %c0_2, %c0_3] : memref<1x8x128xf32, #tpu.memory_space<vmem>>, vector<1x8x128xf32>
    %2 = vector.shape_cast %1 : vector<1x8x128xf32> to vector<8x128xf32>
    %c0_4 = arith.constant 0 : index
    %c0_5 = arith.constant 0 : index
    %3 = vector.load %arg2[%c0_4, %c0_5] : memref<1x1xf32, #tpu.memory_space<vmem>>, vector<1x1xf32>
    %cst = arith.constant 0.000000e+00 : f32
    %4 = vector.broadcast %cst : f32 to vector<8x128xf32>
    %5 = arith.cmpf oge, %2, %4 : vector<8x128xf32>
    %6 = vector.broadcast %3 : vector<1x1xf32> to vector<8x128xf32>
    %7 = arith.mulf %6, %2 : vector<8x128xf32>
    %8 = arith.select %5, %2, %7 : vector<8x128xi1>, vector<8x128xf32>
    %9 = arith.truncf %0 : vector<8x8xf32> to vector<8x8xbf16>
    %10 = arith.truncf %8 : vector<8x128xf32> to vector<8x128xbf16>
    %cst_6 = arith.constant dense<0.000000e+00> : vector<8x128xf32>
    %11 = tpu.matmul %9, %10, %cst_6 {dimension_numbers = #tpu.dot_dimension_numbers<[1], [0], [0], [1], [0, 0, 1, 1], [], []>} : vector<8x8xbf16>, vector<8x128xbf16>, vector<8x128xf32> -> vector<8x128xf32>
    %c0_7 = arith.constant 0 : index
    %c0_8 = arith.constant 0 : index
    %12 = vector.load %arg4[%c0_7, %c0_8] : memref<8x1xf32, #tpu.memory_space<vmem>>, vector<8x1xf32>
    %13 = vector.broadcast %12 : vector<8x1xf32> to vector<8x128xf32>
    %14 = arith.addf %11, %13 : vector<8x128xf32>
    %c0_9 = arith.constant 0 : index
    %c0_10 = arith.constant 0 : index
    %c0_11 = arith.constant 0 : index
    %15 = vector.load %arg5[%c0_9, %c0_10, %c0_11] : memref<1x8x128xf32, #tpu.memory_space<vmem>>, vector<1x8x128xf32>
    %16 = vector.shape_cast %15 : vector<1x8x128xf32> to vector<8x128xf32>
    %17 = vector.shape_cast %14 : vector<8x128xf32> to vector<1x8x128xf32>
    tpu.vector_store %arg5[%c0_9, %c0_10, %c0_11], %17 {strides = array<i32>} : memref<1x8x128xf32, #tpu.memory_space<vmem>>, vector<1x8x128xf32>,
    return
  }
  func.func @transform_0(%arg0: i32) -> (i32, i32, i32) {
    %c0_i32 = arith.constant 0 : i32
    %c0_i32_0 = arith.constant 0 : i32
    %c0_i32_1 = arith.constant 0 : i32
    return %arg0, %c0_i32, %c0_i32_0 : i32, i32, i32
  }
  func.func @transform_1(%arg0: i32) -> (i32, i32) {
    %c0_i32 = arith.constant 0 : i32
    %c0_i32_0 = arith.constant 0 : i32
    %c0_i32_1 = arith.constant 0 : i32
    return %c0_i32, %c0_i32_0 : i32, i32
  }
  func.func @transform_2(%arg0: i32) -> (i32, i32) {
    %c0_i32 = arith.constant 0 : i32
    %c0_i32_0 = arith.constant 0 : i32
    %c0_i32_1 = arith.constant 0 : i32
    return %c0_i32, %c0_i32_0 : i32, i32
  }
  func.func @transform_3(%arg0: i32) -> (i32, i32) {
    %c0_i32 = arith.constant 0 : i32
    %c0_i32_0 = arith.constant 0 : i32
    %c0_i32_1 = arith.constant 0 : i32
    return %c0_i32, %c0_i32_0 : i32, i32
  }
  func.func @transform_4(%arg0: i32) -> (i32, i32, i32) {
    %c0_i32 = arith.constant 0 : i32
    %c0_i32_0 = arith.constant 0 : i32
    %c0_i32_1 = arith.constant 0 : i32
    return %arg0, %c0_i32, %c0_i32_0 : i32, i32, i32
  }
}

</mosaic_0001>

<bundles_post_ra>
// kernel: tcn_forward.27
= control target key start
LH: loop header
LB: loop body
LE: loop exit
PB: predicated region body
PF: predicated region fallthrough
CT: control target
= control target key end

     0   :  { %s453_s18 = smov 0   ;;  %s489_s0 = inlined_call_operand.vmem [shape: f32[2,8,128], index: 0, kind: input, shape index: {}]   ;;  %s490_s1 = inlined_call_operand.vmem [shape: f32[8,1], index: 1, kind: input, shape index: {}]   ;;  %s491_s2 = inlined_call_operand.vmem [shape: f32[8,1], index: 2, kind: input, shape index: {}]   ;;  %s492_s3 = inlined_call_operand.vmem [shape: f32[8,8], index: 3, kind: input, shape index: {}]   ;;  %s493_s4 = inlined_call_operand.vmem [shape: f32[8,1], index: 4, kind: input, shape index: {}]   ;;  %s494_s5 = inlined_call_operand.vmem [shape: f32[2,8,128], index: 5, kind: output, shape index: {}]  }
   0x1 LB: > { %s375_s19 = sadd.s32 4294967295, %s418_s18   ;;  %p379_p0 = scmp.ge.s32.totalorder %s418_s18, 1  ;;  %s418_s18 = sphi %s453_s18, %s15_s18  }
   0x2   : > { %p186_p1 = scmp.lt.s32.totalorder %s418_s18, 3 }
   0x4   : > { %p187_p2 = pnand %p379_p0, %p186_p1 }
   0x5   : > { %p212_p3 = scmp.lt.s32.totalorder (!%p187_p2), %s375_s19, 1 }
   0x6   : > { %190 = sbr.rel (%p187_p2) target bundleno = 652 (0x28c), region = 40 }
   0xb   : > { %s496_s19 = smov (!%p212_p3, %s375_s19), 1  ;;  %v222_v1 = vld [vmem:[%s490_s1] sm:$0xff]  ;;  %v420_v2 = vmov 0   ;;  %v421_v15 = vmov 0.0   ;;  %vm422_vm0 = vmmov 0   ;;  %vm277_vm1 = vcmask 1043456  }
   0xc   : > { %s380_s20 = sshll.u32 %s496_s19, 3  ;;  %408 = vset.pattern.permute.xlu1 %v420_v2  ;;  %409 = vset.pattern.permute.xlu0 %v420_v2  ;;  %v223_v3 = vld [vmem:[%s491_s2] sm:$0xff]  ;;  %vm273_vm2 = vcmask 64512  }
   0xd   : > { %s215_s23 = scalar_lea.vmem %s489_s0, %s380_s20  ;;  %254 = vperm.xlu1 %408, %v222_v1   ;;  %387 = vmatprep.subr.bf16.mxu0 %v421_v15  ;;  %v267_v16 = vld [vmem:[%s493_s4] sm:$0xff]  ;;  %s219_s11 = scalar_lea.vmem %s494_s5, %s380_s20 }
   0xe   : > { %v221_v0 = vld [vmem:[%s215_s23] sm:$0xff]  ;;  %389 = vmatprep.mubr.msk.bf16.mxu0 %vm422_vm0, %v421_v15 }
   0xf   : > { %224 = vadd.xlane.f32.xlu0 %v221_v0  ;;  %v264_v33 = vld [vmem:[%s492_s3] sm:$0xff] }
  0x10   : > { %v265_v36 = vpack.c.bf16 %v264_v33, %v264_v33 }
  0x11   : > { %260 = vperm.xlu1 %408, %v223_v3  }
  0x88   : > { %v255_v27 = vpop.permute.xlu1 %254 }
  0x8c   : > { %v261_v31 = vpop.permute.xlu1 %260 }
  0x98   : > { %v225_v4 = vpop.xlane.xlu0 %224 }
  0x99   : > { %v226_v5 = vrot.slane %v225_v4, 4 }
  0x9b   : > { %v227_v6 = vadd.f32 %v226_v5, %v225_v4 }
  0x9d   : > { %v228_v7 = vrot.slane %v227_v6, 2 }
  0x9f   : > { %v229_v8 = vadd.f32 %v228_v7, %v227_v6 }
  0xa1   : > { %v230_v9 = vrot.slane %v229_v8, 1 }
  0xa3   : > { %v231_v10 = vadd.f32 %v230_v9, %v229_v8 }
  0xa5   : > { %393 = vpush %v231_v10 }
  0xd6   : > { %s394_s28 = spop %393 }
  0xd7   : > { %v233_v11 = vstv %s394_s28 }
  0xd8   : > { %v235_v12 = vmul.f32 0.0009765625, %v233_v11 }
  0xda   : > { %v236_v13 = vsub.f32 %v221_v0, %v235_v12 }
  0xdc   : > { %v237_v14 = vmul.f32 %v236_v13, %v236_v13 }
  0xde   : > { %238 = vadd.xlane.f32.xlu0 %v237_v14 }
  0xf4   : > { %270 = vperm.xlu0 %409, %v267_v16  }
 0x167   : > { %v239_v17 = vpop.xlane.xlu0 %238 }
 0x168   : > { %v240_v18 = vrot.slane %v239_v17, 4 }
 0x16a   : > { %v241_v19 = vadd.f32 %v240_v18, %v239_v17 }
 0x16c   : > { %v242_v20 = vrot.slane %v241_v19, 2 }
 0x16e   : > { %v243_v21 = vadd.f32 %v242_v20, %v241_v19 }
 0x16f   : > { %v271_v37 = vpop.permute.xlu0 %270 }
 0x170   : > { %v244_v22 = vrot.slane %v243_v21, 1 }
 0x172   : > { %v245_v23 = vadd.f32 %v244_v22, %v243_v21 }
 0x174   : > { %395 = vpush %v245_v23 }
 0x1a5   : > { %s396_s6 = spop %395 }
 0x1a6   : > { %v247_v24 = vstv %s396_s6 }
 0x1a7   : > { %v248_v25 = vmul.f32 0.0009765625, %v247_v24 }
 0x1a9   : > { %v249_v26 = vadd.f32 1e-08, %v248_v25 }
 0x1ab   : > { %410 = vrsqrt.f32 %v249_v26 }
 0x1b8   : > { %v411_v28 = vpop.eup %410 }
 0x1b9   : > { %v251_v29 = vmul.f32 %v411_v28, %v236_v13 }
 0x1bb   : > { %v257_v30 = vmul.f32 %v255_v27, %v251_v29 }
 0x1bd   : > { %v263_v32 = vadd.f32 %v261_v31, %v257_v30 }
 0x1bf   : > { %v266_v34 = vpack.c.bf16 %v263_v32, %v263_v32 }
 0x1c1   : > { %v279_v35 = vsel %vm277_vm1, %v266_v34, 0 }
 0x1c2   : > { %388 = vmatpush3.bf16.msra.mxu0 %v279_v35 }
 0x1c5   : > { %390 = vmatmul.mubr.msk.bf16.vlgmr.msra.gmra.mxu0 %vm273_vm2, %v265_v36 }
 0x285   : > { %v315_v38 = vpop.f32.mrf.mxu0 }
 0x286   : > { %v316_v39 = vadd.f32 %v315_v38, %v271_v37 }
 0x287   : > { %v391_v40 = vpop.f32.mrf.mxu0 }
 0x288   : > { %321 = vst [vmem:[%s219_s11] sm:$0xff] %v316_v39 }
 0x289   : > { %v318_v41 = vpop.f32.mrf.mxu0 }
 0x28b   : > { %v392_v42 = vpop.f32.mrf.mxu0 }
 0x28c PF: > { %s15_s18 = sadd.s32 1, %s418_s18  }
 0x28d   : > { %p12_p4 = scmp.ge.s32.totalorder %s15_s18, 4  }
 0x28f   :  { %14 = sbr.rel (!%p12_p4) target bundleno = 1 (0x1), region = 70 }

// kernel: tcn_forward.29
= control target key start
LH: loop header
LB: loop body
LE: loop exit
PB: predicated region body
PF: predicated region fallthrough
CT: control target
= control target key end

     0   :  { %s1312_s28 = smov 0   ;;  %s1431_s0 = inlined_call_operand.vmem [shape: f32[2,8,128], index: 0, kind: input, shape index: {}, may-alias: {0,16}]   ;;  %s1432_s1 = inlined_call_operand.vmem [shape: f32[2,8,128], index: 1, kind: input, shape index: {}, may-alias: {1,17}]   ;;  %s1433_s2 = inlined_call_operand.vmem [shape: f32[16,8], index: 2, kind: input, shape index: {}]   ;;  %s1434_s3 = inlined_call_operand.vmem [shape: f32[16,1], index: 3, kind: input, shape index: {}]   ;;  %s1435_s4 = inlined_call_operand.<no memory space> [shape: f32[1,1], index: 4, kind: input, shape index: {}]   ;;  %s1436_s5 = inlined_call_operand.vmem [shape: f32[16,1], index: 5, kind: input, shape index: {}]   ;;  %s1437_s6 = inlined_call_operand.vmem [shape: f32[16,1], index: 6, kind: input, shape index: {}]   ;;  %s1438_s7 = inlined_call_operand.vmem [shape: f32[3,16,1], index: 7, kind: input, shape index: {}]   ;;  %s1439_s8 = inlined_call_operand.vmem [shape: f32[16,1], index: 8, kind: input, shape index: {}]   ;;  %s1440_s10 = inlined_call_operand.vmem [shape: f32[16,1], index: 10, kind: input, shape index: {}]   ;;  %s1441_s11 = inlined_call_operand.vmem [shape: f32[16,1], index: 11, kind: input, shape index: {}]   ;;  %s1442_s12 = inlined_call_operand.vmem [shape: f32[8,16], index: 12, kind: input, shape index: {}]   ;;  %s1443_s13 = inlined_call_operand.vmem [shape: f32[8,1], index: 13, kind: input, shape index: {}]   ;;  %s1444_s14 = inlined_call_operand.vmem [shape: f32[8,16], index: 14, kind: input, shape index: {}]   ;;  %s1445_s15 = inlined_call_operand.vmem [shape: f32[8,1], index: 15, kind: input, shape index: {}]   ;;  %s1446_s16 = inlined_call_operand.vmem [shape: f32[2,8,128], index: 16, kind: output, shape index: {0}, may-alias: {0,16}]   ;;  %s1447_s17 = inlined_call_operand.vmem [shape: f32[2,8,128], index: 17, kind: output, shape index: {1}, may-alias: {1,17}]   ;;  %s1448_s9 = inlined_call_operand.<no memory space> [shape: f32[1,1], index: 9, kind: input, shape index: {}]  }
   0x1   :  { %1449 = sst [smem:[#allocation5_spill]] %s1431_s0  ;;  %v23_v0 = vstv %s1435_s4  ;;  %v25_v1 = vstv %s1448_s9 }
   0x2   :  { %1450 = sst [smem:[#allocation6_spill]] %s1432_s1  ;;  %24 = vst [vmem:[#allocation3] sm:$0x1] %v23_v0  ;;  %26 = vst [vmem:[#allocation4] sm:$0x1] %v25_v1 }
   0x3 LB: > { %s1130_s29 = sadd.s32 4294967295, %s1208_s28   ;;  %p1134_p0 = scmp.ge.s32.totalorder %s1208_s28, 1  ;;  %s1208_s28 = sphi %s1312_s28, %s32_s28  }
   0x4   : > { %p502_p1 = scmp.lt.s32.totalorder %s1208_s28, 3 }
   0x6   : > { %p503_p2 = pnand %p1134_p0, %p502_p1 }
   0x7   : > { %p560_p3 = scmp.lt.s32.totalorder (!%p503_p2), %s1130_s29, 1  ;;  %s1451_s20 = sld [smem:[#allocation5_spill]] (!%p503_p2) }
   0x8   : > { %506 = sbr.rel (%p503_p2) target bundleno = 1564 (0x61c), region = 84  ;;  %s1214_s23 = smov (!%p503_p2), 126  }
   0x9   : > { %s1215_s24 = smov (!%p503_p2), 124  }
   0xd   : > { %v1210_v2 = vmov 0.0   ;;  %vm1211_vm0 = vmmov 0   ;;  %v582_v3 = vld [vmem:[%s1434_s3] sm:$0xff]  ;;  %s1454_s29 = smov (!%p560_p3, %s1130_s29), 1  ;;  %v1212_v5 = vmov 0   ;;  %v583_v6 = vld [vmem:[%s1434_s3 + $0x8] sm:$0xff] }
   0xe   : > { %1156 = vmatprep.subr.bf16.mxu0 %v1210_v2  ;;  %659 = vst [vmem:[#allocation2] sm:$0xff] %v1210_v2  ;;  %662 = vst [vmem:[#allocation2 + $0x10] sm:$0xff] %v1210_v2  ;;  %1158 = vmatprep.mubr.msk.bf16.mxu0 %vm1211_vm0, %v1210_v2  ;;  %v1140_v4 = vld [vmem:[#allocation3] ss:$0 sm:$0xff]  ;;  %s1328_s0 = sshll.u32 %s1454_s29, 3  ;;  %vm598_vm1 = vcmask 1043456  }
   0xf   : > { %1196 = vset.pattern.permute.xlu0 %v1212_v5  ;;  %1197 = vset.pattern.permute.xlu1 %v1212_v5  ;;  %s563_s21 = scalar_lea.vmem %s1451_s20, %s1328_s0  ;;  %v578_v8 = vld [vmem:[%s1433_s2] sm:$0xff]  ;;  %v579_v9 = vld [vmem:[%s1433_s2 + $0x8] sm:$0xff]  ;;  %vm594_vm2 = vcmask 64512   ;;  %vm660_vm5 = vcmask 31744   ;;  %vm733_vm6 = vcmask 1047568   ;;  %vm735_vm7 = vcmask 15360   ;;  %s571_s1 = scalar_lea.vmem %s1446_s16, %s1328_s0 }
  0x10   : > { %586 = vperm.xlu0 %1196, %v582_v3   ;;  %652 = vperm.xlu1 %1197, %v1140_v4   ;;  %v1340_v7 = vld [vmem:[%s563_s21] sm:$0xff]  ;;  %v580_v12 = vpack.c.bf16 %v579_v9, %v578_v8  ;;  %v665_v27 = vld [vmem:[%s1436_s5 + $0x8] sm:$0xff]  ;;  %663 = vst.msk [vmem:[#allocation2 + $0x18] sm:$0xff] %vm660_vm5, %v1210_v2  ;;  %661 = vst.msk [vmem:[#allocation2 + $0x8] sm:$0xff] %vm660_vm5, %v1210_v2  ;;  %s1213_s21 = smov 2   ;;  %vm804_vm8 = vcmask 1031168   ;;  %s575_s22 = scalar_lea.vmem %s1447_s17, %s1328_s0 }
  0x11   : > { %1162 = vmatprep.subr.bf16.mxu1 %v1210_v2  ;;  %1164 = vmatprep.mubr.msk.bf16.mxu1 %vm1211_vm0, %v1210_v2  ;;  %v581_v10 = vpack.c.bf16 %v1340_v7, %v1340_v7  ;;  %v666_v28 = vld [vmem:[%s1437_s6] sm:$0xff]  ;;  %v667_v44 = vld [vmem:[%s1437_s6 + $0x8] sm:$0xff]  ;;  %v1141_v3 = vld [vmem:[%s1438_s7 + $0x10] sm:$0xff]  ;;  %vm840_vm9 = vcmask 1014784   ;;  %vm926_vm12 = vcmask 130048  }
  0x12   : > { %v664_v43 = vld [vmem:[%s1436_s5] sm:$0xff]  ;;  %v1144_v4 = vld [vmem:[%s1438_s7 + $0x28] sm:$0xff] }
  0x13   : > { %v600_v11 = vsel %vm598_vm1, %v581_v10, 0  ;;  %v1143_v5 = vld [vmem:[%s1438_s7 + $0x20] sm:$0xff]  ;;  %v740_v9 = vld [vmem:[%s1439_s8 + $0x8] sm:$0xff] }
  0x14   : > { %591 = vperm.xlu0 %1196, %v583_v6   ;;  %1157 = vmatpush3.bf16.msra.mxu0 %v600_v11  ;;  %v754_v6 = vld [vmem:[%s1438_s7 + $0x8] sm:$0xff]  ;;  %v753_v8 = vld [vmem:[%s1438_s7] sm:$0xff] }
  0x15   : > { %1168 = vmatprep.subr.bf16.mxu0 %v1210_v2  ;;  %v739_v10 = vld [vmem:[%s1439_s8] sm:$0xff] }
  0x16   : > { %v1145_v11 = vld [vmem:[#allocation4] ss:$0 sm:$0xff] }
  0x17   : > { %1159 = vmatmul.mubr.msk.bf16.vlgmr.msra.gmra.mxu0 %vm594_vm2, %v580_v12 }
  0x18   : > { %1170 = vmatprep.mubr.msk.bf16.mxu0 %vm1211_vm0, %v1210_v2  ;;  %v1142_v2 = vld [vmem:[%s1438_s7 + $0x18] sm:$0xff] }
  0x8b   : > { %v587_v13 = vpop.permute.xlu0 %586  ;;  %v653_v16 = vpop.permute.xlu1 %652 }
  0x8f   : > { %v592_v18 = vpop.permute.xlu0 %591 }
  0xd7   : > { %v636_v14 = vpop.f32.mrf.mxu0 }
  0xd8   : > { %v637_v15 = vadd.f32 %v636_v14, %v587_v13 }
  0xd9   : > { %v1160_v17 = vpop.f32.mrf.mxu0 }
  0xda   : > { %v655_v20 = vmul.f32 %v653_v16, %v637_v15  ;;  %vm644_vm3 = vcmp.ge.f32.partialorder %v637_v15, 0.0 }
  0xdb   : > { %v639_v19 = vpop.f32.mrf.mxu0 }
  0xdc   : > { %v640_v21 = vadd.f32 %v639_v19, %v592_v18  ;;  %v657_v24 = vsel %vm644_vm3, %v637_v15, %v655_v20 }
  0xdd   : > { %v1161_v22 = vpop.f32.mrf.mxu0 }
  0xde   : > { %v656_v23 = vmul.f32 %v653_v16, %v640_v21  ;;  %vm645_vm4 = vcmp.ge.f32.partialorder %v640_v21, 0.0 }
  0xe0   : > { %v658_v25 = vsel %vm645_vm4, %v640_v21, %v656_v23 }
  0xe1   : > { %v668_v26 = vadd.f32 %v658_v25, %v657_v24 }
  0xe3   : > { %669 = vadd.xlane.f32.xlu1 %v668_v26 }
  0xf4   : > { %708 = vperm.xlu1 %1197, %v665_v27  }
  0xf8   : > { %715 = vperm.xlu1 %1197, %v666_v28  }
 0x16c   : > { %v670_v29 = vpop.xlane.xlu1 %669 }
 0x16d   : > { %v671_v30 = vrot.slane %v670_v29, 4 }
 0x16f   : > { %v672_v31 = vadd.f32 %v671_v30, %v670_v29 }
 0x170   : > { %v709_v55 = vpop.permute.xlu1 %708 }
 0x171   : > { %v673_v32 = vrot.slane %v672_v31, 2 }
 0x173   : > { %v674_v33 = vadd.f32 %v673_v32, %v672_v31 }
 0x174   : > { %v716_v62 = vpop.permute.xlu1 %715 }
 0x175   : > { %v675_v34 = vrot.slane %v674_v33, 1 }
 0x177   : > { %v676_v35 = vadd.f32 %v675_v34, %v674_v33 }
 0x179   : > { %1174 = vpush %v676_v35 }
 0x1aa   : > { %s1175_s9 = spop %1174 }
 0x1ab   : > { %v678_v36 = vstv %s1175_s9  ;;  %s1452_s9 = sld [smem:[#allocation6_spill]] }
 0x1ac   : > { %v680_v37 = vmul.f32 0.00048828125, %v678_v36 }
 0x1ae   : > { %v681_v38 = vsub.f32 %v657_v24, %v680_v37  ;;  %v682_v39 = vsub.f32 %v658_v25, %v680_v37 }
 0x1b0   : > { %v683_v40 = vmul.f32 %v681_v38, %v681_v38  ;;  %v684_v41 = vmul.f32 %v682_v39, %v682_v39 }
 0x1b2   : > { %v685_v42 = vadd.f32 %v684_v41, %v683_v40 }
 0x1b4   : > { %686 = vadd.xlane.f32.xlu0 %v685_v42 }
 0x1ca   : > { %703 = vperm.xlu0 %1196, %v664_v43  }
 0x1ce   : > { %720 = vperm.xlu0 %1196, %v667_v44  }
 0x23d   : > { %v687_v45 = vpop.xlane.xlu0 %686 }
 0x23e   : > { %v688_v46 = vrot.slane %v687_v45, 4 }
 0x240   : > { %v689_v47 = vadd.f32 %v688_v46, %v687_v45 }
 0x242   : > { %v690_v48 = vrot.slane %v689_v47, 2 }
 0x244   : > { %v691_v49 = vadd.f32 %v690_v48, %v689_v47 }
 0x245   : > { %v704_v56 = vpop.permute.xlu0 %703 }
 0x246   : > { %v692_v50 = vrot.slane %v691_v49, 1 }
 0x248   : > { %v693_v51 = vadd.f32 %v692_v50, %v691_v49 }
 0x249   : > { %v721_v63 = vpop.permute.xlu0 %720 }
 0x24a   : > { %1176 = vpush %v693_v51 }
 0x27b   : > { %s1177_s20 = spop %1176 }
 0x27c   : > { %v695_v52 = vstv %s1177_s20 }
 0x27d   : > { %v696_v53 = vmul.f32 0.00048828125, %v695_v52 }
 0x27f   : > { %v697_v54 = vadd.f32 1e-08, %v696_v53 }
 0x281   : > { %1198 = vrsqrt.f32 %v697_v54 }
 0x28e   : > { %v1199_v57 = vpop.eup %1198 }
 0x28f   : > { %v700_v58 = vmul.f32 %v1199_v57, %v682_v39  ;;  %v699_v59 = vmul.f32 %v1199_v57, %v681_v38 }
 0x291   : > { %v712_v60 = vmul.f32 %v709_v55, %v700_v58  ;;  %v711_v61 = vmul.f32 %v704_v56, %v699_v59 }
 0x293   : > { %v724_v0 = vadd.f32 %v721_v63, %v712_v60  ;;  %v723_v1 = vadd.f32 %v716_v62, %v711_v61  ;;  %v863_v60 = vld [vmem:[%s1440_s10] sm:$0xff] }
 0x294   : > { %v865_v61 = vld [vmem:[%s1441_s11] sm:$0xff] }
 0x295   : > { %729 = vrot.lane.b32.xlu0 %v724_v0, %s1213_s21  ;;  %727 = vrot.lane.b32.xlu1 %v723_v1, %s1213_s21  ;;  %v971_v62 = vld [vmem:[%s1443_s13] sm:$0xff] }
 0x299   : > { %785 = vperm.xlu0 %1196, %v1142_v2   ;;  %780 = vperm.xlu1 %1197, %v1141_v3  }
 0x29d   : > { %821 = vperm.xlu0 %1196, %v1144_v4   ;;  %816 = vperm.xlu1 %1197, %v1143_v5  }
 0x2a1   : > { %764 = vperm.xlu0 %1196, %v754_v6   ;;  %759 = vperm.xlu1 %1197, %v753_v8  }
 0x2a5   : > { %748 = vperm.xlu0 %1196, %v740_v9   ;;  %743 = vperm.xlu1 %1197, %v739_v10  }
 0x2a9   : > { %856 = vperm.xlu1 %1197, %v1145_v11  }
 0x307   : > { %v730_v12 = vpop.permute.xlu0 %729  ;;  %v728_v13 = vpop.permute.xlu1 %727 }
 0x308   : > { %737 = vst.msk [vmem:[#allocation2 + $0x10] sm:$0xff] %vm733_vm6, %v730_v12  ;;  %734 = vst.msk [vmem:[#allocation2] sm:$0xff] %vm733_vm6, %v728_v13 }
 0x309   : > { %738 = vst.msk [vmem:[#allocation2 + $0x18] sm:$0xff] %vm735_vm7, %v730_v12  ;;  %736 = vst.msk [vmem:[#allocation2 + $0x8] sm:$0xff] %vm735_vm7, %v728_v13 }
 0x30f   : > { %v774_v14 = vld [vmem:[#allocation2] sm:$0xff]  ;;  %v776_v20 = vld [vmem:[#allocation2 + $0x10] sm:$0xff] }
 0x310   : > { %v775_v15 = vld [vmem:[#allocation2 + $0x8] sm:$0xff]  ;;  %v777_v21 = vld [vmem:[#allocation2 + $0x18] sm:$0xff] }
 0x314   : > { %v781_v16 = vpop.permute.xlu1 %780  ;;  %v786_v19 = vpop.permute.xlu0 %785 }
 0x315   : > { %v788_v17 = vmul.f32 %v781_v16, %v774_v14  ;;  %v789_v18 = vmul.f32 %v781_v16, %v775_v15  ;;  %v790_v22 = vmul.f32 %v786_v19, %v776_v20  ;;  %v791_v23 = vmul.f32 %v786_v19, %v777_v21  ;;  %v1026_v16 = vld [vmem:[%s1445_s15] sm:$0xff] }
 0x317   : > { %798 = vrot.lane.b32.xlu0 %v789_v18, %s1214_s23  ;;  %796 = vrot.lane.b32.xlu1 %v788_v17, %s1214_s23 }
 0x318   : > { %v817_v24 = vpop.permute.xlu1 %816  ;;  %v822_v27 = vpop.permute.xlu0 %821 }
 0x319   : > { %v824_v25 = vmul.f32 %v817_v24, %v774_v14  ;;  %v825_v26 = vmul.f32 %v817_v24, %v775_v15  ;;  %v826_v28 = vmul.f32 %v822_v27, %v776_v20  ;;  %v827_v29 = vmul.f32 %v822_v27, %v777_v21  ;;  %v866_v15 = vld [vmem:[%s1441_s11 + $0x8] sm:$0xff] }
 0x31b   : > { %802 = vrot.lane.b32.xlu0 %v791_v23, %s1214_s23  ;;  %800 = vrot.lane.b32.xlu1 %v790_v22, %s1214_s23 }
 0x31c   : > { %v760_v30 = vpop.permute.xlu1 %759  ;;  %v765_v31 = vpop.permute.xlu0 %764 }
 0x31d   : > { %v767_v37 = vmul.f32 %v774_v14, %v760_v30  ;;  %v768_v42 = vmul.f32 %v776_v20, %v765_v31  ;;  %v864_v14 = vld [vmem:[%s1440_s10 + $0x8] sm:$0xff] }
 0x31f   : > { %834 = vrot.lane.b32.xlu1 %v825_v26, %s1215_s24  ;;  %832 = vrot.lane.b32.xlu0 %v824_v25, %s1215_s24 }
 0x320   : > { %v744_v32 = vpop.permute.xlu1 %743  ;;  %v749_v33 = vpop.permute.xlu0 %748 }
 0x321   : > { %v769_v41 = vadd.f32 %v767_v37, %v744_v32  ;;  %v770_v48 = vadd.f32 %v768_v42, %v749_v33 }
 0x323   : > { %838 = vrot.lane.b32.xlu1 %v827_v29, %s1215_s24  ;;  %836 = vrot.lane.b32.xlu0 %v826_v28, %s1215_s24 }
 0x324   : > { %v857_v34 = vpop.permute.xlu1 %856 }
 0x389   : > { %v799_v35 = vpop.permute.xlu0 %798  ;;  %v797_v36 = vpop.permute.xlu1 %796 }
 0x38a   : > { %v805_v40 = vsel %vm804_vm8, %v797_v36, %v799_v35 }
 0x38b   : > { %v809_v43 = vadd.f32 %v805_v40, %v769_v41 }
 0x38d   : > { %v803_v38 = vpop.permute.xlu0 %802  ;;  %v801_v39 = vpop.permute.xlu1 %800 }
 0x38e   : > { %v806_v46 = vsel %vm804_vm8, %v801_v39, %v803_v38  ;;  %v923_v38 = vld [vmem:[%s1442_s12] sm:$0xff] }
 0x38f   : > { %v810_v50 = vadd.f32 %v806_v46, %v770_v48  ;;  %v980_v39 = vld [vmem:[%s1444_s14] sm:$0xff]  ;;  %v924_v41 = vpack.c.bf16 %v923_v38, %v923_v38 }
 0x390   : > { %v981_v42 = vpack.c.bf16 %v980_v39, %v980_v39 }
 0x391   : > { %v833_v44 = vpop.permute.xlu0 %832  ;;  %v835_v45 = vpop.permute.xlu1 %834 }
 0x392   : > { %v841_v47 = vsel %vm840_vm9, %v833_v44, %v835_v45 }
 0x393   : > { %v845_v49 = vadd.f32 %v841_v47, %v809_v43 }
 0x395   : > { %v837_v51 = vpop.permute.xlu0 %836  ;;  %v839_v52 = vpop.permute.xlu1 %838  ;;  %v859_v55 = vmul.f32 %v857_v34, %v845_v49  ;;  %vm848_vm10 = vcmp.ge.f32.partialorder %v845_v49, 0.0 }
 0x396   : > { %v842_v53 = vsel %vm840_vm9, %v837_v51, %v839_v52 }
 0x397   : > { %v846_v54 = vadd.f32 %v842_v53, %v810_v50  ;;  %v861_v57 = vsel %vm848_vm10, %v845_v49, %v859_v55 }
 0x399   : > { %vm849_vm11 = vcmp.ge.f32.partialorder %v846_v54, 0.0  ;;  %v860_v56 = vmul.f32 %v857_v34, %v846_v54 }
 0x39b   : > { %v862_v58 = vsel %vm849_vm11, %v846_v54, %v860_v56 }
 0x39c   : > { %v867_v59 = vadd.f32 %v862_v58, %v861_v57 }
 0x39e   : > { %868 = vadd.xlane.f32.xlu0 %v867_v59 }
 0x3b4   : > { %901 = vperm.xlu0 %1196, %v863_v60  }
 0x3b8   : > { %913 = vperm.xlu0 %1196, %v865_v61  }
 0x3bc   : > { %974 = vperm.xlu0 %1196, %v971_v62  }
 0x427   : > { %v869_v63 = vpop.xlane.xlu0 %868 }
 0x428   : > { %v870_v0 = vrot.slane %v869_v63, 4 }
 0x42a   : > { %v871_v1 = vadd.f32 %v870_v0, %v869_v63 }
 0x42c   : > { %v872_v2 = vrot.slane %v871_v1, 2 }
 0x42e   : > { %v873_v3 = vadd.f32 %v872_v2, %v871_v1 }
 0x42f   : > { %v902_v27 = vpop.permute.xlu0 %901 }
 0x430   : > { %v874_v4 = vrot.slane %v873_v3, 1 }
 0x432   : > { %v875_v5 = vadd.f32 %v874_v4, %v873_v3 }
 0x433   : > { %v914_v34 = vpop.permute.xlu0 %913 }
 0x434   : > { %1178 = vpush %v875_v5 }
 0x437   : > { %v975_v46 = vpop.permute.xlu0 %974 }
 0x465   : > { %s1179_s30 = spop %1178 }
 0x466   : > { %v877_v6 = vstv %s1179_s30  ;;  %s567_s30 = scalar_lea.vmem %s1452_s9, %s1328_s0 }
 0x467   : > { %v878_v8 = vmul.f32 0.00048828125, %v877_v6  ;;  %v979_v43 = vld [vmem:[%s567_s30] sm:$0xff] }
 0x469   : > { %v879_v9 = vsub.f32 %v861_v57, %v878_v8  ;;  %v880_v10 = vsub.f32 %v862_v58, %v878_v8 }
 0x46b   : > { %v881_v11 = vmul.f32 %v879_v9, %v879_v9  ;;  %v882_v12 = vmul.f32 %v880_v10, %v880_v10 }
 0x46d   : > { %v883_v13 = vadd.f32 %v882_v12, %v881_v11 }
 0x46f   : > { %884 = vadd.xlane.f32.xlu1 %v883_v13 }
 0x480   : > { %906 = vperm.xlu1 %1197, %v864_v14  }
 0x484   : > { %918 = vperm.xlu1 %1197, %v866_v15  }
 0x488   : > { %1029 = vperm.xlu1 %1197, %v1026_v16  }
 0x4f8   : > { %v885_v17 = vpop.xlane.xlu1 %884 }
 0x4f9   : > { %v886_v18 = vrot.slane %v885_v17, 4 }
 0x4fb   : > { %v887_v19 = vadd.f32 %v886_v18, %v885_v17 }
 0x4fc   : > { %v907_v28 = vpop.permute.xlu1 %906 }
 0x4fd   : > { %v888_v20 = vrot.slane %v887_v19, 2 }
 0x4ff   : > { %v889_v21 = vadd.f32 %v888_v20, %v887_v19 }
 0x500   : > { %v919_v35 = vpop.permute.xlu1 %918 }
 0x501   : > { %v890_v22 = vrot.slane %v889_v21, 1 }
 0x503   : > { %v891_v23 = vadd.f32 %v890_v22, %v889_v21 }
 0x504   : > { %v1030_v47 = vpop.permute.xlu1 %1029 }
 0x505   : > { %1180 = vpush %v891_v23 }
 0x536   : > { %s1181_s23 = spop %1180 }
 0x537   : > { %v893_v24 = vstv %s1181_s23 }
 0x538   : > { %v894_v25 = vmul.f32 0.00048828125, %v893_v24 }
 0x53a   : > { %v895_v26 = vadd.f32 1e-08, %v894_v25 }
 0x53c   : > { %1200 = vrsqrt.f32 %v895_v26 }
 0x549   : > { %v1201_v29 = vpop.eup %1200 }
 0x54a   : > { %v897_v30 = vmul.f32 %v1201_v29, %v879_v9  ;;  %v898_v31 = vmul.f32 %v1201_v29, %v880_v10 }
 0x54c   : > { %v909_v32 = vmul.f32 %v902_v27, %v897_v30  ;;  %v910_v33 = vmul.f32 %v907_v28, %v898_v31 }
 0x54e   : > { %v921_v36 = vadd.f32 %v914_v34, %v909_v32  ;;  %v922_v37 = vadd.f32 %v919_v35, %v910_v33 }
 0x550   : > { %v925_v40 = vpack.c.bf16 %v922_v37, %v921_v36 }
 0x552   : > { %1163 = vmatpush3.bf16.msra.mxu1 %v925_v40  ;;  %1169 = vmatpush3.bf16.msra.mxu0 %v925_v40 }
 0x555   : > { %1165 = vmatmul.mubr.msk.bf16.vlgmr.msra.gmra.mxu1 %vm926_vm12, %v924_v41  ;;  %1171 = vmatmul.mubr.msk.bf16.vlgmr.msra.gmra.mxu0 %vm926_vm12, %v981_v42 }
 0x615   : > { %v964_v44 = vpop.f32.mrf.mxu1  ;;  %v1019_v45 = vpop.f32.mrf.mxu0 }
 0x616   : > { %v970_v48 = vadd.f32 %v964_v44, %v1340_v7  ;;  %v1025_v49 = vadd.f32 %v1019_v45, %v979_v43 }
 0x617   : > { %v1166_v50 = vpop.f32.mrf.mxu1  ;;  %v1172_v51 = vpop.f32.mrf.mxu0 }
 0x618   : > { %v977_v52 = vadd.f32 %v975_v46, %v970_v48  ;;  %v1032_v53 = vadd.f32 %v1030_v47, %v1025_v49 }
 0x619   : > { %v967_v54 = vpop.f32.mrf.mxu1  ;;  %v1022_v55 = vpop.f32.mrf.mxu0 }
 0x61a   : > { %978 = vst [vmem:[%s571_s1] sm:$0xff] %v977_v52  ;;  %1033 = vst [vmem:[%s575_s22] sm:$0xff] %v1032_v53 }
 0x61b   : > { %v1167_v56 = vpop.f32.mrf.mxu1  ;;  %v1173_v57 = vpop.f32.mrf.mxu0 }
 0x61c PF: > { %s32_s28 = sadd.s32 1, %s1208_s28  }
 0x61d   : > { %p29_p4 = scmp.ge.s32.totalorder %s32_s28, 4  }
 0x61f   :  { %31 = sbr.rel (!%p29_p4) target bundleno = 3 (0x3), region = 131 }

// kernel: tcn_forward.32
= control target key start
LH: loop header
LB: loop body
LE: loop exit
PB: predicated region body
PF: predicated region fallthrough
CT: control target
= control target key end

     0   :  { %s1045_s29 = smov 0   ;;  %s1143_s0 = inlined_call_operand.vmem [shape: f32[2,8,128], index: 0, kind: input, shape index: {}]   ;;  %s1144_s1 = inlined_call_operand.vmem [shape: f32[16,8], index: 1, kind: input, shape index: {}]   ;;  %s1145_s2 = inlined_call_operand.vmem [shape: f32[16,1], index: 2, kind: input, shape index: {}]   ;;  %s1146_s3 = inlined_call_operand.<no memory space> [shape: f32[1,1], index: 3, kind: input, shape index: {}]   ;;  %s1147_s4 = inlined_call_operand.vmem [shape: f32[16,1], index: 4, kind: input, shape index: {}]   ;;  %s1148_s5 = inlined_call_operand.vmem [shape: f32[16,1], index: 5, kind: input, shape index: {}]   ;;  %s1149_s6 = inlined_call_operand.vmem [shape: f32[3,16,1], index: 6, kind: input, shape index: {}]   ;;  %s1150_s7 = inlined_call_operand.vmem [shape: f32[16,1], index: 7, kind: input, shape index: {}]   ;;  %s1151_s9 = inlined_call_operand.vmem [shape: f32[16,1], index: 9, kind: input, shape index: {}]   ;;  %s1152_s10 = inlined_call_operand.vmem [shape: f32[16,1], index: 10, kind: input, shape index: {}]   ;;  %s1153_s11 = inlined_call_operand.vmem [shape: f32[8,16], index: 11, kind: input, shape index: {}]   ;;  %s1154_s12 = inlined_call_operand.vmem [shape: f32[8,1], index: 12, kind: input, shape index: {}]   ;;  %s1155_s13 = inlined_call_operand.vmem [shape: f32[2,8,128], index: 13, kind: output, shape index: {}]   ;;  %s1156_s8 = inlined_call_operand.<no memory space> [shape: f32[1,1], index: 8, kind: input, shape index: {}]  }
   0x1   :  { %v18_v0 = vstv %s1146_s3  ;;  %v20_v1 = vstv %s1156_s8 }
   0x2   :  { %19 = vst [vmem:[#allocation3] sm:$0x1] %v18_v0  ;;  %21 = vst [vmem:[#allocation4] sm:$0x1] %v20_v1 }
   0x3 LB: > { %s894_s30 = sadd.s32 4294967295, %s961_s29   ;;  %p898_p0 = scmp.ge.s32.totalorder %s961_s29, 1  ;;  %s961_s29 = sphi %s1045_s29, %s27_s29  }
   0x4   : > { %p390_p1 = scmp.lt.s32.totalorder %s961_s29, 3 }
   0x6   : > { %p391_p2 = pnand %p898_p0, %p390_p1 }
   0x7   : > { %p432_p3 = scmp.lt.s32.totalorder (!%p391_p2), %s894_s30, 1  ;;  %s966_s18 = smov (!%p391_p2), 1  }
   0x8   : > { %394 = sbr.rel (%p391_p2) target bundleno = 1564 (0x61c), region = 72  ;;  %s968_s20 = smov (!%p391_p2), 126  }
   0xd   : > { %v963_v2 = vmov 0.0   ;;  %vm964_vm0 = vmmov 0   ;;  %v446_v3 = vld [vmem:[%s1145_s2] sm:$0xff]  ;;  %s1158_s30 = smov (!%p432_p3, %s894_s30), 1  ;;  %v965_v5 = vmov 0   ;;  %v447_v6 = vld [vmem:[%s1145_s2 + $0x8] sm:$0xff] }
   0xe   : > { %915 = vmatprep.subr.bf16.mxu0 %v963_v2  ;;  %523 = vst [vmem:[#allocation2] sm:$0xff] %v963_v2  ;;  %526 = vst [vmem:[#allocation2 + $0x10] sm:$0xff] %v963_v2  ;;  %917 = vmatprep.mubr.msk.bf16.mxu0 %vm964_vm0, %v963_v2  ;;  %v902_v4 = vld [vmem:[#allocation3] ss:$0 sm:$0xff]  ;;  %s899_s14 = sshll.u32 %s1158_s30, 3  ;;  %vm462_vm1 = vcmask 1043456  }
   0xf   : > { %949 = vset.pattern.permute.xlu0 %v965_v5  ;;  %950 = vset.pattern.permute.xlu1 %v965_v5  ;;  %s435_s19 = scalar_lea.vmem %s1143_s0, %s899_s14  ;;  %v442_v8 = vld [vmem:[%s1144_s1] sm:$0xff]  ;;  %v443_v9 = vld [vmem:[%s1144_s1 + $0x8] sm:$0xff]  ;;  %vm458_vm2 = vcmask 64512   ;;  %vm524_vm5 = vcmask 15360   ;;  %vm597_vm6 = vcmask 1047560   ;;  %vm599_vm7 = vcmask 7168   ;;  %s439_s21 = scalar_lea.vmem %s1155_s13, %s899_s14 }
  0x10   : > { %450 = vperm.xlu0 %949, %v446_v3   ;;  %516 = vperm.xlu1 %950, %v902_v4   ;;  %v441_v7 = vld [vmem:[%s435_s19] sm:$0xff]  ;;  %v444_v12 = vpack.c.bf16 %v443_v9, %v442_v8  ;;  %v529_v27 = vld [vmem:[%s1147_s4 + $0x8] sm:$0xff]  ;;  %527 = vst.msk [vmem:[#allocation2 + $0x18] sm:$0xff] %vm524_vm5, %v963_v2  ;;  %525 = vst.msk [vmem:[#allocation2 + $0x8] sm:$0xff] %vm524_vm5, %v963_v2  ;;  %s967_s19 = smov 127   ;;  %vm668_vm8 = vcmask 1039360  }
  0x11   : > { %921 = vmatprep.subr.bf16.mxu1 %v963_v2  ;;  %923 = vmatprep.mubr.msk.bf16.mxu1 %vm964_vm0, %v963_v2  ;;  %v445_v10 = vpack.c.bf16 %v441_v7, %v441_v7  ;;  %v530_v28 = vld [vmem:[%s1148_s5] sm:$0xff]  ;;  %v531_v44 = vld [vmem:[%s1148_s5 + $0x8] sm:$0xff]  ;;  %v904_v2 = vld [vmem:[%s1149_s6 + $0x18] sm:$0xff]  ;;  %vm704_vm9 = vcmask 1031168   ;;  %vm796_vm12 = vcmask 130048  }
  0x12   : > { %v528_v43 = vld [vmem:[%s1147_s4] sm:$0xff]  ;;  %v903_v3 = vld [vmem:[%s1149_s6 + $0x10] sm:$0xff]  ;;  %v906_v4 = vld [vmem:[%s1149_s6 + $0x28] sm:$0xff] }
  0x13   : > { %v464_v11 = vsel %vm462_vm1, %v445_v10, 0  ;;  %v905_v5 = vld [vmem:[%s1149_s6 + $0x20] sm:$0xff]  ;;  %v604_v8 = vld [vmem:[%s1150_s7 + $0x8] sm:$0xff] }
  0x14   : > { %455 = vperm.xlu0 %949, %v447_v6   ;;  %916 = vmatpush3.bf16.msra.mxu0 %v464_v11  ;;  %v618_v6 = vld [vmem:[%s1149_s6 + $0x8] sm:$0xff]  ;;  %v617_v7 = vld [vmem:[%s1149_s6] sm:$0xff] }
  0x15   : > { %v603_v9 = vld [vmem:[%s1150_s7] sm:$0xff] }
  0x16   : > { %v907_v10 = vld [vmem:[#allocation4] ss:$0 sm:$0xff] }
  0x17   : > { %918 = vmatmul.mubr.msk.bf16.vlgmr.msra.gmra.mxu0 %vm458_vm2, %v444_v12 }
  0x8b   : > { %v451_v13 = vpop.permute.xlu0 %450  ;;  %v517_v16 = vpop.permute.xlu1 %516 }
  0x8f   : > { %v456_v18 = vpop.permute.xlu0 %455 }
  0xd7   : > { %v500_v14 = vpop.f32.mrf.mxu0 }
  0xd8   : > { %v501_v15 = vadd.f32 %v500_v14, %v451_v13 }
  0xd9   : > { %v919_v17 = vpop.f32.mrf.mxu0 }
  0xda   : > { %v519_v20 = vmul.f32 %v517_v16, %v501_v15  ;;  %vm508_vm3 = vcmp.ge.f32.partialorder %v501_v15, 0.0 }
  0xdb   : > { %v503_v19 = vpop.f32.mrf.mxu0 }
  0xdc   : > { %v504_v21 = vadd.f32 %v503_v19, %v456_v18  ;;  %v521_v24 = vsel %vm508_vm3, %v501_v15, %v519_v20 }
  0xdd   : > { %v920_v22 = vpop.f32.mrf.mxu0 }
  0xde   : > { %v520_v23 = vmul.f32 %v517_v16, %v504_v21  ;;  %vm509_vm4 = vcmp.ge.f32.partialorder %v504_v21, 0.0 }
  0xe0   : > { %v522_v25 = vsel %vm509_vm4, %v504_v21, %v520_v23 }
  0xe1   : > { %v532_v26 = vadd.f32 %v522_v25, %v521_v24 }
  0xe3   : > { %533 = vadd.xlane.f32.xlu1 %v532_v26 }
  0xf4   : > { %572 = vperm.xlu1 %950, %v529_v27  }
  0xf8   : > { %579 = vperm.xlu1 %950, %v530_v28  }
 0x16c   : > { %v534_v29 = vpop.xlane.xlu1 %533 }
 0x16d   : > { %v535_v30 = vrot.slane %v534_v29, 4 }
 0x16f   : > { %v536_v31 = vadd.f32 %v535_v30, %v534_v29 }
 0x170   : > { %v573_v55 = vpop.permute.xlu1 %572 }
 0x171   : > { %v537_v32 = vrot.slane %v536_v31, 2 }
 0x173   : > { %v538_v33 = vadd.f32 %v537_v32, %v536_v31 }
 0x174   : > { %v580_v62 = vpop.permute.xlu1 %579 }
 0x175   : > { %v539_v34 = vrot.slane %v538_v33, 1 }
 0x177   : > { %v540_v35 = vadd.f32 %v539_v34, %v538_v33 }
 0x179   : > { %927 = vpush %v540_v35 }
 0x1aa   : > { %s928_s28 = spop %927 }
 0x1ab   : > { %v542_v36 = vstv %s928_s28 }
 0x1ac   : > { %v544_v37 = vmul.f32 0.00048828125, %v542_v36 }
 0x1ae   : > { %v545_v38 = vsub.f32 %v521_v24, %v544_v37  ;;  %v546_v39 = vsub.f32 %v522_v25, %v544_v37 }
 0x1b0   : > { %v547_v40 = vmul.f32 %v545_v38, %v545_v38  ;;  %v548_v41 = vmul.f32 %v546_v39, %v546_v39 }
 0x1b2   : > { %v549_v42 = vadd.f32 %v548_v41, %v547_v40 }
 0x1b4   : > { %550 = vadd.xlane.f32.xlu0 %v549_v42 }
 0x1ca   : > { %567 = vperm.xlu0 %949, %v528_v43  }
 0x1ce   : > { %584 = vperm.xlu0 %949, %v531_v44  }
 0x23d   : > { %v551_v45 = vpop.xlane.xlu0 %550 }
 0x23e   : > { %v552_v46 = vrot.slane %v551_v45, 4 }
 0x240   : > { %v553_v47 = vadd.f32 %v552_v46, %v551_v45 }
 0x242   : > { %v554_v48 = vrot.slane %v553_v47, 2 }
 0x244   : > { %v555_v49 = vadd.f32 %v554_v48, %v553_v47 }
 0x245   : > { %v568_v56 = vpop.permute.xlu0 %567 }
 0x246   : > { %v556_v50 = vrot.slane %v555_v49, 1 }
 0x248   : > { %v557_v51 = vadd.f32 %v556_v50, %v555_v49 }
 0x249   : > { %v585_v63 = vpop.permute.xlu0 %584 }
 0x24a   : > { %929 = vpush %v557_v51 }
 0x27b   : > { %s930_s17 = spop %929 }
 0x27c   : > { %v559_v52 = vstv %s930_s17 }
 0x27d   : > { %v560_v53 = vmul.f32 0.00048828125, %v559_v52 }
 0x27f   : > { %v561_v54 = vadd.f32 1e-08, %v560_v53 }
 0x281   : > { %951 = vrsqrt.f32 %v561_v54 }
 0x28e   : > { %v952_v57 = vpop.eup %951 }
 0x28f   : > { %v564_v58 = vmul.f32 %v952_v57, %v546_v39  ;;  %v563_v59 = vmul.f32 %v952_v57, %v545_v38 }
 0x291   : > { %v576_v60 = vmul.f32 %v573_v55, %v564_v58  ;;  %v575_v61 = vmul.f32 %v568_v56, %v563_v59  ;;  %v727_v59 = vld [vmem:[%s1151_s9] sm:$0xff] }
 0x293   : > { %v588_v0 = vadd.f32 %v585_v63, %v576_v60  ;;  %v587_v1 = vadd.f32 %v580_v62, %v575_v61  ;;  %v729_v60 = vld [vmem:[%s1152_s10] sm:$0xff] }
 0x294   : > { %v790_v61 = vld [vmem:[%s1154_s12] sm:$0xff] }
 0x295   : > { %593 = vrot.lane.b32.xlu0 %v588_v0, %s966_s18  ;;  %591 = vrot.lane.b32.xlu1 %v587_v1, %s966_s18 }
 0x299   : > { %649 = vperm.xlu0 %949, %v904_v2   ;;  %644 = vperm.xlu1 %950, %v903_v3  }
 0x29d   : > { %685 = vperm.xlu0 %949, %v906_v4   ;;  %680 = vperm.xlu1 %950, %v905_v5  }
 0x2a1   : > { %628 = vperm.xlu0 %949, %v618_v6   ;;  %623 = vperm.xlu1 %950, %v617_v7  }
 0x2a5   : > { %612 = vperm.xlu0 %949, %v604_v8   ;;  %607 = vperm.xlu1 %950, %v603_v9  }
 0x2a9   : > { %720 = vperm.xlu1 %950, %v907_v10  }
 0x307   : > { %v594_v11 = vpop.permute.xlu0 %593  ;;  %v592_v12 = vpop.permute.xlu1 %591 }
 0x308   : > { %601 = vst.msk [vmem:[#allocation2 + $0x10] sm:$0xff] %vm597_vm6, %v594_v11  ;;  %598 = vst.msk [vmem:[#allocation2] sm:$0xff] %vm597_vm6, %v592_v12 }
 0x309   : > { %602 = vst.msk [vmem:[#allocation2 + $0x18] sm:$0xff] %vm599_vm7, %v594_v11  ;;  %600 = vst.msk [vmem:[#allocation2 + $0x8] sm:$0xff] %vm599_vm7, %v592_v12  ;;  %v728_v12 = vld [vmem:[%s1151_s9 + $0x8] sm:$0xff] }
 0x30f   : > { %v638_v13 = vld [vmem:[#allocation2] sm:$0xff]  ;;  %v640_v19 = vld [vmem:[#allocation2 + $0x10] sm:$0xff] }
 0x310   : > { %v639_v14 = vld [vmem:[#allocation2 + $0x8] sm:$0xff]  ;;  %v641_v20 = vld [vmem:[#allocation2 + $0x18] sm:$0xff] }
 0x314   : > { %v645_v15 = vpop.permute.xlu1 %644  ;;  %v650_v18 = vpop.permute.xlu0 %649 }
 0x315   : > { %v652_v16 = vmul.f32 %v645_v15, %v638_v13  ;;  %v653_v17 = vmul.f32 %v645_v15, %v639_v14  ;;  %v654_v21 = vmul.f32 %v650_v18, %v640_v19  ;;  %v655_v22 = vmul.f32 %v650_v18, %v641_v20 }
 0x317   : > { %662 = vrot.lane.b32.xlu0 %v653_v17, %s967_s19  ;;  %660 = vrot.lane.b32.xlu1 %v652_v16, %s967_s19 }
 0x318   : > { %v681_v23 = vpop.permute.xlu1 %680  ;;  %v686_v26 = vpop.permute.xlu0 %685 }
 0x319   : > { %v688_v24 = vmul.f32 %v681_v23, %v638_v13  ;;  %v689_v25 = vmul.f32 %v681_v23, %v639_v14  ;;  %v690_v27 = vmul.f32 %v686_v26, %v640_v19  ;;  %v691_v28 = vmul.f32 %v686_v26, %v641_v20 }
 0x31b   : > { %666 = vrot.lane.b32.xlu0 %v655_v22, %s967_s19  ;;  %664 = vrot.lane.b32.xlu1 %v654_v21, %s967_s19 }
 0x31c   : > { %v624_v29 = vpop.permute.xlu1 %623  ;;  %v629_v30 = vpop.permute.xlu0 %628 }
 0x31d   : > { %v631_v36 = vmul.f32 %v638_v13, %v624_v29  ;;  %v632_v41 = vmul.f32 %v640_v19, %v629_v30  ;;  %v730_v13 = vld [vmem:[%s1152_s10 + $0x8] sm:$0xff] }
 0x31f   : > { %698 = vrot.lane.b32.xlu1 %v689_v25, %s968_s20  ;;  %696 = vrot.lane.b32.xlu0 %v688_v24, %s968_s20 }
 0x320   : > { %v608_v31 = vpop.permute.xlu1 %607  ;;  %v613_v32 = vpop.permute.xlu0 %612 }
 0x321   : > { %v633_v40 = vadd.f32 %v631_v36, %v608_v31  ;;  %v634_v47 = vadd.f32 %v632_v41, %v613_v32 }
 0x323   : > { %702 = vrot.lane.b32.xlu1 %v691_v28, %s968_s20  ;;  %700 = vrot.lane.b32.xlu0 %v690_v27, %s968_s20 }
 0x324   : > { %v721_v33 = vpop.permute.xlu1 %720 }
 0x389   : > { %v663_v34 = vpop.permute.xlu0 %662  ;;  %v661_v35 = vpop.permute.xlu1 %660 }
 0x38a   : > { %v669_v39 = vsel %vm668_vm8, %v661_v35, %v663_v34  ;;  %v787_v35 = vld [vmem:[%s1153_s11] sm:$0xff] }
 0x38b   : > { %v673_v42 = vadd.f32 %v669_v39, %v633_v40 }
 0x38d   : > { %v667_v37 = vpop.permute.xlu0 %666  ;;  %v665_v38 = vpop.permute.xlu1 %664 }
 0x38e   : > { %v670_v45 = vsel %vm668_vm8, %v665_v38, %v667_v37  ;;  %v788_v37 = vpack.c.bf16 %v787_v35, %v787_v35 }
 0x38f   : > { %v674_v49 = vadd.f32 %v670_v45, %v634_v47 }
 0x391   : > { %v697_v43 = vpop.permute.xlu0 %696  ;;  %v699_v44 = vpop.permute.xlu1 %698 }
 0x392   : > { %v705_v46 = vsel %vm704_vm9, %v697_v43, %v699_v44 }
 0x393   : > { %v709_v48 = vadd.f32 %v705_v46, %v673_v42 }
 0x395   : > { %v701_v50 = vpop.permute.xlu0 %700  ;;  %v703_v51 = vpop.permute.xlu1 %702  ;;  %v723_v54 = vmul.f32 %v721_v33, %v709_v48  ;;  %vm712_vm10 = vcmp.ge.f32.partialorder %v709_v48, 0.0 }
 0x396   : > { %v706_v52 = vsel %vm704_vm9, %v701_v50, %v703_v51 }
 0x397   : > { %v710_v53 = vadd.f32 %v706_v52, %v674_v49  ;;  %v725_v56 = vsel %vm712_vm10, %v709_v48, %v723_v54 }
 0x399   : > { %vm713_vm11 = vcmp.ge.f32.partialorder %v710_v53, 0.0  ;;  %v724_v55 = vmul.f32 %v721_v33, %v710_v53 }
 0x39b   : > { %v726_v57 = vsel %vm713_vm11, %v710_v53, %v724_v55 }
 0x39c   : > { %v731_v58 = vadd.f32 %v726_v57, %v725_v56 }
 0x39e   : > { %732 = vadd.xlane.f32.xlu0 %v731_v58 }
 0x3b4   : > { %765 = vperm.xlu0 %949, %v727_v59  }
 0x3b8   : > { %777 = vperm.xlu0 %949, %v729_v60  }
 0x3bc   : > { %793 = vperm.xlu0 %949, %v790_v61  }
 0x427   : > { %v733_v62 = vpop.xlane.xlu0 %732 }
 0x428   : > { %v734_v63 = vrot.slane %v733_v62, 4 }
 0x42a   : > { %v735_v0 = vadd.f32 %v734_v63, %v733_v62 }
 0x42c   : > { %v736_v1 = vrot.slane %v735_v0, 2 }
 0x42e   : > { %v737_v2 = vadd.f32 %v736_v1, %v735_v0 }
 0x42f   : > { %v766_v24 = vpop.permute.xlu0 %765 }
 0x430   : > { %v738_v3 = vrot.slane %v737_v2, 1 }
 0x432   : > { %v739_v4 = vadd.f32 %v738_v3, %v737_v2 }
 0x433   : > { %v778_v31 = vpop.permute.xlu0 %777 }
 0x434   : > { %931 = vpush %v739_v4 }
 0x437   : > { %v794_v38 = vpop.permute.xlu0 %793 }
 0x465   : > { %s932_s27 = spop %931 }
 0x466   : > { %v741_v5 = vstv %s932_s27 }
 0x467   : > { %v742_v6 = vmul.f32 0.00048828125, %v741_v5 }
 0x469   : > { %v743_v7 = vsub.f32 %v725_v56, %v742_v6  ;;  %v744_v8 = vsub.f32 %v726_v57, %v742_v6 }
 0x46b   : > { %v745_v9 = vmul.f32 %v743_v7, %v743_v7  ;;  %v746_v10 = vmul.f32 %v744_v8, %v744_v8 }
 0x46d   : > { %v747_v11 = vadd.f32 %v746_v10, %v745_v9 }
 0x46f   : > { %748 = vadd.xlane.f32.xlu1 %v747_v11 }
 0x480   : > { %770 = vperm.xlu1 %950, %v728_v12  }
 0x484   : > { %782 = vperm.xlu1 %950, %v730_v13  }
 0x4f8   : > { %v749_v14 = vpop.xlane.xlu1 %748 }
 0x4f9   : > { %v750_v15 = vrot.slane %v749_v14, 4 }
 0x4fb   : > { %v751_v16 = vadd.f32 %v750_v15, %v749_v14 }
 0x4fc   : > { %v771_v25 = vpop.permute.xlu1 %770 }
 0x4fd   : > { %v752_v17 = vrot.slane %v751_v16, 2 }
 0x4ff   : > { %v753_v18 = vadd.f32 %v752_v17, %v751_v16 }
 0x500   : > { %v783_v32 = vpop.permute.xlu1 %782 }
 0x501   : > { %v754_v19 = vrot.slane %v753_v18, 1 }
 0x503   : > { %v755_v20 = vadd.f32 %v754_v19, %v753_v18 }
 0x505   : > { %933 = vpush %v755_v20 }
 0x536   : > { %s934_s16 = spop %933 }
 0x537   : > { %v757_v21 = vstv %s934_s16 }
 0x538   : > { %v758_v22 = vmul.f32 0.00048828125, %v757_v21 }
 0x53a   : > { %v759_v23 = vadd.f32 1e-08, %v758_v22 }
 0x53c   : > { %953 = vrsqrt.f32 %v759_v23 }
 0x549   : > { %v954_v26 = vpop.eup %953 }
 0x54a   : > { %v761_v27 = vmul.f32 %v954_v26, %v743_v7  ;;  %v762_v28 = vmul.f32 %v954_v26, %v744_v8 }
 0x54c   : > { %v773_v29 = vmul.f32 %v766_v24, %v761_v27  ;;  %v774_v30 = vmul.f32 %v771_v25, %v762_v28 }
 0x54e   : > { %v785_v33 = vadd.f32 %v778_v31, %v773_v29  ;;  %v786_v34 = vadd.f32 %v783_v32, %v774_v30 }
 0x550   : > { %v789_v36 = vpack.c.bf16 %v786_v34, %v785_v33 }
 0x552   : > { %922 = vmatpush3.bf16.msra.mxu1 %v789_v36 }
 0x555   : > { %924 = vmatmul.mubr.msk.bf16.vlgmr.msra.gmra.mxu1 %vm796_vm12, %v788_v37 }
 0x615   : > { %v834_v39 = vpop.f32.mrf.mxu1 }
 0x616   : > { %v835_v40 = vadd.f32 %v834_v39, %v794_v38 }
 0x617   : > { %v925_v41 = vpop.f32.mrf.mxu1 }
 0x618   : > { %840 = vst [vmem:[%s439_s21] sm:$0xff] %v835_v40 }
 0x619   : > { %v837_v42 = vpop.f32.mrf.mxu1 }
 0x61b   : > { %v926_v43 = vpop.f32.mrf.mxu1 }
 0x61c PF: > { %s27_s29 = sadd.s32 1, %s961_s29  }
 0x61d   : > { %p24_p4 = scmp.ge.s32.totalorder %s27_s29, 4  }
 0x61f   :  { %26 = sbr.rel (!%p24_p4) target bundleno = 3 (0x3), region = 104 }

// kernel: tcn_forward.28
= control target key start
LH: loop header
LB: loop body
LE: loop exit
PB: predicated region body
PF: predicated region fallthrough
CT: control target
= control target key end

     0   :  { %s1312_s28 = smov 0   ;;  %s1431_s0 = inlined_call_operand.vmem [shape: f32[2,8,128], index: 0, kind: input, shape index: {}, may-alias: {0,16}]   ;;  %s1432_s1 = inlined_call_operand.vmem [shape: f32[2,8,128], index: 1, kind: input, shape index: {}, may-alias: {1,17}]   ;;  %s1433_s2 = inlined_call_operand.vmem [shape: f32[16,8], index: 2, kind: input, shape index: {}]   ;;  %s1434_s3 = inlined_call_operand.vmem [shape: f32[16,1], index: 3, kind: input, shape index: {}]   ;;  %s1435_s4 = inlined_call_operand.<no memory space> [shape: f32[1,1], index: 4, kind: input, shape index: {}]   ;;  %s1436_s5 = inlined_call_operand.vmem [shape: f32[16,1], index: 5, kind: input, shape index: {}]   ;;  %s1437_s6 = inlined_call_operand.vmem [shape: f32[16,1], index: 6, kind: input, shape index: {}]   ;;  %s1438_s7 = inlined_call_operand.vmem [shape: f32[3,16,1], index: 7, kind: input, shape index: {}]   ;;  %s1439_s8 = inlined_call_operand.vmem [shape: f32[16,1], index: 8, kind: input, shape index: {}]   ;;  %s1440_s10 = inlined_call_operand.vmem [shape: f32[16,1], index: 10, kind: input, shape index: {}]   ;;  %s1441_s11 = inlined_call_operand.vmem [shape: f32[16,1], index: 11, kind: input, shape index: {}]   ;;  %s1442_s12 = inlined_call_operand.vmem [shape: f32[8,16], index: 12, kind: input, shape index: {}]   ;;  %s1443_s13 = inlined_call_operand.vmem [shape: f32[8,1], index: 13, kind: input, shape index: {}]   ;;  %s1444_s14 = inlined_call_operand.vmem [shape: f32[8,16], index: 14, kind: input, shape index: {}]   ;;  %s1445_s15 = inlined_call_operand.vmem [shape: f32[8,1], index: 15, kind: input, shape index: {}]   ;;  %s1446_s16 = inlined_call_operand.vmem [shape: f32[2,8,128], index: 16, kind: output, shape index: {0}, may-alias: {0,16}]   ;;  %s1447_s17 = inlined_call_operand.vmem [shape: f32[2,8,128], index: 17, kind: output, shape index: {1}, may-alias: {1,17}]   ;;  %s1448_s9 = inlined_call_operand.<no memory space> [shape: f32[1,1], index: 9, kind: input, shape index: {}]  }
   0x1   :  { %1449 = sst [smem:[#allocation5_spill]] %s1431_s0  ;;  %v23_v0 = vstv %s1435_s4  ;;  %v25_v1 = vstv %s1448_s9 }
   0x2   :  { %1450 = sst [smem:[#allocation6_spill]] %s1432_s1  ;;  %24 = vst [vmem:[#allocation3] sm:$0x1] %v23_v0  ;;  %26 = vst [vmem:[#allocation4] sm:$0x1] %v25_v1 }
   0x3 LB: > { %s1130_s29 = sadd.s32 4294967295, %s1208_s28   ;;  %p1134_p0 = scmp.ge.s32.totalorder %s1208_s28, 1  ;;  %s1208_s28 = sphi %s1312_s28, %s32_s28  }
   0x4   : > { %p502_p1 = scmp.lt.s32.totalorder %s1208_s28, 3 }
   0x6   : > { %p503_p2 = pnand %p1134_p0, %p502_p1 }
   0x7   : > { %p560_p3 = scmp.lt.s32.totalorder (!%p503_p2), %s1130_s29, 1  ;;  %s1451_s20 = sld [smem:[#allocation5_spill]] (!%p503_p2) }
   0x8   : > { %506 = sbr.rel (%p503_p2) target bundleno = 1564 (0x61c), region = 84  ;;  %s1214_s23 = smov (!%p503_p2), 127  }
   0x9   : > { %s1215_s24 = smov (!%p503_p2), 126  }
   0xd   : > { %v1210_v2 = vmov 0.0   ;;  %vm1211_vm0 = vmmov 0   ;;  %v582_v3 = vld [vmem:[%s1434_s3] sm:$0xff]  ;;  %s1454_s29 = smov (!%p560_p3, %s1130_s29), 1  ;;  %v1212_v5 = vmov 0   ;;  %v583_v6 = vld [vmem:[%s1434_s3 + $0x8] sm:$0xff] }
   0xe   : > { %1156 = vmatprep.subr.bf16.mxu0 %v1210_v2  ;;  %659 = vst [vmem:[#allocation2] sm:$0xff] %v1210_v2  ;;  %662 = vst [vmem:[#allocation2 + $0x10] sm:$0xff] %v1210_v2  ;;  %1158 = vmatprep.mubr.msk.bf16.mxu0 %vm1211_vm0, %v1210_v2  ;;  %v1140_v4 = vld [vmem:[#allocation3] ss:$0 sm:$0xff]  ;;  %s1328_s0 = sshll.u32 %s1454_s29, 3  ;;  %vm598_vm1 = vcmask 1043456  }
   0xf   : > { %1196 = vset.pattern.permute.xlu0 %v1212_v5  ;;  %1197 = vset.pattern.permute.xlu1 %v1212_v5  ;;  %s563_s21 = scalar_lea.vmem %s1451_s20, %s1328_s0  ;;  %v578_v8 = vld [vmem:[%s1433_s2] sm:$0xff]  ;;  %v579_v9 = vld [vmem:[%s1433_s2 + $0x8] sm:$0xff]  ;;  %vm594_vm2 = vcmask 64512   ;;  %vm660_vm5 = vcmask 15360   ;;  %vm733_vm6 = vcmask 1047560   ;;  %vm735_vm7 = vcmask 7168   ;;  %s571_s1 = scalar_lea.vmem %s1446_s16, %s1328_s0 }
  0x10   : > { %586 = vperm.xlu0 %1196, %v582_v3   ;;  %652 = vperm.xlu1 %1197, %v1140_v4   ;;  %v1340_v7 = vld [vmem:[%s563_s21] sm:$0xff]  ;;  %v580_v12 = vpack.c.bf16 %v579_v9, %v578_v8  ;;  %v665_v27 = vld [vmem:[%s1436_s5 + $0x8] sm:$0xff]  ;;  %663 = vst.msk [vmem:[#allocation2 + $0x18] sm:$0xff] %vm660_vm5, %v1210_v2  ;;  %661 = vst.msk [vmem:[#allocation2 + $0x8] sm:$0xff] %vm660_vm5, %v1210_v2  ;;  %s1213_s21 = smov 1   ;;  %vm804_vm8 = vcmask 1039360   ;;  %s575_s22 = scalar_lea.vmem %s1447_s17, %s1328_s0 }
  0x11   : > { %1162 = vmatprep.subr.bf16.mxu1 %v1210_v2  ;;  %1164 = vmatprep.mubr.msk.bf16.mxu1 %vm1211_vm0, %v1210_v2  ;;  %v581_v10 = vpack.c.bf16 %v1340_v7, %v1340_v7  ;;  %v666_v28 = vld [vmem:[%s1437_s6] sm:$0xff]  ;;  %v667_v44 = vld [vmem:[%s1437_s6 + $0x8] sm:$0xff]  ;;  %v1141_v3 = vld [vmem:[%s1438_s7 + $0x10] sm:$0xff]  ;;  %vm840_vm9 = vcmask 1031168   ;;  %vm926_vm12 = vcmask 130048  }
  0x12   : > { %v664_v43 = vld [vmem:[%s1436_s5] sm:$0xff]  ;;  %v1144_v4 = vld [vmem:[%s1438_s7 + $0x28] sm:$0xff] }
  0x13   : > { %v600_v11 = vsel %vm598_vm1, %v581_v10, 0  ;;  %v1143_v5 = vld [vmem:[%s1438_s7 + $0x20] sm:$0xff]  ;;  %v740_v9 = vld [vmem:[%s1439_s8 + $0x8] sm:$0xff] }
  0x14   : > { %591 = vperm.xlu0 %1196, %v583_v6   ;;  %1157 = vmatpush3.bf16.msra.mxu0 %v600_v11  ;;  %v754_v6 = vld [vmem:[%s1438_s7 + $0x8] sm:$0xff]  ;;  %v753_v8 = vld [vmem:[%s1438_s7] sm:$0xff] }
  0x15   : > { %1168 = vmatprep.subr.bf16.mxu0 %v1210_v2  ;;  %v739_v10 = vld [vmem:[%s1439_s8] sm:$0xff] }
  0x16   : > { %v1145_v11 = vld [vmem:[#allocation4] ss:$0 sm:$0xff] }
  0x17   : > { %1159 = vmatmul.mubr.msk.bf16.vlgmr.msra.gmra.mxu0 %vm594_vm2, %v580_v12 }
  0x18   : > { %1170 = vmatprep.mubr.msk.bf16.mxu0 %vm1211_vm0, %v1210_v2  ;;  %v1142_v2 = vld [vmem:[%s1438_s7 + $0x18] sm:$0xff] }
  0x8b   : > { %v587_v13 = vpop.permute.xlu0 %586  ;;  %v653_v16 = vpop.permute.xlu1 %652 }
  0x8f   : > { %v592_v18 = vpop.permute.xlu0 %591 }
  0xd7   : > { %v636_v14 = vpop.f32.mrf.mxu0 }
  0xd8   : > { %v637_v15 = vadd.f32 %v636_v14, %v587_v13 }
  0xd9   : > { %v1160_v17 = vpop.f32.mrf.mxu0 }
  0xda   : > { %v655_v20 = vmul.f32 %v653_v16, %v637_v15  ;;  %vm644_vm3 = vcmp.ge.f32.partialorder %v637_v15, 0.0 }
  0xdb   : > { %v639_v19 = vpop.f32.mrf.mxu0 }
  0xdc   : > { %v640_v21 = vadd.f32 %v639_v19, %v592_v18  ;;  %v657_v24 = vsel %vm644_vm3, %v637_v15, %v655_v20 }
  0xdd   : > { %v1161_v22 = vpop.f32.mrf.mxu0 }
  0xde   : > { %v656_v23 = vmul.f32 %v653_v16, %v640_v21  ;;  %vm645_vm4 = vcmp.ge.f32.partialorder %v640_v21, 0.0 }
  0xe0   : > { %v658_v25 = vsel %vm645_vm4, %v640_v21, %v656_v23 }
  0xe1   : > { %v668_v26 = vadd.f32 %v658_v25, %v657_v24 }
  0xe3   : > { %669 = vadd.xlane.f32.xlu1 %v668_v26 }
  0xf4   : > { %708 = vperm.xlu1 %1197, %v665_v27  }
  0xf8   : > { %715 = vperm.xlu1 %1197, %v666_v28  }
 0x16c   : > { %v670_v29 = vpop.xlane.xlu1 %669 }
 0x16d   : > { %v671_v30 = vrot.slane %v670_v29, 4 }
 0x16f   : > { %v672_v31 = vadd.f32 %v671_v30, %v670_v29 }
 0x170   : > { %v709_v55 = vpop.permute.xlu1 %708 }
 0x171   : > { %v673_v32 = vrot.slane %v672_v31, 2 }
 0x173   : > { %v674_v33 = vadd.f32 %v673_v32, %v672_v31 }
 0x174   : > { %v716_v62 = vpop.permute.xlu1 %715 }
 0x175   : > { %v675_v34 = vrot.slane %v674_v33, 1 }
 0x177   : > { %v676_v35 = vadd.f32 %v675_v34, %v674_v33 }
 0x179   : > { %1174 = vpush %v676_v35 }
 0x1aa   : > { %s1175_s9 = spop %1174 }
 0x1ab   : > { %v678_v36 = vstv %s1175_s9  ;;  %s1452_s9 = sld [smem:[#allocation6_spill]] }
 0x1ac   : > { %v680_v37 = vmul.f32 0.00048828125, %v678_v36 }
 0x1ae   : > { %v681_v38 = vsub.f32 %v657_v24, %v680_v37  ;;  %v682_v39 = vsub.f32 %v658_v25, %v680_v37 }
 0x1b0   : > { %v683_v40 = vmul.f32 %v681_v38, %v681_v38  ;;  %v684_v41 = vmul.f32 %v682_v39, %v682_v39 }
 0x1b2   : > { %v685_v42 = vadd.f32 %v684_v41, %v683_v40 }
 0x1b4   : > { %686 = vadd.xlane.f32.xlu0 %v685_v42 }
 0x1ca   : > { %703 = vperm.xlu0 %1196, %v664_v43  }
 0x1ce   : > { %720 = vperm.xlu0 %1196, %v667_v44  }
 0x23d   : > { %v687_v45 = vpop.xlane.xlu0 %686 }
 0x23e   : > { %v688_v46 = vrot.slane %v687_v45, 4 }
 0x240   : > { %v689_v47 = vadd.f32 %v688_v46, %v687_v45 }
 0x242   : > { %v690_v48 = vrot.slane %v689_v47, 2 }
 0x244   : > { %v691_v49 = vadd.f32 %v690_v48, %v689_v47 }
 0x245   : > { %v704_v56 = vpop.permute.xlu0 %703 }
 0x246   : > { %v692_v50 = vrot.slane %v691_v49, 1 }
 0x248   : > { %v693_v51 = vadd.f32 %v692_v50, %v691_v49 }
 0x249   : > { %v721_v63 = vpop.permute.xlu0 %720 }
 0x24a   : > { %1176 = vpush %v693_v51 }
 0x27b   : > { %s1177_s20 = spop %1176 }
 0x27c   : > { %v695_v52 = vstv %s1177_s20 }
 0x27d   : > { %v696_v53 = vmul.f32 0.00048828125, %v695_v52 }
 0x27f   : > { %v697_v54 = vadd.f32 1e-08, %v696_v53 }
 0x281   : > { %1198 = vrsqrt.f32 %v697_v54 }
 0x28e   : > { %v1199_v57 = vpop.eup %1198 }
 0x28f   : > { %v700_v58 = vmul.f32 %v1199_v57, %v682_v39  ;;  %v699_v59 = vmul.f32 %v1199_v57, %v681_v38 }
 0x291   : > { %v712_v60 = vmul.f32 %v709_v55, %v700_v58  ;;  %v711_v61 = vmul.f32 %v704_v56, %v699_v59 }
 0x293   : > { %v724_v0 = vadd.f32 %v721_v63, %v712_v60  ;;  %v723_v1 = vadd.f32 %v716_v62, %v711_v61  ;;  %v863_v60 = vld [vmem:[%s1440_s10] sm:$0xff] }
 0x294   : > { %v865_v61 = vld [vmem:[%s1441_s11] sm:$0xff] }
 0x295   : > { %729 = vrot.lane.b32.xlu0 %v724_v0, %s1213_s21  ;;  %727 = vrot.lane.b32.xlu1 %v723_v1, %s1213_s21  ;;  %v971_v62 = vld [vmem:[%s1443_s13] sm:$0xff] }
 0x299   : > { %785 = vperm.xlu0 %1196, %v1142_v2   ;;  %780 = vperm.xlu1 %1197, %v1141_v3  }
 0x29d   : > { %821 = vperm.xlu0 %1196, %v1144_v4   ;;  %816 = vperm.xlu1 %1197, %v1143_v5  }
 0x2a1   : > { %764 = vperm.xlu0 %1196, %v754_v6   ;;  %759 = vperm.xlu1 %1197, %v753_v8  }
 0x2a5   : > { %748 = vperm.xlu0 %1196, %v740_v9   ;;  %743 = vperm.xlu1 %1197, %v739_v10  }
 0x2a9   : > { %856 = vperm.xlu1 %1197, %v1145_v11  }
 0x307   : > { %v730_v12 = vpop.permute.xlu0 %729  ;;  %v728_v13 = vpop.permute.xlu1 %727 }
 0x308   : > { %737 = vst.msk [vmem:[#allocation2 + $0x10] sm:$0xff] %vm733_vm6, %v730_v12  ;;  %734 = vst.msk [vmem:[#allocation2] sm:$0xff] %vm733_vm6, %v728_v13 }
 0x309   : > { %738 = vst.msk [vmem:[#allocation2 + $0x18] sm:$0xff] %vm735_vm7, %v730_v12  ;;  %736 = vst.msk [vmem:[#allocation2 + $0x8] sm:$0xff] %vm735_vm7, %v728_v13 }
 0x30f   : > { %v774_v14 = vld [vmem:[#allocation2] sm:$0xff]  ;;  %v776_v20 = vld [vmem:[#allocation2 + $0x10] sm:$0xff] }
 0x310   : > { %v775_v15 = vld [vmem:[#allocation2 + $0x8] sm:$0xff]  ;;  %v777_v21 = vld [vmem:[#allocation2 + $0x18] sm:$0xff] }
 0x314   : > { %v781_v16 = vpop.permute.xlu1 %780  ;;  %v786_v19 = vpop.permute.xlu0 %785 }
 0x315   : > { %v788_v17 = vmul.f32 %v781_v16, %v774_v14  ;;  %v789_v18 = vmul.f32 %v781_v16, %v775_v15  ;;  %v790_v22 = vmul.f32 %v786_v19, %v776_v20  ;;  %v791_v23 = vmul.f32 %v786_v19, %v777_v21  ;;  %v1026_v16 = vld [vmem:[%s1445_s15] sm:$0xff] }
 0x317   : > { %798 = vrot.lane.b32.xlu0 %v789_v18, %s1214_s23  ;;  %796 = vrot.lane.b32.xlu1 %v788_v17, %s1214_s23 }
 0x318   : > { %v817_v24 = vpop.permute.xlu1 %816  ;;  %v822_v27 = vpop.permute.xlu0 %821 }
 0x319   : > { %v824_v25 = vmul.f32 %v817_v24, %v774_v14  ;;  %v825_v26 = vmul.f32 %v817_v24, %v775_v15  ;;  %v826_v28 = vmul.f32 %v822_v27, %v776_v20  ;;  %v827_v29 = vmul.f32 %v822_v27, %v777_v21  ;;  %v866_v15 = vld [vmem:[%s1441_s11 + $0x8] sm:$0xff] }
 0x31b   : > { %802 = vrot.lane.b32.xlu0 %v791_v23, %s1214_s23  ;;  %800 = vrot.lane.b32.xlu1 %v790_v22, %s1214_s23 }
 0x31c   : > { %v760_v30 = vpop.permute.xlu1 %759  ;;  %v765_v31 = vpop.permute.xlu0 %764 }
 0x31d   : > { %v767_v37 = vmul.f32 %v774_v14, %v760_v30  ;;  %v768_v42 = vmul.f32 %v776_v20, %v765_v31  ;;  %v864_v14 = vld [vmem:[%s1440_s10 + $0x8] sm:$0xff] }
 0x31f   : > { %834 = vrot.lane.b32.xlu1 %v825_v26, %s1215_s24  ;;  %832 = vrot.lane.b32.xlu0 %v824_v25, %s1215_s24 }
 0x320   : > { %v744_v32 = vpop.permute.xlu1 %743  ;;  %v749_v33 = vpop.permute.xlu0 %748 }
 0x321   : > { %v769_v41 = vadd.f32 %v767_v37, %v744_v32  ;;  %v770_v48 = vadd.f32 %v768_v42, %v749_v33 }
 0x323   : > { %838 = vrot.lane.b32.xlu1 %v827_v29, %s1215_s24  ;;  %836 = vrot.lane.b32.xlu0 %v826_v28, %s1215_s24 }
 0x324   : > { %v857_v34 = vpop.permute.xlu1 %856 }
 0x389   : > { %v799_v35 = vpop.permute.xlu0 %798  ;;  %v797_v36 = vpop.permute.xlu1 %796 }
 0x38a   : > { %v805_v40 = vsel %vm804_vm8, %v797_v36, %v799_v35 }
 0x38b   : > { %v809_v43 = vadd.f32 %v805_v40, %v769_v41 }
 0x38d   : > { %v803_v38 = vpop.permute.xlu0 %802  ;;  %v801_v39 = vpop.permute.xlu1 %800 }
 0x38e   : > { %v806_v46 = vsel %vm804_vm8, %v801_v39, %v803_v38  ;;  %v923_v38 = vld [vmem:[%s1442_s12] sm:$0xff] }
 0x38f   : > { %v810_v50 = vadd.f32 %v806_v46, %v770_v48  ;;  %v980_v39 = vld [vmem:[%s1444_s14] sm:$0xff]  ;;  %v924_v41 = vpack.c.bf16 %v923_v38, %v923_v38 }
 0x390   : > { %v981_v42 = vpack.c.bf16 %v980_v39, %v980_v39 }
 0x391   : > { %v833_v44 = vpop.permute.xlu0 %832  ;;  %v835_v45 = vpop.permute.xlu1 %834 }
 0x392   : > { %v841_v47 = vsel %vm840_vm9, %v833_v44, %v835_v45 }
 0x393   : > { %v845_v49 = vadd.f32 %v841_v47, %v809_v43 }
 0x395   : > { %v837_v51 = vpop.permute.xlu0 %836  ;;  %v839_v52 = vpop.permute.xlu1 %838  ;;  %v859_v55 = vmul.f32 %v857_v34, %v845_v49  ;;  %vm848_vm10 = vcmp.ge.f32.partialorder %v845_v49, 0.0 }
 0x396   : > { %v842_v53 = vsel %vm840_vm9, %v837_v51, %v839_v52 }
 0x397   : > { %v846_v54 = vadd.f32 %v842_v53, %v810_v50  ;;  %v861_v57 = vsel %vm848_vm10, %v845_v49, %v859_v55 }
 0x399   : > { %vm849_vm11 = vcmp.ge.f32.partialorder %v846_v54, 0.0  ;;  %v860_v56 = vmul.f32 %v857_v34, %v846_v54 }
 0x39b   : > { %v862_v58 = vsel %vm849_vm11, %v846_v54, %v860_v56 }
 0x39c   : > { %v867_v59 = vadd.f32 %v862_v58, %v861_v57 }
 0x39e   : > { %868 = vadd.xlane.f32.xlu0 %v867_v59 }
 0x3b4   : > { %901 = vperm.xlu0 %1196, %v863_v60  }
 0x3b8   : > { %913 = vperm.xlu0 %1196, %v865_v61  }
 0x3bc   : > { %974 = vperm.xlu0 %1196, %v971_v62  }
 0x427   : > { %v869_v63 = vpop.xlane.xlu0 %868 }
 0x428   : > { %v870_v0 = vrot.slane %v869_v63, 4 }
 0x42a   : > { %v871_v1 = vadd.f32 %v870_v0, %v869_v63 }
 0x42c   : > { %v872_v2 = vrot.slane %v871_v1, 2 }
 0x42e   : > { %v873_v3 = vadd.f32 %v872_v2, %v871_v1 }
 0x42f   : > { %v902_v27 = vpop.permute.xlu0 %901 }
 0x430   : > { %v874_v4 = vrot.slane %v873_v3, 1 }
 0x432   : > { %v875_v5 = vadd.f32 %v874_v4, %v873_v3 }
 0x433   : > { %v914_v34 = vpop.permute.xlu0 %913 }
 0x434   : > { %1178 = vpush %v875_v5 }
 0x437   : > { %v975_v46 = vpop.permute.xlu0 %974 }
 0x465   : > { %s1179_s30 = spop %1178 }
 0x466   : > { %v877_v6 = vstv %s1179_s30  ;;  %s567_s30 = scalar_lea.vmem %s1452_s9, %s1328_s0 }
 0x467   : > { %v878_v8 = vmul.f32 0.00048828125, %v877_v6  ;;  %v979_v43 = vld [vmem:[%s567_s30] sm:$0xff] }
 0x469   : > { %v879_v9 = vsub.f32 %v861_v57, %v878_v8  ;;  %v880_v10 = vsub.f32 %v862_v58, %v878_v8 }
 0x46b   : > { %v881_v11 = vmul.f32 %v879_v9, %v879_v9  ;;  %v882_v12 = vmul.f32 %v880_v10, %v880_v10 }
 0x46d   : > { %v883_v13 = vadd.f32 %v882_v12, %v881_v11 }
 0x46f   : > { %884 = vadd.xlane.f32.xlu1 %v883_v13 }
 0x480   : > { %906 = vperm.xlu1 %1197, %v864_v14  }
 0x484   : > { %918 = vperm.xlu1 %1197, %v866_v15  }
 0x488   : > { %1029 = vperm.xlu1 %1197, %v1026_v16  }
 0x4f8   : > { %v885_v17 = vpop.xlane.xlu1 %884 }
 0x4f9   : > { %v886_v18 = vrot.slane %v885_v17, 4 }
 0x4fb   : > { %v887_v19 = vadd.f32 %v886_v18, %v885_v17 }
 0x4fc   : > { %v907_v28 = vpop.permute.xlu1 %906 }
 0x4fd   : > { %v888_v20 = vrot.slane %v887_v19, 2 }
 0x4ff   : > { %v889_v21 = vadd.f32 %v888_v20, %v887_v19 }
 0x500   : > { %v919_v35 = vpop.permute.xlu1 %918 }
 0x501   : > { %v890_v22 = vrot.slane %v889_v21, 1 }
 0x503   : > { %v891_v23 = vadd.f32 %v890_v22, %v889_v21 }
 0x504   : > { %v1030_v47 = vpop.permute.xlu1 %1029 }
 0x505   : > { %1180 = vpush %v891_v23 }
 0x536   : > { %s1181_s23 = spop %1180 }
 0x537   : > { %v893_v24 = vstv %s1181_s23 }
 0x538   : > { %v894_v25 = vmul.f32 0.00048828125, %v893_v24 }
 0x53a   : > { %v895_v26 = vadd.f32 1e-08, %v894_v25 }
 0x53c   : > { %1200 = vrsqrt.f32 %v895_v26 }
 0x549   : > { %v1201_v29 = vpop.eup %1200 }
 0x54a   : > { %v897_v30 = vmul.f32 %v1201_v29, %v879_v9  ;;  %v898_v31 = vmul.f32 %v1201_v29, %v880_v10 }
 0x54c   : > { %v909_v32 = vmul.f32 %v902_v27, %v897_v30  ;;  %v910_v33 = vmul.f32 %v907_v28, %v898_v31 }
 0x54e   : > { %v921_v36 = vadd.f32 %v914_v34, %v909_v32  ;;  %v922_v37 = vadd.f32 %v919_v35, %v910_v33 }
 0x550   : > { %v925_v40 = vpack.c.bf16 %v922_v37, %v921_v36 }
 0x552   : > { %1163 = vmatpush3.bf16.msra.mxu1 %v925_v40  ;;  %1169 = vmatpush3.bf16.msra.mxu0 %v925_v40 }
 0x555   : > { %1165 = vmatmul.mubr.msk.bf16.vlgmr.msra.gmra.mxu1 %vm926_vm12, %v924_v41  ;;  %1171 = vmatmul.mubr.msk.bf16.vlgmr.msra.gmra.mxu0 %vm926_vm12, %v981_v42 }
 0x615   : > { %v964_v44 = vpop.f32.mrf.mxu1  ;;  %v1019_v45 = vpop.f32.mrf.mxu0 }
 0x616   : > { %v970_v48 = vadd.f32 %v964_v44, %v1340_v7  ;;  %v1025_v49 = vadd.f32 %v1019_v45, %v979_v43 }
 0x617   : > { %v1166_v50 = vpop.f32.mrf.mxu1  ;;  %v1172_v51 = vpop.f32.mrf.mxu0 }
 0x618   : > { %v977_v52 = vadd.f32 %v975_v46, %v970_v48  ;;  %v1032_v53 = vadd.f32 %v1030_v47, %v1025_v49 }
 0x619   : > { %v967_v54 = vpop.f32.mrf.mxu1  ;;  %v1022_v55 = vpop.f32.mrf.mxu0 }
 0x61a   : > { %978 = vst [vmem:[%s571_s1] sm:$0xff] %v977_v52  ;;  %1033 = vst [vmem:[%s575_s22] sm:$0xff] %v1032_v53 }
 0x61b   : > { %v1167_v56 = vpop.f32.mrf.mxu1  ;;  %v1173_v57 = vpop.f32.mrf.mxu0 }
 0x61c PF: > { %s32_s28 = sadd.s32 1, %s1208_s28  }
 0x61d   : > { %p29_p4 = scmp.ge.s32.totalorder %s32_s28, 4  }
 0x61f   :  { %31 = sbr.rel (!%p29_p4) target bundleno = 3 (0x3), region = 131 }

// kernel: tcn_forward.40
= control target key start
LH: loop header
LB: loop body
LE: loop exit
PB: predicated region body
PF: predicated region fallthrough
CT: control target
= control target key end

     0   :  { %s522_s21 = smov 0   ;;  %s561_s0 = inlined_call_operand.vmem [shape: f32[2,8,128], index: 0, kind: input, shape index: {}, may-alias: {0,5}]   ;;  %s562_s1 = inlined_call_operand.vmem [shape: f32[2,8,128], index: 1, kind: input, shape index: {}]   ;;  %s563_s2 = inlined_call_operand.vmem [shape: f32[2,8,128], index: 2, kind: input, shape index: {}, may-alias: {2,6}]   ;;  %s564_s3 = inlined_call_operand.vmem [shape: f32[8,1], index: 3, kind: input, shape index: {}]   ;;  %s565_s4 = inlined_call_operand.vmem [shape: f32[8,1], index: 4, kind: input, shape index: {}]   ;;  %s566_s5 = inlined_call_operand.vmem [shape: f32[2,8,128], index: 5, kind: output, shape index: {0}, may-alias: {0,5}]   ;;  %s567_s6 = inlined_call_operand.vmem [shape: f32[2,8,128], index: 6, kind: output, shape index: {1}, may-alias: {2,6}]  }
   0x1 LB: > { %s449_s22 = sadd.s32 4294967295, %s484_s21   ;;  %p453_p0 = scmp.ge.s32.totalorder %s484_s21, 1  ;;  %s484_s21 = sphi %s522_s21, %s17_s21  }
   0x2   : > { %p232_p1 = scmp.lt.s32.totalorder %s484_s21, 3 }
   0x4   : > { %p233_p2 = pnand %p453_p0, %p232_p1 }
   0x5   : > { %p272_p3 = scmp.lt.s32.totalorder (!%p233_p2), %s449_s22, 1 }
   0x6   : > { %236 = sbr.rel (%p233_p2) target bundleno = 453 (0x1c5), region = 40 }
   0xb   : > { %s569_s22 = smov (!%p272_p3, %s449_s22), 1  ;;  %v295_v3 = vld [vmem:[%s564_s3] sm:$0xff]  ;;  %v486_v4 = vmov 0  }
   0xc   : > { %s530_s23 = sshll.u32 %s569_s22, 3  ;;  %474 = vset.pattern.permute.xlu1 %v486_v4  ;;  %475 = vset.pattern.permute.xlu0 %v486_v4  ;;  %v296_v5 = vld [vmem:[%s565_s4] sm:$0xff] }
   0xd   : > { %s275_s26 = scalar_lea.vmem %s561_s0, %s530_s23  ;;  %s279_s29 = scalar_lea.vmem %s562_s1, %s530_s23  ;;  %327 = vperm.xlu1 %474, %v295_v3  }
   0xe   : > { %v292_v0 = vld [vmem:[%s275_s26] sm:$0xff]  ;;  %s283_s14 = scalar_lea.vmem %s563_s2, %s530_s23  ;;  %s287_s17 = scalar_lea.vmem %s566_s5, %s530_s23 }
   0xf   : > { %v293_v1 = vld [vmem:[%s279_s29] sm:$0xff]  ;;  %s291_s20 = scalar_lea.vmem %s567_s6, %s530_s23 }
  0x10   : > { %v294_v2 = vadd.f32 %v293_v1, %v292_v0  ;;  %v338_v32 = vld [vmem:[%s283_s14] sm:$0xff] }
  0x11   : > { %333 = vperm.xlu1 %474, %v296_v5  }
  0x12   : > { %297 = vadd.xlane.f32.xlu0 %v294_v2 }
  0x88   : > { %v328_v27 = vpop.permute.xlu1 %327 }
  0x8c   : > { %v334_v31 = vpop.permute.xlu1 %333 }
  0x9b   : > { %v298_v6 = vpop.xlane.xlu0 %297 }
  0x9c   : > { %v299_v7 = vrot.slane %v298_v6, 4 }
  0x9e   : > { %v300_v8 = vadd.f32 %v299_v7, %v298_v6 }
  0xa0   : > { %v301_v9 = vrot.slane %v300_v8, 2 }
  0xa2   : > { %v302_v10 = vadd.f32 %v301_v9, %v300_v8 }
  0xa4   : > { %v303_v11 = vrot.slane %v302_v10, 1 }
  0xa6   : > { %v304_v12 = vadd.f32 %v303_v11, %v302_v10 }
  0xa8   : > { %461 = vpush %v304_v12 }
  0xd9   : > { %s462_s10 = spop %461 }
  0xda   : > { %v306_v13 = vstv %s462_s10 }
  0xdb   : > { %v308_v14 = vmul.f32 0.0009765625, %v306_v13 }
  0xdd   : > { %v309_v15 = vsub.f32 %v294_v2, %v308_v14 }
  0xdf   : > { %v310_v16 = vmul.f32 %v309_v15, %v309_v15 }
  0xe1   : > { %311 = vadd.xlane.f32.xlu0 %v310_v16 }
 0x16a   : > { %v312_v17 = vpop.xlane.xlu0 %311 }
 0x16b   : > { %v313_v18 = vrot.slane %v312_v17, 4 }
 0x16d   : > { %v314_v19 = vadd.f32 %v313_v18, %v312_v17 }
 0x16f   : > { %v315_v20 = vrot.slane %v314_v19, 2 }
 0x171   : > { %v316_v21 = vadd.f32 %v315_v20, %v314_v19 }
 0x173   : > { %v317_v22 = vrot.slane %v316_v21, 1 }
 0x175   : > { %v318_v23 = vadd.f32 %v317_v22, %v316_v21 }
 0x177   : > { %463 = vpush %v318_v23 }
 0x1a8   : > { %s464_s11 = spop %463 }
 0x1a9   : > { %v320_v24 = vstv %s464_s11 }
 0x1aa   : > { %v321_v25 = vmul.f32 0.0009765625, %v320_v24 }
 0x1ac   : > { %v322_v26 = vadd.f32 1e-08, %v321_v25 }
 0x1ae   : > { %476 = vrsqrt.f32 %v322_v26 }
 0x1bb   : > { %v477_v28 = vpop.eup %476 }
 0x1bc   : > { %v324_v29 = vmul.f32 %v477_v28, %v309_v15 }
 0x1be   : > { %v330_v30 = vmul.f32 %v328_v27, %v324_v29 }
 0x1c0   : > { %v336_v33 = vadd.f32 %v334_v31, %v330_v30 }
 0x1c2   : > { %337 = vst [vmem:[%s287_s17] sm:$0xff] %v336_v33  ;;  %v339_v34 = vadd.f32 %v338_v32, %v336_v33 }
 0x1c4   : > { %340 = vst [vmem:[%s291_s20] sm:$0xff] %v339_v34 }
 0x1c5 PF: > { %s17_s21 = sadd.s32 1, %s484_s21  }
 0x1c6   : > { %p14_p4 = scmp.ge.s32.totalorder %s17_s21, 4  }
 0x1c8   :  { %16 = sbr.rel (!%p14_p4) target bundleno = 1 (0x1), region = 88 }

// kernel: tcn_forward.34
= control target key start
LH: loop header
LB: loop body
LE: loop exit
PB: predicated region body
PF: predicated region fallthrough
CT: control target
= control target key end

     0   :  { %s637_s21 = smov 0   ;;  %s679_s0 = inlined_call_operand.vmem [shape: f32[2,8,128], index: 0, kind: input, shape index: {}]   ;;  %s680_s1 = inlined_call_operand.vmem [shape: f32[2,8,128], index: 1, kind: input, shape index: {}]   ;;  %s681_s2 = inlined_call_operand.vmem [shape: f32[2,8,128], index: 2, kind: input, shape index: {}]   ;;  %s682_s3 = inlined_call_operand.vmem [shape: f32[2,8,128], index: 3, kind: input, shape index: {}]   ;;  %s683_s4 = inlined_call_operand.vmem [shape: f32[8,1], index: 4, kind: input, shape index: {}]   ;;  %s684_s5 = inlined_call_operand.vmem [shape: f32[8,1], index: 5, kind: input, shape index: {}]   ;;  %s685_s6 = inlined_call_operand.vmem [shape: f32[2,8,128], index: 6, kind: output, shape index: {}]  }
   0x1 LB: > { %s539_s22 = sadd.s32 4294967295, %s597_s21   ;;  %p543_p0 = scmp.ge.s32.totalorder %s597_s21, 1  ;;  %s597_s21 = sphi %s637_s21, %s16_s21  }
   0x2   : > { %p238_p1 = scmp.lt.s32.totalorder %s597_s21, 3 }
   0x4   : > { %p239_p2 = pnand %p543_p0, %p238_p1 }
   0x5   : > { %p278_p3 = scmp.lt.s32.totalorder (!%p239_p2), %s539_s22, 1 }
   0x6   : > { %242 = sbr.rel (%p239_p2) target bundleno = 1159 (0x487), region = 44 }
   0xb   : > { %v599_v0 = vmov 0.0   ;;  %vm600_vm0 = vmmov 0   ;;  %s687_s22 = smov (!%p278_p3, %s539_s22), 1  ;;  %vm344_vm1 = vcmask 64512   ;;  %vm363_vm2 = vcmask 1043456   ;;  %v407_v29 = vld [vmem:[%s683_s4] sm:$0xff] }
   0xc   : > { %556 = vmatprep.subr.bf16.mxu0 %v599_v0  ;;  %558 = vmatprep.mubr.msk.bf16.mxu0 %vm600_vm0, %v599_v0  ;;  %s645_s23 = sshll.u32 %s687_s22, 3  ;;  %v601_v30 = vmov 0   ;;  %v408_v42 = vld [vmem:[%s684_s5] sm:$0xff] }
   0xd   : > { %562 = vmatprep.subr.bf16.mxu1 %v599_v0  ;;  %564 = vmatprep.mubr.msk.bf16.mxu1 %vm600_vm0, %v599_v0  ;;  %s285_s26 = scalar_lea.vmem %s680_s1, %s645_s23  ;;  %s281_s29 = scalar_lea.vmem %s679_s0, %s645_s23 }
   0xe   : > { %v302_v1 = vld [vmem:[%s285_s26] sm:$0xff]  ;;  %s289_s8 = scalar_lea.vmem %s681_s2, %s645_s23  ;;  %s293_s11 = scalar_lea.vmem %s682_s3, %s645_s23  ;;  %583 = vset.pattern.permute.xlu0 %v601_v30  ;;  %584 = vset.pattern.permute.xlu1 %v601_v30 }
   0xf   : > { %v299_v2 = vld [vmem:[%s281_s29] sm:$0xff]  ;;  %v303_v3 = vpack.c.bf16 %v302_v1, %v302_v1  ;;  %s297_s20 = scalar_lea.vmem %s685_s6, %s645_s23 }
  0x10   : > { %v300_v4 = vmul.f32 0.088388346, %v299_v2  ;;  %v356_v16 = vld [vmem:[%s289_s8] sm:$0xff] }
  0x11   : > { %557 = vmatpush3.bf16.xpose.msra.mxu0 %v303_v3  ;;  %v358_v17 = vpack.c.bf16 %v356_v16, %v356_v16  ;;  %v359_v23 = vld [vmem:[%s293_s11] sm:$0xff] }
  0x12   : > { %v301_v5 = vpack.c.bf16 %v300_v4, %v300_v4 }
  0x13   : > { %v365_v18 = vsel %vm363_vm2, %v358_v17, 0 }
  0x14   : > { %563 = vmatpush3.bf16.msra.mxu1 %v365_v18 }
  0x18   : > { %559 = vmatmul.mubr.bf16.vlgmr.msra.gmra.mxu0 %v301_v5 }
  0xd8   : > { %v338_v6 = vpop.f32.mrf.mxu0 }
  0xd9   : > { %v345_v7 = vsel %vm344_vm1, %v338_v6, -inf }
  0xda   : > { %346 = vmax.xlane.f32.xlu0 %v345_v7  ;;  %v560_v8 = vpop.f32.mrf.mxu0 }
  0xdc   : > { %v341_v9 = vpop.f32.mrf.mxu0 }
  0xde   : > { %v561_v10 = vpop.f32.mrf.mxu0 }
 0x163   : > { %v347_v11 = vpop.xlane.xlu0 %346 }
 0x164   : > { %v348_v12 = vsub.f32 %v338_v6, %v347_v11 }
 0x166   : > { %v349_v13 = vmul.f32 1.442695, %v348_v12 }
 0x168   : > { %585 = vpow2.f32 %v349_v13 }
 0x175   : > { %v586_v14 = vpop.eup %585 }
 0x176   : > { %v351_v15 = vsel %vm344_vm1, %v586_v14, 0.0 }
 0x177   : > { %352 = vadd.xlane.f32.xlu0 %v351_v15 }
 0x18d   : > { %439 = vperm.xlu0 %583, %v407_v29  }
 0x200   : > { %v353_v19 = vpop.xlane.xlu0 %352 }
 0x201   : > { %587 = vrcp.f32 %v353_v19 }
 0x208   : > { %v440_v54 = vpop.permute.xlu0 %439 }
 0x20e   : > { %v588_v20 = vpop.eup %587 }
 0x20f   : > { %v355_v21 = vmul.f32 %v588_v20, %v586_v14 }
 0x211   : > { %v357_v22 = vpack.c.bf16 %v355_v21, %v355_v21 }
 0x213   : > { %565 = vmatmul.mubr.msk.bf16.vlgmr.msra.gmra.mxu1 %vm344_vm1, %v357_v22 }
 0x2d3   : > { %v401_v24 = vpop.f32.mrf.mxu1 }
 0x2d4   : > { %v402_v25 = vadd.f32 %v401_v24, %v359_v23 }
 0x2d5   : > { %v566_v26 = vpop.f32.mrf.mxu1 }
 0x2d6   : > { %409 = vadd.xlane.f32.xlu1 %v402_v25 }
 0x2d7   : > { %v404_v27 = vpop.f32.mrf.mxu1 }
 0x2d9   : > { %v567_v28 = vpop.f32.mrf.mxu1 }
 0x35f   : > { %v410_v31 = vpop.xlane.xlu1 %409 }
 0x360   : > { %v411_v32 = vrot.slane %v410_v31, 4 }
 0x362   : > { %v412_v33 = vadd.f32 %v411_v32, %v410_v31 }
 0x364   : > { %v413_v34 = vrot.slane %v412_v33, 2 }
 0x366   : > { %v414_v35 = vadd.f32 %v413_v34, %v412_v33 }
 0x368   : > { %v415_v36 = vrot.slane %v414_v35, 1 }
 0x36a   : > { %v416_v37 = vadd.f32 %v415_v36, %v414_v35 }
 0x36c   : > { %568 = vpush %v416_v37 }
 0x39d   : > { %s569_s14 = spop %568 }
 0x39e   : > { %v418_v38 = vstv %s569_s14 }
 0x39f   : > { %v420_v39 = vmul.f32 0.0009765625, %v418_v38 }
 0x3a1   : > { %v421_v40 = vsub.f32 %v402_v25, %v420_v39 }
 0x3a3   : > { %v422_v41 = vmul.f32 %v421_v40, %v421_v40 }
 0x3a5   : > { %423 = vadd.xlane.f32.xlu1 %v422_v41 }
 0x3b6   : > { %445 = vperm.xlu1 %584, %v408_v42  }
 0x42e   : > { %v424_v43 = vpop.xlane.xlu1 %423 }
 0x42f   : > { %v425_v44 = vrot.slane %v424_v43, 4 }
 0x431   : > { %v426_v45 = vadd.f32 %v425_v44, %v424_v43 }
 0x432   : > { %v446_v56 = vpop.permute.xlu1 %445 }
 0x433   : > { %v427_v46 = vrot.slane %v426_v45, 2 }
 0x435   : > { %v428_v47 = vadd.f32 %v427_v46, %v426_v45 }
 0x437   : > { %v429_v48 = vrot.slane %v428_v47, 1 }
 0x439   : > { %v430_v49 = vadd.f32 %v429_v48, %v428_v47 }
 0x43b   : > { %570 = vpush %v430_v49 }
 0x46c   : > { %s571_s17 = spop %570 }
 0x46d   : > { %v432_v50 = vstv %s571_s17 }
 0x46e   : > { %v433_v51 = vmul.f32 0.0009765625, %v432_v50 }
 0x470   : > { %v434_v52 = vadd.f32 1e-08, %v433_v51 }
 0x472   : > { %589 = vrsqrt.f32 %v434_v52 }
 0x47f   : > { %v590_v53 = vpop.eup %589 }
 0x480   : > { %v436_v55 = vmul.f32 %v590_v53, %v421_v40 }
 0x482   : > { %v442_v57 = vmul.f32 %v440_v54, %v436_v55 }
 0x484   : > { %v448_v58 = vadd.f32 %v446_v56, %v442_v57 }
 0x486   : > { %449 = vst [vmem:[%s297_s20] sm:$0xff] %v448_v58 }
 0x487 PF: > { %s16_s21 = sadd.s32 1, %s597_s21  }
 0x488   : > { %p13_p4 = scmp.ge.s32.totalorder %s16_s21, 4  }
 0x48a   :  { %15 = sbr.rel (!%p13_p4) target bundleno = 1 (0x1), region = 83 }

// kernel: tcn_forward.51
= control target key start
LH: loop header
LB: loop body
LE: loop exit
PB: predicated region body
PF: predicated region fallthrough
CT: control target
= control target key end

     0   :  { %s627_s18 = smov 0   ;;  %s691_s0 = inlined_call_operand.vmem [shape: f32[2,32,130], index: 0, kind: input, shape index: {}]   ;;  %s692_s1 = inlined_call_operand.vmem [shape: f32[8,96], index: 1, kind: input, shape index: {}]   ;;  %s693_s2 = inlined_call_operand.vmem [shape: f32[8,1], index: 2, kind: input, shape index: {}]   ;;  %s694_s3 = inlined_call_operand.vmem [shape: f32[8,1], index: 3, kind: input, shape index: {}]   ;;  %s695_s4 = inlined_call_operand.vmem [shape: f32[8,1], index: 4, kind: input, shape index: {}]   ;;  %s696_s5 = inlined_call_operand.vmem [shape: f32[2,8,128], index: 5, kind: output, shape index: {}]  }
   0x1 LB: > { %s488_s19 = sadd.s32 4294967295, %s590_s18   ;;  %p492_p0 = scmp.ge.s32.totalorder %s590_s18, 1  ;;  %s590_s18 = sphi %s627_s18, %s15_s18  }
   0x2   : > { %p187_p1 = scmp.lt.s32.totalorder %s590_s18, 3 }
   0x4   : > { %p188_p2 = pnand %p492_p0, %p187_p1 }
   0x5   : > { %p214_p3 = scmp.lt.s32.totalorder (!%p188_p2), %s488_s19, 1  ;;  %s593_s24 = smov (!%p188_p2), 126  }
   0x6   : > { %191 = sbr.rel (%p188_p2) target bundleno = 792 (0x318), region = 40  ;;  %s594_s25 = smov (!%p188_p2), 127  }
   0xb   : > { %s698_s19 = smov (!%p214_p3, %s488_s19), 1  ;;  %v592_v0 = vmov 0.0   ;;  %vm595_vm0 = vmmov 0   ;;  %v342_v15 = vld [vmem:[%s693_s2] sm:$0xff]  ;;  %v596_v16 = vmov 0   ;;  %vm309_vm1 = vcmask 1031168  }
   0xc   : > { %507 = vmatprep.subr.bf16.mxu0 %v592_v0  ;;  %s499_s20 = sshll.u32 %s698_s19, 6  ;;  %519 = vmatprep.mubr.msk.bf16.mxu0 %vm595_vm0, %v592_v0  ;;  %vm264_vm2 = vcmask 1039360   ;;  %v322_v53 = vld [vmem:[%s692_s1] sm:$0xff]  ;;  %vm348_vm3 = vcmask 785408   ;;  %s495_s11 = sshll.u32 %s698_s19, 3 }
   0xd   : > { %s218_s23 = scalar_lea.vmem %s691_s0, %s499_s20  ;;  %580 = vset.pattern.permute.xlu0 %v596_v16  ;;  %581 = vset.pattern.permute.xlu1 %v596_v16  ;;  %v335_v54 = vpack.c.bf16 %v322_v53, %v322_v53  ;;  %v392_v61 = vld [vmem:[%s694_s3] sm:$0xff]  ;;  %s222_s14 = scalar_lea.vmem %s696_s5, %s495_s11 }
   0xe   : > { %v642_v1 = vld [vmem:[%s218_s23 + $0x20] sm:$0xff]  ;;  %v282_v2 = vld [vmem:[%s218_s23 + $0x28] sm:$0xff]  ;;  %v647_v6 = vld [vmem:[%s218_s23 + $0x30] sm:$0xff] }
   0xf   : > { %v644_v3 = vld [vmem:[%s218_s23] sm:$0xff]  ;;  %v540_v4 = vpack.i.bf16 %v282_v2, %v642_v1  ;;  %v278_v5 = vld [vmem:[%s218_s23 + $0x8] sm:$0xff]  ;;  %v284_v7 = vld [vmem:[%s218_s23 + $0x38] sm:$0xff]  ;;  %v337_v13 = vpack.c.bf16 %v647_v6, %v642_v1 }
  0x10   : > { %v550_v8 = vpack.i.bf16 %v278_v5, %v644_v3  ;;  %v650_v9 = vld [vmem:[%s218_s23 + $0x10] sm:$0xff]  ;;  %v280_v10 = vld [vmem:[%s218_s23 + $0x18] sm:$0xff]  ;;  %v545_v11 = vpack.i.bf16 %v284_v7, %v647_v6 }
  0x11   : > { %541 = vrot.lane.b32.xlu0 %v540_v4, %s593_s24  ;;  %v555_v12 = vpack.i.bf16 %v280_v10, %v650_v9  ;;  %v336_v14 = vpack.c.bf16 %v650_v9, %v644_v3  ;;  %v393_v9 = vld [vmem:[%s695_s4] sm:$0xff] }
  0x12   : > { %551 = vrot.lane.b32.xlu1 %v550_v8, %s593_s24 }
  0x15   : > { %546 = vrot.lane.b32.xlu0 %v545_v11, %s593_s24 }
  0x16   : > { %556 = vrot.lane.b32.xlu1 %v555_v12, %s593_s24 }
  0x19   : > { %561 = vrot.lane.b32.xlu0 %v540_v4, %s594_s25 }
  0x1a   : > { %566 = vrot.lane.b32.xlu1 %v545_v11, %s594_s25 }
  0x1d   : > { %571 = vrot.lane.b32.xlu0 %v550_v8, %s594_s25 }
  0x1e   : > { %576 = vrot.lane.b32.xlu1 %v555_v12, %s594_s25 }
  0x21   : > { %345 = vperm.xlu0 %580, %v342_v15  }
  0x83   : > { %v542_v17 = vpop.permute.xlu0 %541 }
  0x84   : > { %v552_v18 = vpop.permute.xlu1 %551  ;;  %v544_v19 = vunpack.i.h.bf16 %v542_v17  ;;  %v543_v20 = vunpack.i.l.bf16 %v542_v17 }
  0x85   : > { %v554_v22 = vunpack.i.h.bf16 %v552_v18  ;;  %v553_v23 = vunpack.i.l.bf16 %v552_v18 }
  0x86   : > { %v312_v29 = vsel %vm309_vm1, %v543_v20, %v544_v19 }
  0x87   : > { %v547_v21 = vpop.permute.xlu0 %546  ;;  %v310_v36 = vsel %vm309_vm1, %v553_v23, %v554_v22 }
  0x88   : > { %v549_v24 = vunpack.i.h.bf16 %v547_v21  ;;  %v548_v25 = vunpack.i.l.bf16 %v547_v21  ;;  %v557_v26 = vpop.permute.xlu1 %556 }
  0x89   : > { %v559_v27 = vunpack.i.h.bf16 %v557_v26  ;;  %v558_v28 = vunpack.i.l.bf16 %v557_v26 }
  0x8a   : > { %v313_v30 = vsel %vm309_vm1, %v548_v25, %v549_v24 }
  0x8b   : > { %v341_v31 = vpack.c.bf16 %v313_v30, %v312_v29  ;;  %v562_v32 = vpop.permute.xlu0 %561  ;;  %v311_v37 = vsel %vm309_vm1, %v558_v28, %v559_v27 }
  0x8c   : > { %v567_v33 = vpop.permute.xlu1 %566  ;;  %v564_v34 = vunpack.i.h.bf16 %v562_v32  ;;  %v563_v35 = vunpack.i.l.bf16 %v562_v32  ;;  %v340_v41 = vpack.c.bf16 %v311_v37, %v310_v36 }
  0x8d   : > { %508 = vmatpush3.bf16.msra.mxu0 %v341_v31  ;;  %v569_v38 = vunpack.i.h.bf16 %v567_v33  ;;  %v568_v39 = vunpack.i.l.bf16 %v567_v33 }
  0x8e   : > { %509 = vmatprep.subr.bf16.mxu0 %v592_v0  ;;  %v267_v40 = vsel %vm264_vm2, %v563_v35, %v564_v34 }
  0x8f   : > { %v572_v42 = vpop.permute.xlu0 %571  ;;  %v268_v43 = vsel %vm264_vm2, %v568_v39, %v569_v38 }
  0x90   : > { %v577_v44 = vpop.permute.xlu1 %576  ;;  %v574_v45 = vunpack.i.h.bf16 %v572_v42  ;;  %v573_v46 = vunpack.i.l.bf16 %v572_v42  ;;  %v339_v49 = vpack.c.bf16 %v268_v43, %v267_v40 }
  0x91   : > { %510 = vmatpush3.bf16.msra.mxu0 %v340_v41  ;;  %v579_v47 = vunpack.i.h.bf16 %v577_v44  ;;  %v578_v48 = vunpack.i.l.bf16 %v577_v44 }
  0x92   : > { %511 = vmatprep.subr.bf16.mxu0 %v592_v0  ;;  %v265_v50 = vsel %vm264_vm2, %v573_v46, %v574_v45 }
  0x93   : > { %v266_v51 = vsel %vm264_vm2, %v578_v48, %v579_v47 }
  0x94   : > { %v338_v52 = vpack.c.bf16 %v266_v51, %v265_v50 }
  0x95   : > { %512 = vmatpush3.bf16.msra.mxu0 %v339_v49 }
  0x96   : > { %513 = vmatprep.subr.bf16.mxu0 %v592_v0 }
  0x99   : > { %514 = vmatpush3.bf16.msra.mxu0 %v338_v52 }
  0x9a   : > { %515 = vmatprep.subr.bf16.mxu0 %v592_v0 }
  0x9c   : > { %v346_v55 = vpop.permute.xlu0 %345 }
  0x9d   : > { %516 = vmatpush3.bf16.msra.mxu0 %v337_v13 }
  0x9e   : > { %517 = vmatprep.subr.bf16.mxu0 %v592_v0 }
  0xa1   : > { %518 = vmatpush3.bf16.msra.mxu0 %v336_v14 }
  0xa4   : > { %520 = vmatmul.mubr.msk.bf16.vlgmr.msra.gmra.mxu0 %vm348_vm3, %v335_v54 }
 0x164   : > { %v386_v56 = vpop.f32.mrf.mxu0 }
 0x165   : > { %v387_v57 = vadd.f32 %v386_v56, %v346_v55 }
 0x166   : > { %v521_v58 = vpop.f32.mrf.mxu0 }
 0x167   : > { %394 = vadd.xlane.f32.xlu1 %v387_v57 }
 0x168   : > { %v389_v59 = vpop.f32.mrf.mxu0 }
 0x16a   : > { %v522_v60 = vpop.f32.mrf.mxu0 }
 0x178   : > { %424 = vperm.xlu1 %581, %v392_v61  }
 0x1f0   : > { %v395_v62 = vpop.xlane.xlu1 %394 }
 0x1f1   : > { %v396_v63 = vrot.slane %v395_v62, 4 }
 0x1f3   : > { %v397_v1 = vadd.f32 %v396_v63, %v395_v62 }
 0x1f4   : > { %v425_v21 = vpop.permute.xlu1 %424 }
 0x1f5   : > { %v398_v0 = vrot.slane %v397_v1, 2 }
 0x1f7   : > { %v399_v2 = vadd.f32 %v398_v0, %v397_v1 }
 0x1f9   : > { %v400_v3 = vrot.slane %v399_v2, 1 }
 0x1fb   : > { %v401_v4 = vadd.f32 %v400_v3, %v399_v2 }
 0x1fd   : > { %523 = vpush %v401_v4 }
 0x22e   : > { %s524_s7 = spop %523 }
 0x22f   : > { %v403_v5 = vstv %s524_s7 }
 0x230   : > { %v405_v6 = vmul.f32 0.0009765625, %v403_v5 }
 0x232   : > { %v406_v7 = vsub.f32 %v387_v57, %v405_v6 }
 0x234   : > { %v407_v8 = vmul.f32 %v406_v7, %v406_v7 }
 0x236   : > { %408 = vadd.xlane.f32.xlu0 %v407_v8 }
 0x24c   : > { %430 = vperm.xlu0 %580, %v393_v9  }
 0x2bf   : > { %v409_v10 = vpop.xlane.xlu0 %408 }
 0x2c0   : > { %v410_v11 = vrot.slane %v409_v10, 4 }
 0x2c2   : > { %v411_v12 = vadd.f32 %v410_v11, %v409_v10 }
 0x2c4   : > { %v412_v13 = vrot.slane %v411_v12, 2 }
 0x2c6   : > { %v413_v14 = vadd.f32 %v412_v13, %v411_v12 }
 0x2c7   : > { %v431_v24 = vpop.permute.xlu0 %430 }
 0x2c8   : > { %v414_v15 = vrot.slane %v413_v14, 1 }
 0x2ca   : > { %v415_v16 = vadd.f32 %v414_v15, %v413_v14 }
 0x2cc   : > { %525 = vpush %v415_v16 }
 0x2fd   : > { %s526_s10 = spop %525 }
 0x2fe   : > { %v417_v17 = vstv %s526_s10 }
 0x2ff   : > { %v418_v18 = vmul.f32 0.0009765625, %v417_v17 }
 0x301   : > { %v419_v19 = vadd.f32 1e-08, %v418_v18 }
 0x303   : > { %582 = vrsqrt.f32 %v419_v19 }
 0x310   : > { %v583_v20 = vpop.eup %582 }
 0x311   : > { %v421_v22 = vmul.f32 %v583_v20, %v406_v7 }
 0x313   : > { %v427_v23 = vmul.f32 %v425_v21, %v421_v22 }
 0x315   : > { %v433_v25 = vadd.f32 %v431_v24, %v427_v23 }
 0x317   : > { %434 = vst [vmem:[%s222_s14] sm:$0xff] %v433_v25 }
 0x318 PF: > { %s15_s18 = sadd.s32 1, %s590_s18  }
 0x319   : > { %p12_p4 = scmp.ge.s32.totalorder %s15_s18, 4  }
 0x31b   :  { %14 = sbr.rel (!%p12_p4) target bundleno = 1 (0x1), region = 70 }

// kernel: tcn_forward.53
= control target key start
LH: loop header
LB: loop body
LE: loop exit
PB: predicated region body
PF: predicated region fallthrough
CT: control target
= control target key end

     0   :  { %s603_s0 = inlined_call_operand.vmem [shape: f32[2,8,128], index: 0, kind: input, shape index: {}]   ;;  %s604_s1 = inlined_call_operand.<no memory space> [shape: f32[1,1], index: 1, kind: input, shape index: {}]   ;;  %s605_s2 = inlined_call_operand.vmem [shape: f32[8,8], index: 2, kind: input, shape index: {}]   ;;  %s606_s3 = inlined_call_operand.vmem [shape: f32[8,1], index: 3, kind: input, shape index: {}]   ;;  %s607_s4 = inlined_call_operand.hbm [shape: f32[2,8,128], index: 4, kind: output, shape index: {}]  }
   0x1   :  { %v9_v0 = vstv %s604_s1 }
   0x2   :  { %10 = vst [vmem:[#allocation2] sm:$0x1] %v9_v0 }
   0x3   :  { %11 = vsyncpa [#allocation4], 0 }
   0x4   :  { %13 = vsyncpa [#allocation4 + $0x1], 0  ;;  %s498_s17 = smov 0   ;;  %s500_s18 = smov 0  }
   0x5   :  { %s502_s19 = smov 0   ;;  %s504_s20 = smov 0  }
   0x6 LB: > { %s519_s1 = sadd.s32 4294967295, %s464_s20   ;;  %s341_s21 = sadd.s32 4294967294, %s464_s20   ;;  %s464_s20 = sphi %s504_s20, %s613_s20   ;;  %s460_s19 = sphi %s502_s19, %s612_s19   ;;  %s456_s18 = sphi %s500_s18, %s611_s18   ;;  %s452_s17 = sphi %s498_s17, %s610_s17  }
   0x7   : > { %s523_s22 = sadd.s32 1, %s464_s20   ;;  %s115_s23 = sadd.s32 1, %s460_s19 }
   0x8   : > { %s112_s24 = ssub.s32 %s464_s20, %s523_s22  ;;  %p125_p0 = scmp.ne.s32.totalorder %s460_s19, %s456_s18 }
   0x9   : > { %p113_p1 = scmp.eq.s32.totalorder %s112_s24, 0  ;;  %p126_p2 = scmp.eq.s32.totalorder %s519_s1, 1 }
   0xa   : > { %p131_p3 = scmp.ne.s32.totalorder %s456_s18, %s452_s17  ;;  %p132_p4 = scmp.eq.s32.totalorder %s341_s21, 1 }
   0xb   : > { %s534_s25 = scalar_select %p113_p1, %s460_s19, %s115_s23  }
   0xc   : > { %p536_p5 = por %p126_p2, %p125_p0  ;;  %p540_p6 = por %p132_p4, %p131_p3 }
   0xd   : > { %p344_p7 = scmp.ge.s32.totalorder %s464_s20, 1  ;;  %p166_p8 = scmp.lt.s32.totalorder %s464_s20, 3 }
   0xf   : > { %p167_p9 = pnand %p344_p7, %p166_p8 }
  0x10   : > { %p191_p10 = scmp.lt.s32.totalorder (!%p167_p9), %s519_s1, 1  ;;  %s188_s11 = sand.u32 (!%p167_p9), 1, %s456_s18  }
  0x11   : > { %170 = sbr.rel (%p167_p9) target bundleno = 366 (0x16e), region = 36  ;;  %s345_s12 = sshll.u32 (!%p167_p9), %s188_s11, 3 }
  0x12   : > { %s350_s13 = sshll.u32 (!%p167_p9), %s519_s1, 7  ;;  %s190_s14 = scalar_lea.vmem (!%p167_p9), [#allocation3], %s345_s12 }
  0x13   : > { %s282_s15 = sshll.u32 (!%p167_p9), %s190_s14, 4  ;;  %s562_s23 = scalar_lea.hbm (!%p167_p9), %s607_s4, %s350_s13  ;;  %s564_s15 = int_to_ptr.vmem [resolvable:$true] %s282_s15 }
  0x14   : > { %s269_s24 = scalar_lea.sflag (!%p167_p9), [#allocation4], %s188_s11  ;;  %s469_s28 = smov (!%p167_p9), [#allocation3]  }
  0x15   : > { %s408_s29 = sshll.u32 (!%p167_p9), %s469_s28, 4  ;;  %s409_s29 = int_to_ptr.vmem [resolvable:$false] %s408_s29 }
  0x16   : > { %v347_v1 = vld [vmem:[#allocation2] ss:$0 sm:$0xff]  ;;  %v466_v2 = vmov 0   ;;  %v467_v3 = vmov 0.0   ;;  %vm468_vm0 = vmmov 0   ;;  %s192_s30 = scalar_select %p191_p10, %s519_s1, 1 }
  0x17   : > { %403 = vset.pattern.permute.xlu0 %v466_v2  ;;  %355 = vmatprep.subr.bf16.mxu0 %v467_v3  ;;  %v213_v4 = vld [vmem:[%s606_s3] sm:$0xff]  ;;  %vm223_vm2 = vcmask 1043456   ;;  %vm219_vm3 = vcmask 64512   ;;  %s404_s1 = scalar_lea.vmem %s564_s15, 128  ;;  %p411_p0 = scmp.lt.s32.totalorder %s564_s15, %s409_s29 }
  0x18   : > { %206 = vperm.xlu0 %403, %v347_v1   ;;  %357 = vmatprep.mubr.msk.bf16.mxu0 %vm468_vm0, %v467_v3  ;;  %s346_s5 = sshll.u32 %s192_s30, 3  ;;  %v196_v9 = vld [vmem:[%s605_s2] sm:$0xff]  ;;  %p405_p11 = scmp.ne.s32.totalorder %s564_s15, %s404_s1 }
  0x19   : > { %s194_s8 = scalar_lea.vmem %s603_s0, %s346_s5  ;;  %v211_v12 = vpack.c.bf16 %v196_v9, %v196_v9  ;;  %s410_s30 = scalar_lea.vmem %s409_s29, 256 }
  0x1a   : > { %v197_v5 = vld [vmem:[%s194_s8] sm:$0xff]  ;;  %p406_p12 = pnand %p405_p11, %p536_p5  ;;  %p412_p1 = scmp.lt.s32.totalorder %s410_s30, %s404_s1 }
  0x1b   : > { %vm199_vm1 = vcmp.ge.f32.partialorder %v197_v5, 0.0 }
  0x1c   : > { %216 = vperm.xlu0 %403, %v213_v4   ;;  %p407_p13 = pneg %p406_p12  ;;  %p413_p2 = por %p412_p1, %p411_p0 }
  0x1e   : > { %p414_p3 = pnand %p413_p2, %p407_p13 }
  0x93   : > { %v207_v6 = vpop.permute.xlu0 %206 }
  0x94   : > { %v209_v7 = vmul.f32 %v207_v6, %v197_v5 }
  0x96   : > { %v210_v8 = vsel %vm199_vm1, %v197_v5, %v209_v7 }
  0x97   : > { %v212_v10 = vpack.c.bf16 %v210_v8, %v210_v8  ;;  %v217_v13 = vpop.permute.xlu0 %216 }
  0x99   : > { %v225_v11 = vsel %vm223_vm2, %v212_v10, 0 }
  0x9a   : > { %356 = vmatpush3.bf16.msra.mxu0 %v225_v11 }
  0x9d   : > { %358 = vmatmul.mubr.msk.bf16.vlgmr.msra.gmra.mxu0 %vm219_vm3, %v211_v12 }
 0x15d   : > { %v261_v14 = vpop.f32.mrf.mxu0 }
 0x15e   : > { %v262_v15 = vadd.f32 %v261_v14, %v217_v13 }
 0x15f   : > { %v359_v16 = vpop.f32.mrf.mxu0 }
 0x160   : > { %267 = vst [vmem:[%s190_s14] sm:$0xff] %v262_v15 }
 0x161   : > { %v264_v17 = vpop.f32.mrf.mxu0 }
 0x162   : > { %417 = shalt.err (!%p414_p3)
}
 0x163   : > { %s418_s5 = scalar_lea.hbm %s562_s23, 128  ;;  %s422_s8 = scalar_lea.hbm %s607_s4, 256 }
 0x164   : > { %p419_p4 = scmp.ne.s32.totalorder %s562_s23, %s418_s5  ;;  %p423_p9 = scmp.lt.s32.totalorder %s562_s23, %s607_s4 }
 0x165   : > { %p424_p10 = scmp.lt.s32.totalorder %s422_s8, %s418_s5 }
 0x166   : > { %p420_p7 = pnand %p419_p4, %p536_p5 }
 0x167   : > { %p425_p11 = por %p424_p10, %p423_p9 }
 0x168   : > { %p421_p8 = pneg %p420_p7 }
 0x16a   : > { %p426_p12 = pnand %p425_p11, %p421_p8 }
 0x16c   : > { %429 = shalt.err (!%p426_p12)
}
 0x16d   : > { %361 = dma.vmem_to_hbm [thread:$0]  (%p536_p5), %s564_s15, 128, %s562_s23, %s269_s24   ;;  %v360_v18 = vpop.f32.mrf.mxu0 }
 0x16e PF: > { %p367_p13 = scmp.ge.s32.totalorder %s464_s20, 2  ;;  %s294_s11 = sand.u32 1, %s452_s17  }
 0x16f   : > { %s295_s12 = scalar_lea.sflag [#allocation4], %s294_s11 }
 0x170   : > { %p364_p0 = pnand %p367_p13, %p540_p6 }
 0x172   : > { %p365_p1 = pneg %p364_p0 }
 0x174   : > { %447 = dma.done.wait (%p365_p1), %s295_s12, 128  }
 0x175   : > { %449 = vsyncadd (%p365_p1), %s295_s12, 4294967168  ;;  %p16_p2 = scmp.ge.s32.totalorder %s523_s22, 4   ;;  %s610_s17 = smov %s456_s18 }
 0x176   : > { %s611_s18 = smov %s460_s19  ;;  %s612_s19 = smov %s534_s25 }
 0x177   : > { %s613_s20 = smov %s523_s22  ;;  %18 = sbr.rel (!%p16_p2) target bundleno = 6 (0x6), region = 71 }
 0x17c   :  { %300 = vsyncpa [#allocation4], 1 }
 0x17d   :  { %302 = vsyncpa [#allocation4 + $0x1], 1 }

</bundles_post_ra>
